<compile_context>
chip_gen: v5e
topology: v5e:2x2
jax: 0.10.0
libtpu: 0.0.40
codegen_flags: <defaults>
</compile_context>

<pallas_src>
import functools

import jax
import jax.numpy as jnp
from jax import lax
from jax.experimental import pallas as pl
from jax.experimental.pallas import tpu as pltpu


def _silu(v):
    return v * jax.nn.sigmoid(v)


# ---------------------------------------------------------------------------
# pltpu.roll direction probe (one tiny kernel, cached).  The kernel below only
# needs "shift rows down/up by one"; this pins the convention at runtime.
# TODO(synk): drop the probe once pltpu.roll's direction is relied on directly.
# ---------------------------------------------------------------------------
_ROLL_FWD = None


def _roll_is_numpy_convention():
    """True iff pltpu.roll(x, 1, axis=0)[i] == x[i-1] (np.roll convention)."""
    global _ROLL_FWD
    if _ROLL_FWD is None:
        def probe(o_ref):
            o_ref[...] = pltpu.roll(
                lax.broadcasted_iota(jnp.int32, (8, 128), 0), 1, axis=0)
        try:
            with jax.ensure_compile_time_eval():
                r = pl.pallas_call(
                    probe, out_shape=jax.ShapeDtypeStruct((8, 128), jnp.int32))()
                _ROLL_FWD = bool(int(jax.device_get(r)[1, 0]) == 0)
        except Exception:
            _ROLL_FWD = True
    return _ROLL_FWD


# ---------------------------------------------------------------------------
# Kernel
# ---------------------------------------------------------------------------
def _c2_kernel(xt_ref, xc_ref, xb_ref,
               wa_ref, wb_ref, wk1_ref, wk2_ref, w2_ref,
               ba_ref, bb_ref, b1_ref, b2_ref, b3_ref,
               o_ref, a_ref, lhs_ref, *, img_h, n_btl, add, roll_fwd):
    """One (batch, row-tile) step of the fused C2 forward.

    xt/xc/xb : bf16 NHWC row slabs (top halo, center, bottom halo) of the input.
    w*_ref   : bf16 conv weights with the BN scale folded in.
    b*_ref   : f32 BN biases.
    a_ref    : f32 VMEM scratch holding the cv1 "a" slab (flattened rows*W, c).
    lhs_ref  : bf16 VMEM scratch holding the wide-K (3*c) lhs, reused by all convs.
    """
    f32 = jnp.float32
    bf16 = jnp.bfloat16
    th = o_ref.shape[1]
    wdim = o_ref.shape[2]
    c_out = o_ref.shape[3]
    c1 = wa_ref.shape[0]
    c = wa_ref.shape[1]
    halo = 2 * n_btl                     # receptive-field halo rows per side
    rows0 = th + 2 * halo
    m_max = rows0 * wdim

    r0 = pl.program_id(1) * th           # first global output row of this tile
    not_top = r0 > 0                     # no conv zero padding above this tile
    not_last = (r0 + th) < img_h         # no conv zero padding below this tile

    # Hoisted index vectors (one sublane iota, reused by every conv / mask).
    flat_idx = lax.broadcasted_iota(jnp.int32, (m_max, 1), 0)
    col_idx = flat_idx % wdim
    not_first_col = col_idx != 0
    not_last_col = col_idx != (wdim - 1)

    def shift_down(v, mi):               # out[i] = v[i-1]
        return pltpu.roll(v, 1 if roll_fwd else mi - 1, axis=0)

    def shift_up(v, mi):                 # out[i] = v[i+1]
        return pltpu.roll(v, mi - 1 if roll_fwd else 1, axis=0)

    def zero_oob_rows(arr, rows, n_edge):
        # Zero the first / last n_edge rows when they fall outside the image
        # (they act as the 3x3 conv's vertical zero padding).  Single masked
        # select, no concatenates; interior tiles keep everything.
        if n_edge == 0:
            return arr
        mi = rows * wdim
        idx = flat_idx[:mi]
        keep = ((idx >= n_edge * wdim) | not_top) & \
               ((idx < (rows - n_edge) * wdim) | not_last)
        return jnp.where(keep, arr, 0.0)

    def conv3x3_bn_silu(inp, rows, wk_ref, k, bias):
        # inp : (rows*W, c) f32, out-of-image rows already zeroed.
        # out : ((rows-2)*W, c) f32 = SiLU(conv3x3(inp)*bn_scale + bn_bias),
        #       valid in H on the slab, SAME (zero) padded in W.
        mi = rows * wdim
        mo = (rows - 2) * wdim
        # W-shifted copies via flat sublane rolls; the roll only crosses a row
        # boundary in the column the mask zeroes anyway (horizontal padding).
        left = jnp.where(not_first_col[:mi], shift_down(inp, mi), 0.0)   # in[:, u-1]
        right = jnp.where(not_last_col[:mi], shift_up(inp, mi), 0.0)     # in[:, u+1]
        lhs_ref[0:mi] = jnp.concatenate(
            [left.astype(bf16), inp.astype(bf16), right.astype(bf16)], axis=-1)
        # 3 wide-K (3*c) matmuls, one per kh tap, read straight from the scratch;
        # acc starts from the kh=0 matmul with the BN bias folded in.
        acc = bias + jnp.dot(lhs_ref[0:mo], wk_ref[k, 0],
                             preferred_element_type=f32)
        acc = acc + jnp.dot(lhs_ref[wdim:wdim + mo], wk_ref[k, 1],
                            preferred_element_type=f32)
        acc = acc + jnp.dot(lhs_ref[2 * wdim:2 * wdim + mo], wk_ref[k, 2],
                            preferred_element_type=f32)
        return _silu(acc)

    # ---- cv1 (1x1 conv + BN + SiLU): three row pieces straight into a_ref ----
    xt2 = xt_ref[0].reshape(halo * wdim, c1)
    a_top = _silu(jnp.dot(xt2, wa_ref[...], preferred_element_type=f32) + ba_ref[...])
    a_ref[0:halo * wdim] = jnp.where(not_top, a_top, 0.0)

    xc2 = xc_ref[0].reshape(th * wdim, c1)
    a_ref[halo * wdim:(halo + th) * wdim] = _silu(
        jnp.dot(xc2, wa_ref[...], preferred_element_type=f32) + ba_ref[...])

    xb2 = xb_ref[0].reshape(halo * wdim, c1)
    a_bot = _silu(jnp.dot(xb2, wa_ref[...], preferred_element_type=f32) + ba_ref[...])
    a_ref[(halo + th) * wdim:m_max] = jnp.where(not_last, a_bot, 0.0)

    # b branch of cv1 only needs the center rows (reuses xc2).
    b_branch = _silu(jnp.dot(xc2, wb_ref[...], preferred_element_type=f32) + bb_ref[...])

    # ---- m: chain of Bottleneck(c, c, shortcut, k=((3,3),(3,3)), e=1.0) ----
    cur = a_ref[...]                     # ((th+2*halo)*W, c) f32
    rows = rows0
    for k in range(n_btl):
        d = n_btl - k
        y1 = conv3x3_bn_silu(cur, rows, wk1_ref, k, b1_ref[k])
        y1 = zero_oob_rows(y1, rows - 2, 2 * d - 1)
        y2 = conv3x3_bn_silu(y1, rows - 2, wk2_ref, k, b2_ref[k])
        if add:
            y2 = y2 + cur[2 * wdim:(rows - 2) * wdim]
        cur = zero_oob_rows(y2, rows - 4, 2 * (d - 1))
        rows -= 4
    # cur: (th*W, c) == m(a) restricted to this tile's rows

    # ---- cv2 (1x1 conv + BN + SiLU) on concat(m(a), b): one fused K=2c matmul ----
    cat = jnp.concatenate([cur.astype(bf16), b_branch.astype(bf16)], axis=-1)
    out = _silu(jnp.dot(cat, w2_ref[...], preferred_element_type=f32) + b3_ref[...])
    # TODO(synk): a lane-dense (w*c_out) store would further help narrow c_out, but
    # the last-dim-merging reshape it needs is not reliably lowered by Mosaic.
    o_ref[0] = out.reshape(th, wdim, c_out).astype(o_ref.dtype)


# ---------------------------------------------------------------------------
# Tiling / VMEM budgeting
# ---------------------------------------------------------------------------
def _vmem_budgets():
    """(vmem_limit_bytes for the kernel, picker budget) derived from the chip."""
    phys = 64 * 1024 * 1024              # conservative fallback (v7x has 64 MiB)
    try:
        phys = int(pltpu.get_tpu_info().vmem_capacity_bytes)
    except Exception:
        pass
    limit = min((phys * 3) // 4, 100 * 1024 * 1024)   # 48 MiB on v7x, 96 MiB on v5e/v6e
    return limit, (limit * 3) // 5


def _step_vmem_bytes(th, w, c1, c, c_out, n_btl, out_bytes):
    """Rough per-grid-step VMEM footprint (blocks, weights, scratch, temporaries)."""
    halo = 2 * n_btl
    m_full = (th + 2 * halo) * w
    in_blocks = 2 * 2 * m_full * c1                              # bf16, double-buffered
    out_block = 2 * th * w * c_out * out_bytes                   # double-buffered
    weights = 2 * 2 * (c1 * 2 * c + n_btl * 2 * 3 * 3 * c * c + 2 * c * c_out)
    scratch = m_full * c * 4 + m_full * 3 * c * 2                # a slab + wide-K lhs
    temps = 8 * m_full * c * 4 + th * w * (2 * c * 2 + c_out * 4)
    return in_blocks + out_block + weights + scratch + temps


def _pick_tile_rows(h, w, nb, c1, c, c_out, n_btl, budget_bytes, out_bytes=4,
                    min_steps=8):
    """Largest row tile that divides H, is a multiple of the halo, fits the VMEM
    budget, and (when possible) keeps >= min_steps grid steps for pipelining /
    the 2 TensorCores on v7x."""
    halo = 2 * n_btl
    cands = [t for t in range(halo, h + 1, halo) if h % t == 0]
    if not cands:
        return h
    fit = [t for t in cands
           if _step_vmem_bytes(t, w, c1, c, c_out, n_btl, out_bytes) <= budget_bytes]
    if not fit:
        return cands[0]
    pref = [t for t in fit if nb * (h // t) >= min_steps]
    return max(pref) if pref else max(fit)


# ---------------------------------------------------------------------------
# Wrappers
# ---------------------------------------------------------------------------
def c2_pallas_nhwc(x_nhwc, params, shortcut=True, tile_rows=None,
                   out_dtype=jnp.float32):
    """Fused C2 forward on NHWC activations (keep consecutive blocks NHWC/bf16)."""
    (w_cv1, s_cv1, b_cv1), bns, (w_cv2, s_cv2, b_cv2) = params
    n_btl = len(bns)
    nb, h, w, c1 = x_nhwc.shape
    c = w_cv1.shape[-1] // 2             # hidden width (= int(c2 * e))
    c_out = w_cv2.shape[-1]
    halo = 2 * n_btl

    vmem_limit, picker_budget = _vmem_budgets()
    out_bytes = jnp.dtype(out_dtype).itemsize
    th = tile_rows if tile_rows is not None else _pick_tile_rows(
        h, w, nb, c1, c, c_out, n_btl, picker_budget, out_bytes)
    # TODO(synk): H not divisible by (row tile, halo) would need row padding; typical
    # even feature-map sizes satisfy this.
    assert h % th == 0 and th % halo == 0, (h, th, halo)

    f32, bf16 = jnp.float32, jnp.bfloat16

    def fold(wgt, scale):                # fold BN scale into the conv weight -> bf16
        return (wgt.astype(f32) * scale.astype(f32)).astype(bf16)

    w1x1 = fold(w_cv1[0, 0], s_cv1)                        # (c1, 2c)
    wa, wb = w1x1[:, :c], w1x1[:, c:]
    ba = b_cv1[:c].reshape(1, c).astype(f32)
    bb = b_cv1[c:].reshape(1, c).astype(f32)

    # Bottleneck 3x3 weights reshaped so the 3 dw taps sit along K: (3, 3*c, c).
    wk1 = jnp.stack([fold(p1[0], p1[1]).reshape(3, 3 * c, c) for p1, _ in bns])
    wk2 = jnp.stack([fold(p2[0], p2[1]).reshape(3, 3 * c, c) for _, p2 in bns])
    b1s = jnp.stack([p1[2].reshape(1, c) for p1, _ in bns]).astype(f32)
    b2s = jnp.stack([p2[2].reshape(1, c) for _, p2 in bns]).astype(f32)

    w2 = fold(w_cv2[0, 0], s_cv2)                          # (2c, c_out): [0,c)=m(a), [c,2c)=b
    b3 = b_cv2.reshape(1, c_out).astype(f32)

    x = x_nhwc.astype(bf16)

    n_hblk = h // halo
    ratio = th // halo
    grid = (nb, h // th)
    m_max = (th + 2 * halo) * w

    kernel = functools.partial(_c2_kernel, img_h=h, n_btl=n_btl,
                               add=bool(shortcut),
                               roll_fwd=_roll_is_numpy_convention())

    out = pl.pallas_call(
        kernel,
        out_shape=jax.ShapeDtypeStruct((nb, h, w, c_out), out_dtype),
        grid_spec=pltpu.PrefetchScalarGridSpec(
            num_scalar_prefetch=0,
            grid=grid,
            in_specs=[
                # top halo rows [r0-halo, r0), clamped at the image top (zeroed in-kernel)
                pl.BlockSpec((1, halo, w, c1),
                             lambda b, t: (b, jnp.maximum(t * ratio - 1, 0), 0, 0)),
                # center rows [r0, r0+th)
                pl.BlockSpec((1, th, w, c1), lambda b, t: (b, t, 0, 0)),
                # bottom halo rows [r0+th, r0+th+halo), clamped at the image bottom
                pl.BlockSpec((1, halo, w, c1),
                             lambda b, t: (b, jnp.minimum((t + 1) * ratio, n_hblk - 1), 0, 0)),
                pl.BlockSpec((c1, c), lambda b, t: (0, 0)),                      # wa
                pl.BlockSpec((c1, c), lambda b, t: (0, 0)),                      # wb
                pl.BlockSpec((n_btl, 3, 3 * c, c), lambda b, t: (0, 0, 0, 0)),   # wk1
                pl.BlockSpec((n_btl, 3, 3 * c, c), lambda b, t: (0, 0, 0, 0)),   # wk2
                pl.BlockSpec((2 * c, c_out), lambda b, t: (0, 0)),               # w2 (fused cv2)
                pl.BlockSpec((1, c), lambda b, t: (0, 0)),                       # ba
                pl.BlockSpec((1, c), lambda b, t: (0, 0)),                       # bb
                pl.BlockSpec((n_btl, 1, c), lambda b, t: (0, 0, 0)),             # b1s
                pl.BlockSpec((n_btl, 1, c), lambda b, t: (0, 0, 0)),             # b2s
                pl.BlockSpec((1, c_out), lambda b, t: (0, 0)),                   # b3
            ],
            out_specs=pl.BlockSpec((1, th, w, c_out), lambda b, t: (b, t, 0, 0)),
            scratch_shapes=[
                pltpu.VMEM((m_max, c), jnp.float32),        # cv1 "a" slab (flat rows)
                pltpu.VMEM((m_max, 3 * c), jnp.bfloat16),   # wide-K lhs, reused by all convs
            ],
        ),
        compiler_params=pltpu.CompilerParams(
            dimension_semantics=("parallel", "parallel"),   # batch x row-tiles (v7x: 2 TCs)
            vmem_limit_bytes=vmem_limit),
    )(x, x, x, wa, wb, wk1, wk2, w2, ba, bb, b1s, b2s, b3)
    return out


def c2_pallas(x_nchw, params, shortcut=True, tile_rows=None, out_dtype=jnp.float32):
    """PyTorch-convention wrapper: NCHW f32 in, NCHW out.  For chains of blocks,
    call c2_pallas_nhwc directly and keep activations NHWC (saves two HBM passes)."""
    x = jnp.transpose(x_nchw, (0, 2, 3, 1))                # NCHW -> NHWC
    out = c2_pallas_nhwc(x, params, shortcut=shortcut, tile_rows=tile_rows,
                         out_dtype=out_dtype)
    return jnp.transpose(out, (0, 3, 1, 2))                # back to NCHW


# ---------------------------------------------------------------------------
# Parameters / pure-JAX reference
# ---------------------------------------------------------------------------
def init_c2_params(key, c1, c2_out, n=1, e=0.5, eps=1e-3):
    """Deterministic synthetic params. Conv weights in HWIO; BN folded to scale/bias."""
    c = int(c2_out * e)

    def conv_bn(k, kh, kw, cin, cout):
        k1, k2, k3, k4, k5 = jax.random.split(k, 5)
        wgt = 0.1 * jax.random.normal(k1, (kh, kw, cin, cout), jnp.float32)
        gamma = 1.0 + 0.1 * jax.random.normal(k2, (cout,), jnp.float32)
        beta = 0.1 * jax.random.normal(k3, (cout,), jnp.float32)
        mean = 0.1 * jax.random.normal(k4, (cout,), jnp.float32)
        var = jnp.abs(jax.random.normal(k5, (cout,), jnp.float32)) + 0.5
        scale = gamma / jnp.sqrt(var + eps)
        bias = beta - mean * scale
        return wgt, scale, bias

    keys = jax.random.split(key, 2 + 2 * n)
    cv1 = conv_bn(keys[0], 1, 1, c1, 2 * c)
    cv2 = conv_bn(keys[1], 1, 1, 2 * c, c2_out)
    bns = tuple((conv_bn(keys[2 + 2 * i], 3, 3, c, c),
                 conv_bn(keys[3 + 2 * i], 3, 3, c, c)) for i in range(n))
    return cv1, bns, cv2


def c2_ref(x_nchw, params, shortcut=True):
    """Pure-JAX f32 reference (XLA convs) for the correctness check."""
    (w_cv1, s_cv1, b_cv1), bns, (w_cv2, s_cv2, b_cv2) = params
    x = jnp.transpose(x_nchw, (0, 2, 3, 1)).astype(jnp.float32)

    def cbs(v, wgt, s, b):
        y = lax.conv_general_dilated(
            v, wgt, window_strides=(1, 1), padding="SAME",
            dimension_numbers=("NHWC", "HWIO", "NHWC"))
        y = y * s.reshape(1, 1, 1, -1) + b.reshape(1, 1, 1, -1)
        return y * jax.nn.sigmoid(y)

    y = cbs(x, w_cv1, s_cv1, b_cv1)
    c = w_cv1.shape[-1] // 2
    a, b_part = y[..., :c], y[..., c:]
    for p1, p2 in bns:
        hcur = cbs(cbs(a, *p1), *p2)
        a = a + hcur if shortcut else hcur
    y = cbs(jnp.concatenate([a, b_part], axis=-1), w_cv2, s_cv2, b_cv2)
    return jnp.transpose(y, (0, 3, 1, 2))


if __name__ == "__main__":
    key = jax.random.PRNGKey(0)
    kx, kp = jax.random.split(key)

    # C2(c1=8, c2=8, n=1, shortcut=True): hidden c = int(8 * 0.5) = 4
    batch, c1, c2ch, height, width = 2, 8, 8, 16, 16
    x = jax.random.normal(kx, (batch, c1, height, width), jnp.float32)  # NCHW like PyTorch
    params = init_c2_params(kp, c1, c2ch, n=1)
    ref = c2_ref(x, params, shortcut=True)

    # Fixed row tile (2 row tiles -> exercises the halo / edge-masking path).
    out = jax.block_until_ready(c2_pallas(x, params, shortcut=True, tile_rows=8))
    assert out.shape == (batch, c2ch, height, width)
    err = float(jnp.max(jnp.abs(out - ref)))
    assert err < 2e-2, f"max abs err {err}"

    # Auto-picked row tile (exercises the VMEM-budget tile picker).
    out2 = jax.block_until_ready(c2_pallas(x, params, shortcut=True))
    err2 = float(jnp.max(jnp.abs(out2 - ref)))
    assert err2 < 2e-2, f"max abs err {err2}"

    print("KERNEL_OK")
</pallas_src>

<mosaic_0001>
module attributes {stable_mosaic.version = 11 : i64} {
  func.func @_c2_kernel(%arg0: i32, %arg1: i32, %arg2: memref<1x2x16x8xbf16, #tpu.memory_space<vmem>>, %arg3: memref<1x8x16x8xbf16, #tpu.memory_space<vmem>>, %arg4: memref<1x2x16x8xbf16, #tpu.memory_space<vmem>>, %arg5: memref<8x4xbf16, #tpu.memory_space<vmem>>, %arg6: memref<8x4xbf16, #tpu.memory_space<vmem>>, %arg7: memref<1x3x12x4xbf16, #tpu.memory_space<vmem>>, %arg8: memref<1x3x12x4xbf16, #tpu.memory_space<vmem>>, %arg9: memref<8x8xbf16, #tpu.memory_space<vmem>>, %arg10: memref<1x4xf32, #tpu.memory_space<vmem>>, %arg11: memref<1x4xf32, #tpu.memory_space<vmem>>, %arg12: memref<1x1x4xf32, #tpu.memory_space<vmem>>, %arg13: memref<1x1x4xf32, #tpu.memory_space<vmem>>, %arg14: memref<1x8xf32, #tpu.memory_space<vmem>>, %arg15: memref<1x8x16x8xf32, #tpu.memory_space<vmem>>, %arg16: memref<192x4xf32, #tpu.memory_space<vmem>>, %arg17: memref<192x12xbf16, #tpu.memory_space<vmem>>) attributes {dimension_semantics = [#tpu.dimension_semantics<parallel>, #tpu.dimension_semantics<parallel>], iteration_bounds = array<i64: 2, 2>, scalar_prefetch = 0 : i64, scratch_operands = 2 : i64, tpu.core_type = #tpu.core_type<tc>, window_params = [{transform_indices = @transform_0, window_bounds = array<i64: 1, 2, 16, 8>}, {transform_indices = @transform_1, window_bounds = array<i64: 1, 8, 16, 8>}, {transform_indices = @transform_2, window_bounds = array<i64: 1, 2, 16, 8>}, {pipeline_mode = #tpu.pipeline_mode<synchronous>, transform_indices = @transform_3, window_bounds = array<i64: 8, 4>}, {pipeline_mode = #tpu.pipeline_mode<synchronous>, transform_indices = @transform_4, window_bounds = array<i64: 8, 4>}, {pipeline_mode = #tpu.pipeline_mode<synchronous>, transform_indices = @transform_5, window_bounds = array<i64: 1, 3, 12, 4>}, {pipeline_mode = #tpu.pipeline_mode<synchronous>, transform_indices = @transform_6, window_bounds = array<i64: 1, 3, 12, 4>}, {pipeline_mode = #tpu.pipeline_mode<synchronous>, transform_indices = @transform_7, window_bounds = array<i64: 8, 8>}, {pipeline_mode = #tpu.pipeline_mode<synchronous>, transform_indices = @transform_8, window_bounds = array<i64: 1, 4>}, {pipeline_mode = #tpu.pipeline_mode<synchronous>, transform_indices = @transform_9, window_bounds = array<i64: 1, 4>}, {pipeline_mode = #tpu.pipeline_mode<synchronous>, transform_indices = @transform_10, window_bounds = array<i64: 1, 1, 4>}, {pipeline_mode = #tpu.pipeline_mode<synchronous>, transform_indices = @transform_11, window_bounds = array<i64: 1, 1, 4>}, {pipeline_mode = #tpu.pipeline_mode<synchronous>, transform_indices = @transform_12, window_bounds = array<i64: 1, 8>}, {transform_indices = @transform_13, window_bounds = array<i64: 1, 8, 16, 8>}]} {
    %c8_i32 = arith.constant 8 : i32
    %0 = arith.muli %arg1, %c8_i32 : i32
    %c0_i32 = arith.constant 0 : i32
    %1 = arith.cmpi sgt, %0, %c0_i32 : i32
    %c8_i32_0 = arith.constant 8 : i32
    %2 = arith.addi %0, %c8_i32_0 : i32
    %c16_i32 = arith.constant 16 : i32
    %3 = arith.cmpi slt, %2, %c16_i32 : i32
    %4 = tpu.iota {dimensions = array<i32: 0>} : vector<192x1xi32>
    %c16_i32_1 = arith.constant 16 : i32
    %c0_i32_2 = arith.constant 0 : i32
    %5 = arith.cmpi eq, %c16_i32_1, %c0_i32_2 : i32
    %c1_i32 = arith.constant 1 : i32
    %6 = arith.select %5, %c1_i32, %c16_i32_1 : i32
    %7 = vector.broadcast %6 : i32 to vector<192x1xi32>
    %8 = arith.remsi %4, %7 : vector<192x1xi32>
    %c0_i32_3 = arith.constant 0 : i32
    %9 = vector.broadcast %c0_i32_3 : i32 to vector<192x1xi32>
    %10 = arith.cmpi ne, %8, %9 : vector<192x1xi32>
    %c0_i32_4 = arith.constant 0 : i32
    %11 = vector.broadcast %c0_i32_4 : i32 to vector<192x1xi32>
    %12 = arith.cmpi slt, %8, %11 : vector<192x1xi32>
    %c0_i32_5 = arith.constant 0 : i32
    %13 = arith.cmpi slt, %6, %c0_i32_5 : i32
    %14 = vector.broadcast %13 : i1 to vector<192x1xi1>
    %15 = vector.broadcast %14 : vector<192x1xi1> to vector<192x1xi1>
    %16 = arith.xori %12, %15 : vector<192x1xi1>
    %17 = arith.andi %16, %10 : vector<192x1xi1>
    %18 = vector.broadcast %6 : i32 to vector<192x1xi32>
    %19 = arith.addi %8, %18 : vector<192x1xi32>
    %20 = arith.select %17, %19, %8 : vector<192x1xi1>, vector<192x1xi32>
    %c0_i32_6 = arith.constant 0 : i32
    %21 = vector.broadcast %c0_i32_6 : i32 to vector<192x1xi32>
    %22 = arith.cmpi ne, %20, %21 : vector<192x1xi32>
    %c15_i32 = arith.constant 15 : i32
    %23 = vector.broadcast %c15_i32 : i32 to vector<192x1xi32>
    %24 = arith.cmpi ne, %20, %23 : vector<192x1xi32>
    %c0 = arith.constant 0 : index
    %c0_7 = arith.constant 0 : index
    %c0_8 = arith.constant 0 : index
    %c0_9 = arith.constant 0 : index
    %25 = vector.load %arg2[%c0, %c0_7, %c0_8, %c0_9] : memref<1x2x16x8xbf16, #tpu.memory_space<vmem>>, vector<1x2x16x8xbf16>
    %26 = vector.shape_cast %25 : vector<1x2x16x8xbf16> to vector<2x16x8xbf16>
    %27 = vector.shape_cast %26 : vector<2x16x8xbf16> to vector<32x8xbf16>
    %c0_10 = arith.constant 0 : index
    %c0_11 = arith.constant 0 : index
    %28 = vector.load %arg5[%c0_10, %c0_11] : memref<8x4xbf16, #tpu.memory_space<vmem>>, vector<8x4xbf16>
    %cst = arith.constant dense<0.000000e+00> : vector<32x4xf32>
    %29 = tpu.matmul %27, %28, %cst {dimension_numbers = #tpu.dot_dimension_numbers<[1], [0], [0], [1], [0, 0, 1, 1], [], []>} : vector<32x8xbf16>, vector<8x4xbf16>, vector<32x4xf32> -> vector<32x4xf32>
    %c0_12 = arith.constant 0 : index
    %c0_13 = arith.constant 0 : index
    %30 = vector.load %arg10[%c0_12, %c0_13] : memref<1x4xf32, #tpu.memory_space<vmem>>, vector<1x4xf32>
    %31 = vector.broadcast %30 : vector<1x4xf32> to vector<32x4xf32>
    %32 = arith.addf %29, %31 : vector<32x4xf32>
    %33 = arith.negf %32 : vector<32x4xf32>
    %34 = math.exp %33 : vector<32x4xf32>
    %cst_14 = arith.constant 1.000000e+00 : f32
    %35 = vector.broadcast %cst_14 : f32 to vector<32x4xf32>
    %36 = arith.addf %35, %34 : vector<32x4xf32>
    %37 = arith.divf %35, %36 : vector<32x4xf32>
    %38 = arith.mulf %32, %37 : vector<32x4xf32>
    %cst_15 = arith.constant 0.000000e+00 : f32
    %39 = vector.broadcast %cst_15 : f32 to vector<32x4xf32>
    %40 = arith.select %1, %38, %39 : vector<32x4xf32>
    %c0_16 = arith.constant 0 : index
    %c0_17 = arith.constant 0 : index
    %41 = vector.load %arg16[%c0_16, %c0_17] : memref<192x4xf32, #tpu.memory_space<vmem>>, vector<32x4xf32>
    tpu.vector_store %arg16[%c0_16, %c0_17], %40 {strides = array<i32>} : memref<192x4xf32, #tpu.memory_space<vmem>>, vector<32x4xf32>,
    %c0_18 = arith.constant 0 : index
    %c0_19 = arith.constant 0 : index
    %c0_20 = arith.constant 0 : index
    %c0_21 = arith.constant 0 : index
    %42 = vector.load %arg3[%c0_18, %c0_19, %c0_20, %c0_21] : memref<1x8x16x8xbf16, #tpu.memory_space<vmem>>, vector<1x8x16x8xbf16>
    %43 = vector.shape_cast %42 : vector<1x8x16x8xbf16> to vector<8x16x8xbf16>
    %44 = vector.shape_cast %43 : vector<8x16x8xbf16> to vector<128x8xbf16>
    %c0_22 = arith.constant 0 : index
    %c0_23 = arith.constant 0 : index
    %45 = vector.load %arg5[%c0_22, %c0_23] : memref<8x4xbf16, #tpu.memory_space<vmem>>, vector<8x4xbf16>
    %cst_24 = arith.constant dense<0.000000e+00> : vector<128x4xf32>
    %46 = tpu.matmul %44, %45, %cst_24 {dimension_numbers = #tpu.dot_dimension_numbers<[1], [0], [0], [1], [0, 0, 1, 1], [], []>} : vector<128x8xbf16>, vector<8x4xbf16>, vector<128x4xf32> -> vector<128x4xf32>
    %c0_25 = arith.constant 0 : index
    %c0_26 = arith.constant 0 : index
    %47 = vector.load %arg10[%c0_25, %c0_26] : memref<1x4xf32, #tpu.memory_space<vmem>>, vector<1x4xf32>
    %48 = vector.broadcast %47 : vector<1x4xf32> to vector<128x4xf32>
    %49 = arith.addf %46, %48 : vector<128x4xf32>
    %50 = arith.negf %49 : vector<128x4xf32>
    %51 = math.exp %50 : vector<128x4xf32>
    %cst_27 = arith.constant 1.000000e+00 : f32
    %52 = vector.broadcast %cst_27 : f32 to vector<128x4xf32>
    %53 = arith.addf %52, %51 : vector<128x4xf32>
    %54 = arith.divf %52, %53 : vector<128x4xf32>
    %55 = arith.mulf %49, %54 : vector<128x4xf32>
    %c32 = arith.constant 32 : index
    %c0_28 = arith.constant 0 : index
    %56 = vector.load %arg16[%c32, %c0_28] : memref<192x4xf32, #tpu.memory_space<vmem>>, vector<128x4xf32>
    tpu.vector_store %arg16[%c32, %c0_28], %55 {strides = array<i32>} : memref<192x4xf32, #tpu.memory_space<vmem>>, vector<128x4xf32>,
    %c0_29 = arith.constant 0 : index
    %c0_30 = arith.constant 0 : index
    %c0_31 = arith.constant 0 : index
    %c0_32 = arith.constant 0 : index
    %57 = vector.load %arg4[%c0_29, %c0_30, %c0_31, %c0_32] : memref<1x2x16x8xbf16, #tpu.memory_space<vmem>>, vector<1x2x16x8xbf16>
    %58 = vector.shape_cast %57 : vector<1x2x16x8xbf16> to vector<2x16x8xbf16>
    %59 = vector.shape_cast %58 : vector<2x16x8xbf16> to vector<32x8xbf16>
    %c0_33 = arith.constant 0 : index
    %c0_34 = arith.constant 0 : index
    %60 = vector.load %arg5[%c0_33, %c0_34] : memref<8x4xbf16, #tpu.memory_space<vmem>>, vector<8x4xbf16>
    %cst_35 = arith.constant dense<0.000000e+00> : vector<32x4xf32>
    %61 = tpu.matmul %59, %60, %cst_35 {dimension_numbers = #tpu.dot_dimension_numbers<[1], [0], [0], [1], [0, 0, 1, 1], [], []>} : vector<32x8xbf16>, vector<8x4xbf16>, vector<32x4xf32> -> vector<32x4xf32>
    %c0_36 = arith.constant 0 : index
    %c0_37 = arith.constant 0 : index
    %62 = vector.load %arg10[%c0_36, %c0_37] : memref<1x4xf32, #tpu.memory_space<vmem>>, vector<1x4xf32>
    %63 = vector.broadcast %62 : vector<1x4xf32> to vector<32x4xf32>
    %64 = arith.addf %61, %63 : vector<32x4xf32>
    %65 = arith.negf %64 : vector<32x4xf32>
    %66 = math.exp %65 : vector<32x4xf32>
    %cst_38 = arith.constant 1.000000e+00 : f32
    %67 = vector.broadcast %cst_38 : f32 to vector<32x4xf32>
    %68 = arith.addf %67, %66 : vector<32x4xf32>
    %69 = arith.divf %67, %68 : vector<32x4xf32>
    %70 = arith.mulf %64, %69 : vector<32x4xf32>
    %cst_39 = arith.constant 0.000000e+00 : f32
    %71 = vector.broadcast %cst_39 : f32 to vector<32x4xf32>
    %72 = arith.select %3, %70, %71 : vector<32x4xf32>
    %c160 = arith.constant 160 : index
    %c0_40 = arith.constant 0 : index
    %73 = vector.load %arg16[%c160, %c0_40] : memref<192x4xf32, #tpu.memory_space<vmem>>, vector<32x4xf32>
    tpu.vector_store %arg16[%c160, %c0_40], %72 {strides = array<i32>} : memref<192x4xf32, #tpu.memory_space<vmem>>, vector<32x4xf32>,
    %c0_41 = arith.constant 0 : index
    %c0_42 = arith.constant 0 : index
    %74 = vector.load %arg6[%c0_41, %c0_42] : memref<8x4xbf16, #tpu.memory_space<vmem>>, vector<8x4xbf16>
    %cst_43 = arith.constant dense<0.000000e+00> : vector<128x4xf32>
    %75 = tpu.matmul %44, %74, %cst_43 {dimension_numbers = #tpu.dot_dimension_numbers<[1], [0], [0], [1], [0, 0, 1, 1], [], []>} : vector<128x8xbf16>, vector<8x4xbf16>, vector<128x4xf32> -> vector<128x4xf32>
    %c0_44 = arith.constant 0 : index
    %c0_45 = arith.constant 0 : index
    %76 = vector.load %arg11[%c0_44, %c0_45] : memref<1x4xf32, #tpu.memory_space<vmem>>, vector<1x4xf32>
    %77 = vector.broadcast %76 : vector<1x4xf32> to vector<128x4xf32>
    %78 = arith.addf %75, %77 : vector<128x4xf32>
    %79 = arith.negf %78 : vector<128x4xf32>
    %80 = math.exp %79 : vector<128x4xf32>
    %cst_46 = arith.constant 1.000000e+00 : f32
    %81 = vector.broadcast %cst_46 : f32 to vector<128x4xf32>
    %82 = arith.addf %81, %80 : vector<128x4xf32>
    %83 = arith.divf %81, %82 : vector<128x4xf32>
    %84 = arith.mulf %78, %83 : vector<128x4xf32>
    %c0_47 = arith.constant 0 : index
    %c0_48 = arith.constant 0 : index
    %85 = vector.load %arg16[%c0_47, %c0_48] : memref<192x4xf32, #tpu.memory_space<vmem>>, vector<192x4xf32>
    %c0_49 = arith.constant 0 : index
    %c0_50 = arith.constant 0 : index
    %c0_51 = arith.constant 0 : index
    %86 = vector.load %arg12[%c0_49, %c0_50, %c0_51] : memref<1x1x4xf32, #tpu.memory_space<vmem>>, vector<1x1x4xf32>
    %87 = vector.shape_cast %86 : vector<1x1x4xf32> to vector<1x4xf32>
    %c1_i32_52 = arith.constant 1 : i32
    %88 = tpu.dynamic_rotate %85 by %c1_i32_52 dim 0 : vector<192x4xf32>, i32 -> vector<192x4xf32>
    %cst_53 = arith.constant 0.000000e+00 : f32
    %89 = vector.shape_cast %22 : vector<192x1xi1> to vector<192x1xi1>
    %90 = vector.broadcast %89 : vector<192x1xi1> to vector<192x4xi1>
    %91 = vector.broadcast %cst_53 : f32 to vector<192x4xf32>
    %92 = arith.select %90, %88, %91 : vector<192x4xi1>, vector<192x4xf32>
    %c191_i32 = arith.constant 191 : i32
    %93 = tpu.dynamic_rotate %85 by %c191_i32 dim 0 : vector<192x4xf32>, i32 -> vector<192x4xf32>
    %cst_54 = arith.constant 0.000000e+00 : f32
    %94 = vector.shape_cast %24 : vector<192x1xi1> to vector<192x1xi1>
    %95 = vector.broadcast %94 : vector<192x1xi1> to vector<192x4xi1>
    %96 = vector.broadcast %cst_54 : f32 to vector<192x4xf32>
    %97 = arith.select %95, %93, %96 : vector<192x4xi1>, vector<192x4xf32>
    %98 = arith.truncf %92 : vector<192x4xf32> to vector<192x4xbf16>
    %99 = arith.truncf %85 : vector<192x4xf32> to vector<192x4xbf16>
    %100 = arith.truncf %97 : vector<192x4xf32> to vector<192x4xbf16>
    %101 = tpu.concatenate %98, %99, %100 in 1 : vector<192x4xbf16>, vector<192x4xbf16>, vector<192x4xbf16> -> vector<192x12xbf16>
    %c0_55 = arith.constant 0 : index
    %c0_56 = arith.constant 0 : index
    %102 = vector.load %arg17[%c0_55, %c0_56] : memref<192x12xbf16, #tpu.memory_space<vmem>>, vector<192x12xbf16>
    tpu.vector_store %arg17[%c0_55, %c0_56], %101 {strides = array<i32>} : memref<192x12xbf16, #tpu.memory_space<vmem>>, vector<192x12xbf16>,
    %c0_57 = arith.constant 0 : index
    %c0_58 = arith.constant 0 : index
    %103 = vector.load %arg17[%c0_57, %c0_58] : memref<192x12xbf16, #tpu.memory_space<vmem>>, vector<160x12xbf16>
    %c0_59 = arith.constant 0 : index
    %c0_60 = arith.constant 0 : index
    %c0_61 = arith.constant 0 : index
    %c0_62 = arith.constant 0 : index
    %104 = vector.load %arg7[%c0_59, %c0_60, %c0_61, %c0_62] : memref<1x3x12x4xbf16, #tpu.memory_space<vmem>>, vector<1x1x12x4xbf16>
    %105 = vector.shape_cast %104 : vector<1x1x12x4xbf16> to vector<12x4xbf16>
    %cst_63 = arith.constant dense<0.000000e+00> : vector<160x4xf32>
    %106 = tpu.matmul %103, %105, %cst_63 {dimension_numbers = #tpu.dot_dimension_numbers<[1], [0], [0], [1], [0, 0, 1, 1], [], []>} : vector<160x12xbf16>, vector<12x4xbf16>, vector<160x4xf32> -> vector<160x4xf32>
    %107 = vector.broadcast %87 : vector<1x4xf32> to vector<160x4xf32>
    %108 = arith.addf %107, %106 : vector<160x4xf32>
    %c16 = arith.constant 16 : index
    %c0_64 = arith.constant 0 : index
    %109 = vector.load %arg17[%c16, %c0_64] : memref<192x12xbf16, #tpu.memory_space<vmem>>, vector<160x12xbf16>
    %c0_65 = arith.constant 0 : index
    %c1 = arith.constant 1 : index
    %c0_66 = arith.constant 0 : index
    %c0_67 = arith.constant 0 : index
    %110 = vector.load %arg7[%c0_65, %c1, %c0_66, %c0_67] : memref<1x3x12x4xbf16, #tpu.memory_space<vmem>>, vector<1x1x12x4xbf16>
    %111 = vector.shape_cast %110 : vector<1x1x12x4xbf16> to vector<12x4xbf16>
    %cst_68 = arith.constant dense<0.000000e+00> : vector<160x4xf32>
    %112 = tpu.matmul %109, %111, %cst_68 {dimension_numbers = #tpu.dot_dimension_numbers<[1], [0], [0], [1], [0, 0, 1, 1], [], []>} : vector<160x12xbf16>, vector<12x4xbf16>, vector<160x4xf32> -> vector<160x4xf32>
    %113 = arith.addf %108, %112 : vector<160x4xf32>
    %c32_69 = arith.constant 32 : index
    %c0_70 = arith.constant 0 : index
    %114 = vector.load %arg17[%c32_69, %c0_70] : memref<192x12xbf16, #tpu.memory_space<vmem>>, vector<160x12xbf16>
    %c0_71 = arith.constant 0 : index
    %c2 = arith.constant 2 : index
    %c0_72 = arith.constant 0 : index
    %c0_73 = arith.constant 0 : index
    %115 = vector.load %arg7[%c0_71, %c2, %c0_72, %c0_73] : memref<1x3x12x4xbf16, #tpu.memory_space<vmem>>, vector<1x1x12x4xbf16>
    %116 = vector.shape_cast %115 : vector<1x1x12x4xbf16> to vector<12x4xbf16>
    %cst_74 = arith.constant dense<0.000000e+00> : vector<160x4xf32>
    %117 = tpu.matmul %114, %116, %cst_74 {dimension_numbers = #tpu.dot_dimension_numbers<[1], [0], [0], [1], [0, 0, 1, 1], [], []>} : vector<160x12xbf16>, vector<12x4xbf16>, vector<160x4xf32> -> vector<160x4xf32>
    %118 = arith.addf %113, %117 : vector<160x4xf32>
    %119 = arith.negf %118 : vector<160x4xf32>
    %120 = math.exp %119 : vector<160x4xf32>
    %cst_75 = arith.constant 1.000000e+00 : f32
    %121 = vector.broadcast %cst_75 : f32 to vector<160x4xf32>
    %122 = arith.addf %121, %120 : vector<160x4xf32>
    %123 = arith.divf %121, %122 : vector<160x4xf32>
    %124 = arith.mulf %118, %123 : vector<160x4xf32>
    %125 = vector.extract_strided_slice %4 {offsets = [0, 0], sizes = [160, 1], strides = [1, 1]} : vector<192x1xi32> to vector<160x1xi32>
    %c16_i32_76 = arith.constant 16 : i32
    %126 = vector.broadcast %c16_i32_76 : i32 to vector<160x1xi32>
    %127 = arith.cmpi sge, %125, %126 : vector<160x1xi32>
    %128 = vector.broadcast %1 : i1 to vector<160x1xi1>
    %129 = arith.ori %127, %128 : vector<160x1xi1>
    %c144_i32 = arith.constant 144 : i32
    %130 = vector.broadcast %c144_i32 : i32 to vector<160x1xi32>
    %131 = arith.cmpi slt, %125, %130 : vector<160x1xi32>
    %132 = vector.broadcast %3 : i1 to vector<160x1xi1>
    %133 = arith.ori %131, %132 : vector<160x1xi1>
    %134 = arith.andi %129, %133 : vector<160x1xi1>
    %cst_77 = arith.constant 0.000000e+00 : f32
    %135 = vector.shape_cast %134 : vector<160x1xi1> to vector<160x1xi1>
    %136 = vector.broadcast %135 : vector<160x1xi1> to vector<160x4xi1>
    %137 = vector.broadcast %cst_77 : f32 to vector<160x4xf32>
    %138 = arith.select %136, %124, %137 : vector<160x4xi1>, vector<160x4xf32>
    %c0_78 = arith.constant 0 : index
    %c0_79 = arith.constant 0 : index
    %c0_80 = arith.constant 0 : index
    %139 = vector.load %arg13[%c0_78, %c0_79, %c0_80] : memref<1x1x4xf32, #tpu.memory_space<vmem>>, vector<1x1x4xf32>
    %140 = vector.shape_cast %139 : vector<1x1x4xf32> to vector<1x4xf32>
    %141 = vector.extract_strided_slice %22 {offsets = [0, 0], sizes = [160, 1], strides = [1, 1]} : vector<192x1xi1> to vector<160x1xi1>
    %c1_i32_81 = arith.constant 1 : i32
    %142 = tpu.dynamic_rotate %138 by %c1_i32_81 dim 0 : vector<160x4xf32>, i32 -> vector<160x4xf32>
    %cst_82 = arith.constant 0.000000e+00 : f32
    %143 = vector.shape_cast %141 : vector<160x1xi1> to vector<160x1xi1>
    %144 = vector.broadcast %143 : vector<160x1xi1> to vector<160x4xi1>
    %145 = vector.broadcast %cst_82 : f32 to vector<160x4xf32>
    %146 = arith.select %144, %142, %145 : vector<160x4xi1>, vector<160x4xf32>
    %147 = vector.extract_strided_slice %24 {offsets = [0, 0], sizes = [160, 1], strides = [1, 1]} : vector<192x1xi1> to vector<160x1xi1>
    %c159_i32 = arith.constant 159 : i32
    %148 = tpu.dynamic_rotate %138 by %c159_i32 dim 0 : vector<160x4xf32>, i32 -> vector<160x4xf32>
    %cst_83 = arith.constant 0.000000e+00 : f32
    %149 = vector.shape_cast %147 : vector<160x1xi1> to vector<160x1xi1>
    %150 = vector.broadcast %149 : vector<160x1xi1> to vector<160x4xi1>
    %151 = vector.broadcast %cst_83 : f32 to vector<160x4xf32>
    %152 = arith.select %150, %148, %151 : vector<160x4xi1>, vector<160x4xf32>
    %153 = arith.truncf %146 : vector<160x4xf32> to vector<160x4xbf16>
    %154 = arith.truncf %138 : vector<160x4xf32> to vector<160x4xbf16>
    %155 = arith.truncf %152 : vector<160x4xf32> to vector<160x4xbf16>
    %156 = tpu.concatenate %153, %154, %155 in 1 : vector<160x4xbf16>, vector<160x4xbf16>, vector<160x4xbf16> -> vector<160x12xbf16>
    %c0_84 = arith.constant 0 : index
    %c0_85 = arith.constant 0 : index
    %157 = vector.load %arg17[%c0_84, %c0_85] : memref<192x12xbf16, #tpu.memory_space<vmem>>, vector<160x12xbf16>
    tpu.vector_store %arg17[%c0_84, %c0_85], %156 {strides = array<i32>} : memref<192x12xbf16, #tpu.memory_space<vmem>>, vector<160x12xbf16>,
    %c0_86 = arith.constant 0 : index
    %c0_87 = arith.constant 0 : index
    %158 = vector.load %arg17[%c0_86, %c0_87] : memref<192x12xbf16, #tpu.memory_space<vmem>>, vector<128x12xbf16>
    %c0_88 = arith.constant 0 : index
    %c0_89 = arith.constant 0 : index
    %c0_90 = arith.constant 0 : index
    %c0_91 = arith.constant 0 : index
    %159 = vector.load %arg8[%c0_88, %c0_89, %c0_90, %c0_91] : memref<1x3x12x4xbf16, #tpu.memory_space<vmem>>, vector<1x1x12x4xbf16>
    %160 = vector.shape_cast %159 : vector<1x1x12x4xbf16> to vector<12x4xbf16>
    %cst_92 = arith.constant dense<0.000000e+00> : vector<128x4xf32>
    %161 = tpu.matmul %158, %160, %cst_92 {dimension_numbers = #tpu.dot_dimension_numbers<[1], [0], [0], [1], [0, 0, 1, 1], [], []>} : vector<128x12xbf16>, vector<12x4xbf16>, vector<128x4xf32> -> vector<128x4xf32>
    %162 = vector.broadcast %140 : vector<1x4xf32> to vector<128x4xf32>
    %163 = arith.addf %162, %161 : vector<128x4xf32>
    %c16_93 = arith.constant 16 : index
    %c0_94 = arith.constant 0 : index
    %164 = vector.load %arg17[%c16_93, %c0_94] : memref<192x12xbf16, #tpu.memory_space<vmem>>, vector<128x12xbf16>
    %c0_95 = arith.constant 0 : index
    %c1_96 = arith.constant 1 : index
    %c0_97 = arith.constant 0 : index
    %c0_98 = arith.constant 0 : index
    %165 = vector.load %arg8[%c0_95, %c1_96, %c0_97, %c0_98] : memref<1x3x12x4xbf16, #tpu.memory_space<vmem>>, vector<1x1x12x4xbf16>
    %166 = vector.shape_cast %165 : vector<1x1x12x4xbf16> to vector<12x4xbf16>
    %cst_99 = arith.constant dense<0.000000e+00> : vector<128x4xf32>
    %167 = tpu.matmul %164, %166, %cst_99 {dimension_numbers = #tpu.dot_dimension_numbers<[1], [0], [0], [1], [0, 0, 1, 1], [], []>} : vector<128x12xbf16>, vector<12x4xbf16>, vector<128x4xf32> -> vector<128x4xf32>
    %168 = arith.addf %163, %167 : vector<128x4xf32>
    %c32_100 = arith.constant 32 : index
    %c0_101 = arith.constant 0 : index
    %169 = vector.load %arg17[%c32_100, %c0_101] : memref<192x12xbf16, #tpu.memory_space<vmem>>, vector<128x12xbf16>
    %c0_102 = arith.constant 0 : index
    %c2_103 = arith.constant 2 : index
    %c0_104 = arith.constant 0 : index
    %c0_105 = arith.constant 0 : index
    %170 = vector.load %arg8[%c0_102, %c2_103, %c0_104, %c0_105] : memref<1x3x12x4xbf16, #tpu.memory_space<vmem>>, vector<1x1x12x4xbf16>
    %171 = vector.shape_cast %170 : vector<1x1x12x4xbf16> to vector<12x4xbf16>
    %cst_106 = arith.constant dense<0.000000e+00> : vector<128x4xf32>
    %172 = tpu.matmul %169, %171, %cst_106 {dimension_numbers = #tpu.dot_dimension_numbers<[1], [0], [0], [1], [0, 0, 1, 1], [], []>} : vector<128x12xbf16>, vector<12x4xbf16>, vector<128x4xf32> -> vector<128x4xf32>
    %173 = arith.addf %168, %172 : vector<128x4xf32>
    %174 = arith.negf %173 : vector<128x4xf32>
    %175 = math.exp %174 : vector<128x4xf32>
    %cst_107 = arith.constant 1.000000e+00 : f32
    %176 = vector.broadcast %cst_107 : f32 to vector<128x4xf32>
    %177 = arith.addf %176, %175 : vector<128x4xf32>
    %178 = arith.divf %176, %177 : vector<128x4xf32>
    %179 = arith.mulf %173, %178 : vector<128x4xf32>
    %180 = vector.extract_strided_slice %85 {offsets = [32, 0], sizes = [128, 4], strides = [1, 1]} : vector<192x4xf32> to vector<128x4xf32>
    %181 = arith.addf %179, %180 : vector<128x4xf32>
    %182 = arith.truncf %181 : vector<128x4xf32> to vector<128x4xbf16>
    %183 = arith.truncf %84 : vector<128x4xf32> to vector<128x4xbf16>
    %184 = tpu.concatenate %182, %183 in 1 : vector<128x4xbf16>, vector<128x4xbf16> -> vector<128x8xbf16>
    %c0_108 = arith.constant 0 : index
    %c0_109 = arith.constant 0 : index
    %185 = vector.load %arg9[%c0_108, %c0_109] : memref<8x8xbf16, #tpu.memory_space<vmem>>, vector<8x8xbf16>
    %cst_110 = arith.constant dense<0.000000e+00> : vector<128x8xf32>
    %186 = tpu.matmul %184, %185, %cst_110 {dimension_numbers = #tpu.dot_dimension_numbers<[1], [0], [0], [1], [0, 0, 1, 1], [], []>} : vector<128x8xbf16>, vector<8x8xbf16>, vector<128x8xf32> -> vector<128x8xf32>
    %c0_111 = arith.constant 0 : index
    %c0_112 = arith.constant 0 : index
    %187 = vector.load %arg14[%c0_111, %c0_112] : memref<1x8xf32, #tpu.memory_space<vmem>>, vector<1x8xf32>
    %188 = vector.broadcast %187 : vector<1x8xf32> to vector<128x8xf32>
    %189 = arith.addf %186, %188 : vector<128x8xf32>
    %190 = arith.negf %189 : vector<128x8xf32>
    %191 = math.exp %190 : vector<128x8xf32>
    %cst_113 = arith.constant 1.000000e+00 : f32
    %192 = vector.broadcast %cst_113 : f32 to vector<128x8xf32>
    %193 = arith.addf %192, %191 : vector<128x8xf32>
    %194 = arith.divf %192, %193 : vector<128x8xf32>
    %195 = arith.mulf %189, %194 : vector<128x8xf32>
    %196 = vector.shape_cast %195 : vector<128x8xf32> to vector<8x16x8xf32>
    %c0_114 = arith.constant 0 : index
    %c0_115 = arith.constant 0 : index
    %c0_116 = arith.constant 0 : index
    %c0_117 = arith.constant 0 : index
    %197 = vector.load %arg15[%c0_114, %c0_115, %c0_116, %c0_117] : memref<1x8x16x8xf32, #tpu.memory_space<vmem>>, vector<1x8x16x8xf32>
    %198 = vector.shape_cast %197 : vector<1x8x16x8xf32> to vector<8x16x8xf32>
    %199 = vector.shape_cast %196 : vector<8x16x8xf32> to vector<1x8x16x8xf32>
    tpu.vector_store %arg15[%c0_114, %c0_115, %c0_116, %c0_117], %199 {strides = array<i32>} : memref<1x8x16x8xf32, #tpu.memory_space<vmem>>, vector<1x8x16x8xf32>,
    return
  }
  func.func @transform_0(%arg0: i32, %arg1: i32) -> (i32, i32, i32, i32) {
    %c4_i32 = arith.constant 4 : i32
    %0 = arith.muli %arg1, %c4_i32 : i32
    %c1_i32 = arith.constant 1 : i32
    %1 = arith.subi %0, %c1_i32 : i32
    %c0_i32 = arith.constant 0 : i32
    %2 = arith.maxsi %1, %c0_i32 : i32
    %c0_i32_0 = arith.constant 0 : i32
    %c0_i32_1 = arith.constant 0 : i32
    %c0_i32_2 = arith.constant 0 : i32
    return %arg0, %2, %c0_i32_0, %c0_i32_1 : i32, i32, i32, i32
  }
  func.func @transform_1(%arg0: i32, %arg1: i32) -> (i32, i32, i32, i32) {
    %c0_i32 = arith.constant 0 : i32
    %c0_i32_0 = arith.constant 0 : i32
    %c0_i32_1 = arith.constant 0 : i32
    return %arg0, %arg1, %c0_i32, %c0_i32_0 : i32, i32, i32, i32
  }
  func.func @transform_2(%arg0: i32, %arg1: i32) -> (i32, i32, i32, i32) {
    %c1_i32 = arith.constant 1 : i32
    %0 = arith.addi %arg1, %c1_i32 : i32
    %c4_i32 = arith.constant 4 : i32
    %1 = arith.muli %0, %c4_i32 : i32
    %c7_i32 = arith.constant 7 : i32
    %2 = arith.minsi %1, %c7_i32 : i32
    %c0_i32 = arith.constant 0 : i32
    %c0_i32_0 = arith.constant 0 : i32
    %c0_i32_1 = arith.constant 0 : i32
    return %arg0, %2, %c0_i32, %c0_i32_0 : i32, i32, i32, i32
  }
  func.func @transform_3(%arg0: i32, %arg1: i32) -> (i32, i32) {
    %c0_i32 = arith.constant 0 : i32
    %c0_i32_0 = arith.constant 0 : i32
    %c0_i32_1 = arith.constant 0 : i32
    return %c0_i32, %c0_i32_0 : i32, i32
  }
  func.func @transform_4(%arg0: i32, %arg1: i32) -> (i32, i32) {
    %c0_i32 = arith.constant 0 : i32
    %c0_i32_0 = arith.constant 0 : i32
    %c0_i32_1 = arith.constant 0 : i32
    return %c0_i32, %c0_i32_0 : i32, i32
  }
  func.func @transform_5(%arg0: i32, %arg1: i32) -> (i32, i32, i32, i32) {
    %c0_i32 = arith.constant 0 : i32
    %c0_i32_0 = arith.constant 0 : i32
    %c0_i32_1 = arith.constant 0 : i32
    %c0_i32_2 = arith.constant 0 : i32
    %c0_i32_3 = arith.constant 0 : i32
    return %c0_i32, %c0_i32_0, %c0_i32_1, %c0_i32_2 : i32, i32, i32, i32
  }
  func.func @transform_6(%arg0: i32, %arg1: i32) -> (i32, i32, i32, i32) {
    %c0_i32 = arith.constant 0 : i32
    %c0_i32_0 = arith.constant 0 : i32
    %c0_i32_1 = arith.constant 0 : i32
    %c0_i32_2 = arith.constant 0 : i32
    %c0_i32_3 = arith.constant 0 : i32
    return %c0_i32, %c0_i32_0, %c0_i32_1, %c0_i32_2 : i32, i32, i32, i32
  }
  func.func @transform_7(%arg0: i32, %arg1: i32) -> (i32, i32) {
    %c0_i32 = arith.constant 0 : i32
    %c0_i32_0 = arith.constant 0 : i32
    %c0_i32_1 = arith.constant 0 : i32
    return %c0_i32, %c0_i32_0 : i32, i32
  }
  func.func @transform_8(%arg0: i32, %arg1: i32) -> (i32, i32) {
    %c0_i32 = arith.constant 0 : i32
    %c0_i32_0 = arith.constant 0 : i32
    %c0_i32_1 = arith.constant 0 : i32
    return %c0_i32, %c0_i32_0 : i32, i32
  }
  func.func @transform_9(%arg0: i32, %arg1: i32) -> (i32, i32) {
    %c0_i32 = arith.constant 0 : i32
    %c0_i32_0 = arith.constant 0 : i32
    %c0_i32_1 = arith.constant 0 : i32
    return %c0_i32, %c0_i32_0 : i32, i32
  }
  func.func @transform_10(%arg0: i32, %arg1: i32) -> (i32, i32, i32) {
    %c0_i32 = arith.constant 0 : i32
    %c0_i32_0 = arith.constant 0 : i32
    %c0_i32_1 = arith.constant 0 : i32
    %c0_i32_2 = arith.constant 0 : i32
    return %c0_i32, %c0_i32_0, %c0_i32_1 : i32, i32, i32
  }
  func.func @transform_11(%arg0: i32, %arg1: i32) -> (i32, i32, i32) {
    %c0_i32 = arith.constant 0 : i32
    %c0_i32_0 = arith.constant 0 : i32
    %c0_i32_1 = arith.constant 0 : i32
    %c0_i32_2 = arith.constant 0 : i32
    return %c0_i32, %c0_i32_0, %c0_i32_1 : i32, i32, i32
  }
  func.func @transform_12(%arg0: i32, %arg1: i32) -> (i32, i32) {
    %c0_i32 = arith.constant 0 : i32
    %c0_i32_0 = arith.constant 0 : i32
    %c0_i32_1 = arith.constant 0 : i32
    return %c0_i32, %c0_i32_0 : i32, i32
  }
  func.func @transform_13(%arg0: i32, %arg1: i32) -> (i32, i32, i32, i32) {
    %c0_i32 = arith.constant 0 : i32
    %c0_i32_0 = arith.constant 0 : i32
    %c0_i32_1 = arith.constant 0 : i32
    return %arg0, %arg1, %c0_i32, %c0_i32_0 : i32, i32, i32, i32
  }
}

</mosaic_0001>

<bundles_post_ra>
// kernel: tpu_custom_call.1
= control target key start
LH: loop header
LB: loop body
LE: loop exit
PB: predicated region body
PF: predicated region fallthrough
CT: control target
= control target key end

     0   :  { %s7138_s25 = smov 0   ;;  %s7140_s26 = smov 0   ;;  %s10334_s0 = inlined_call_operand.vmem [shape: bf16[2,16,16,8], index: 0, kind: input, shape index: {}]   ;;  %s10335_s1 = inlined_call_operand.vmem [shape: bf16[2,16,16,8], index: 1, kind: input, shape index: {}]   ;;  %s10336_s2 = inlined_call_operand.vmem [shape: bf16[2,16,16,8], index: 2, kind: input, shape index: {}]   ;;  %s10337_s3 = inlined_call_operand.vmem [shape: bf16[8,4], index: 3, kind: input, shape index: {}]   ;;  %s10338_s4 = inlined_call_operand.vmem [shape: bf16[8,4], index: 4, kind: input, shape index: {}]   ;;  %s10339_s5 = inlined_call_operand.vmem [shape: bf16[1,3,12,4], index: 5, kind: input, shape index: {}]   ;;  %s10340_s6 = inlined_call_operand.vmem [shape: bf16[1,3,12,4], index: 6, kind: input, shape index: {}]   ;;  %s10341_s7 = inlined_call_operand.vmem [shape: bf16[8,8], index: 7, kind: input, shape index: {}]   ;;  %s10342_s8 = inlined_call_operand.vmem [shape: f32[1,4], index: 8, kind: input, shape index: {}]   ;;  %s10343_s9 = inlined_call_operand.vmem [shape: f32[1,4], index: 9, kind: input, shape index: {}]   ;;  %s10344_s10 = inlined_call_operand.vmem [shape: f32[1,1,4], index: 10, kind: input, shape index: {}]   ;;  %s10345_s11 = inlined_call_operand.vmem [shape: f32[1,1,4], index: 11, kind: input, shape index: {}]   ;;  %s10346_s12 = inlined_call_operand.vmem [shape: f32[1,8], index: 12, kind: input, shape index: {}]   ;;  %s10347_s13 = inlined_call_operand.vmem [shape: f32[2,16,16,8], index: 13, kind: output, shape index: {}]  }
   0x1   :  { %10388 = sst [smem:[#allocation17_spill]] %s10335_s1  ;;  %s7142_s27 = smov 0  }
   0x2   :  { %10389 = sst [smem:[#allocation18_spill]] %s10337_s3  ;;  %s7144_s28 = smov 0  }
   0x3   :  { %s7146_s29 = smov 0  }
   0x4 LB: > { %10390 = sst [smem:[#allocation4_spill]] %s7056_s27  ;;  %s32_s30 = sadd.s32 1, %s7056_s27  ;;  %s7064_s29 = sphi %s7146_s29, %s23_s29   ;;  %s7060_s28 = sphi %s7144_s28, %s10894_s28   ;;  %s7056_s27 = sphi %s7142_s27, %s10893_s27   ;;  %s7052_s26 = sphi %s7140_s26, %s10892_s26   ;;  %s7048_s25 = sphi %s7138_s25, %s10891_s25  }
   0x5   : > { %10391 = sst [smem:[#allocation5_spill]] %s7060_s28  ;;  %s35_s14 = sadd.s32 1, %s7060_s28 }
   0x6   : > { %p33_p0 = scmp.ge.s32.totalorder %s32_s30, 2  ;;  %p6013_p1 = scmp.ge.s32.totalorder %s7064_s29, 1 }
   0x7   : > { %p477_p2 = scmp.lt.s32.totalorder %s7064_s29, 5 }
   0x8   : > { %s10896_s30 = smov (%p33_p0, %s32_s30), 0  ;;  %s10898_s14 = smov (!%p33_p0, %s35_s14), %s7060_s28 }
   0x9   : > { %10392 = sst [smem:[#allocation6_spill]] %s10896_s30  ;;  %p478_p3 = pnand %p6013_p1, %p477_p2 }
   0xa   : > { %p37_p4 = scmp.ge.s32.totalorder %s10898_s14, 2 }
   0xb   : > { %481 = sbr.rel (%p478_p3) target bundleno = 1238 (0x4d6), region = 72 }
   0xc   : > { %s10900_s14 = smov (%p37_p4, %s10898_s14), 0 }
   0xd   : > { %10393 = sst [smem:[#allocation7_spill]] %s10900_s14 }
  0x10   : > { %vm10350_vm0 = vcmask 1043456   ;;  %s10394_s3 = sld [smem:[#allocation18_spill]]  ;;  %p564_p5 = scmp.lt.s32.totalorder %s7052_s26, 1  ;;  %vm10351_vm1 = vcmask 64512   ;;  %v7243_v18 = vld [vmem:[%s10342_s8] ss:$0 sm:$0xff] }
  0x11   : > { %s7174_s17 = sshll.u32 %s7048_s25, 3  ;;  %s6014_s24 = sshll.u32 %s7048_s25, 2  ;;  %v7252_v22 = vld [vmem:[%s10342_s8] ss:$0 sm:$0xff]  ;;  %vm10353_vm4 = vcmask 31744  }
  0x12   : > { %p581_p6 = scmp.lt.s32.totalorder %s7174_s17, 15  ;;  %s10902_s26 = smov (!%p564_p5, %s7052_s26), 1  ;;  %v7266_v32 = vld [vmem:[%s10342_s8] ss:$0 sm:$0xff] }
  0x13   : > { %s6018_s23 = sshll.u32 %s10902_s26, 5  ;;  %s6015_s16 = sadd.s32 4294967295, %s6014_s24 }
  0x14   : > { %s582_s22 = scalar_select %p581_p6, %s7174_s17, 15 }
  0x15   : > { %p561_p7 = scmp.gt.s32.totalorder %s6015_s16, 0  ;;  %s6511_s19 = sadd.s32 4, %s6014_s24 }
  0x16   : > { %v1142_v0 = vld [vmem:[%s10394_s3] sm:$0xf]  ;;  %s6021_s15 = sshll.u32 %s582_s22, 1  ;;  %s10395_s1 = sld [smem:[#allocation17_spill]] }
  0x17   : > { %v1212_v1 = vsel %vm10350_vm0, %v1142_v0, 0  ;;  %v989_v2 = vld [vmem:[%s10394_s3] sm:$0xf]  ;;  %s7188_s14 = sadd.s32 %s6021_s15, %s6018_s23  ;;  %p591_p8 = scmp.lt.s32.totalorder %s6511_s19, 7 }
  0x18   : > { %v1603_v3 = vld [vmem:[%s10394_s3] sm:$0xf]  ;;  %1221 = vmatpush.bf16.msra.mxu1 %v1212_v1  ;;  %v1013_v4 = vsel %vm10350_vm0, %v989_v2, 0  ;;  %s6023_s18 = sshll.u32 %s7188_s14, 2  ;;  %s10904_s16 = smov (!%p561_p7, %s6015_s16), 0 }
  0x19   : > { %v1625_v5 = vsel %vm10350_vm0, %v1603_v3, 0  ;;  %1022 = vmatpush.bf16.msra.mxu0 %v1013_v4  ;;  %s10906_s19 = smov (!%p591_p8, %s6511_s19), 7  ;;  %s6016_s25 = sshll.u32 %s10904_s16, 1 }
  0x1a   : > { %1634 = vmatpush.bf16.msra.mxu2 %v1625_v5  ;;  %p566_p9 = scmp.lt.s32.totalorder %s6016_s25, 15  ;;  %s6025_s26 = sshll.u32 %s10906_s19, 1 }
  0x1b   : > { %p596_p10 = scmp.lt.s32.totalorder %s6025_s26, 15  ;;  %p621_p11 = scmp.gt.s32.totalorder %s7174_s17, 0 }
  0x1c   : > { %s7194_s3 = scalar_lea.vmem %s10395_s1, %s6023_s18  ;;  %s10908_s25 = smov (!%p566_p9, %s6016_s25), 15 }
  0x1d   : > { %v7197_v6 = vld [vmem:[%s7194_s3] sm:$0xff]  ;;  %s10910_s26 = smov (!%p596_p10, %s6025_s26), 15  ;;  %s6017_s22 = sshll.u32 %s10908_s25, 1  ;;  %v7210_v9 = vld [vmem:[%s7194_s3 + $0x8] sm:$0xff]  ;;  %v7217_v12 = vld [vmem:[%s7194_s3 + $0x10] sm:$0xff] }
  0x1e   : > { %6080 = vmatmul.msk.bf16.vlgmr.msra.gmra.mxu1 %vm10351_vm1, %v7197_v6  ;;  %s570_s24 = sadd.s32 %s6018_s23, %s6017_s22  ;;  %s6026_s15 = sshll.u32 %s10910_s26, 1  ;;  %v7222_v13 = vld [vmem:[%s7194_s3 + $0x18] sm:$0xff]  ;;  %v7227_v14 = vld [vmem:[%s7194_s3 + $0x20] sm:$0xff]  ;;  %v7232_v15 = vld [vmem:[%s7194_s3 + $0x28] sm:$0xff] }
  0x1f   : > { %s6019_s18 = sshll.u32 %s570_s24, 2  ;;  %s600_s20 = sadd.s32 %s6026_s15, %s6018_s23  ;;  %v6520_v16 = vld [vmem:[%s7194_s3 + $0x30] sm:$0xff]  ;;  %v6521_v17 = vld [vmem:[%s7194_s3 + $0x38] sm:$0xff] }
  0x20   : > { %s572_s30 = scalar_lea.vmem %s10334_s0, %s6019_s18  ;;  %s6028_s28 = sshll.u32 %s600_s20, 2 }
  0x21   : > { %v6512_v7 = vld [vmem:[%s572_s30] sm:$0xff]  ;;  %s602_s27 = scalar_lea.vmem %s10336_s2, %s6028_s28  ;;  %v6513_v10 = vld [vmem:[%s572_s30 + $0x8] sm:$0xff]  ;;  %s622_s23 = sadd.s32 8, %s7174_s17 }
  0x22   : > { %v6522_v8 = vld [vmem:[%s602_s27] sm:$0xff]  ;;  %6042 = vmatmul.msk.bf16.vlgmr.msra.gmra.mxu0 %vm10351_vm1, %v6512_v7  ;;  %v6523_v11 = vld [vmem:[%s602_s27 + $0x8] sm:$0xff]  ;;  %p7272_p12 = scmp.lt.s32.totalorder %s622_s23, 16  ;;  %s7066_s20 = smov 4  }
  0x23   : > { %6112 = vmatmul.msk.bf16.vlgmr.msra.gmra.mxu2 %vm10351_vm1, %v6522_v8  ;;  %s7288_s24 = scalar_select %p621_p11, 1, 0 }
  0x24   : > { %s1726_s15 = scalar_select %p7272_p12, 1, 0 }
  0x25   : > { %v1115_v56 = vstv %s7288_s24  ;;  %s7067_s21 = smov 8   ;;  %s6032_s25 = sshll.u32 %s7188_s14, 3 }
  0x26   : > { %v7306_v59 = vstv %s1726_s15  ;;  %vm7346_vm12 = vcmp.eq.s32.totalorder %v1115_v56, 1  ;;  %s10223_s24 = scalar_lea.vmem %s10347_s13, %s6032_s25 }
  0x27   : > { %10399 = vst [vmem:[#allocation8_spill] sm:$0xff] %v7306_v59 }
  0x2e   : > { %6081 = vmatmul.msk.bf16.gmra.mxu1 %vm10351_vm1, %v7210_v9 }
  0x32   : > { %6043 = vmatmul.msk.bf16.gmra.mxu0 %vm10351_vm1, %v6513_v10 }
  0x33   : > { %6113 = vmatmul.msk.bf16.gmra.mxu2 %vm10351_vm1, %v6523_v11 }
  0x3e   : > { %6082 = vmatmul.msk.bf16.gmra.mxu1 %vm10351_vm1, %v7217_v12 }
  0x4e   : > { %6083 = vmatmul.msk.bf16.gmra.mxu1 %vm10351_vm1, %v7222_v13 }
  0x5e   : > { %6084 = vmatmul.msk.bf16.gmra.mxu1 %vm10351_vm1, %v7227_v14 }
  0x6e   : > { %6085 = vmatmul.msk.bf16.gmra.mxu1 %vm10351_vm1, %v7232_v15 }
  0x7e   : > { %6086 = vmatmul.msk.bf16.gmra.mxu1 %vm10351_vm1, %v6520_v16 }
  0x8e   : > { %6087 = vmatmul.msk.bf16.gmra.mxu1 %vm10351_vm1, %v6521_v17 }
  0x9b   : > { %v1223_v19 = vpop.f32.mrf.mxu1 }
  0x9c   : > { %v7246_v20 = vadd.f32 %v7243_v18, %v1223_v19 }
  0x9e   : > { %v6088_v21 = vmul.f32 -1.442695, %v7246_v20 }
  0x9f   : > { %v1024_v26 = vpop.f32.mrf.mxu0 }
  0xa0   : > { %6634 = vpow2.f32 %v6088_v21  ;;  %v7259_v29 = vadd.f32 %v7252_v22, %v1024_v26 }
  0xa2   : > { %v6044_v30 = vmul.f32 -1.442695, %v7259_v29 }
  0xa3   : > { %v1225_v23 = vpop.f32.mrf.mxu1 }
  0xa4   : > { %v7255_v24 = vadd.f32 %v7243_v18, %v1225_v23 }
  0xa6   : > { %v6635_v25 = vpop.eup %6634  ;;  %v6089_v27 = vmul.f32 -1.442695, %v7255_v24  ;;  %v1636_v34 = vpop.f32.mrf.mxu2 }
  0xa7   : > { %v1311_v28 = vadd.f32 1.0, %v6635_v25  ;;  %v7277_v36 = vadd.f32 %v7266_v32, %v1636_v34  ;;  %v1026_v37 = vpop.f32.mrf.mxu0 }
  0xa8   : > { %6636 = vpow2.f32 %v6089_v27  ;;  %v7283_v41 = vadd.f32 %v7252_v22, %v1026_v37 }
  0xa9   : > { %6638 = vrcp.f32 %v1311_v28  ;;  %v6114_v43 = vmul.f32 -1.442695, %v7277_v36  ;;  %vm1332_vm2 = vweird.f32 %v1311_v28  ;;  %v1336_v44 = vand.u32 2147483647, %v1311_v28 }
  0xaa   : > { %6640 = vpow2.f32 %v6044_v30  ;;  %v1338_v45 = vand.u32 2147483648, %v1311_v28  ;;  %v6045_v48 = vmul.f32 -1.442695, %v7283_v41 }
  0xab   : > { %v1228_v31 = vpop.f32.mrf.mxu1  ;;  %vm1337_vm6 = vcmp.eq.f32.partialorder %v1336_v44, 8.507059e+37 }
  0xac   : > { %v7269_v33 = vadd.f32 %v7243_v18, %v1228_v31  ;;  %v1339_v55 = vor.u32 1.1754944e-38, %v1338_v45 }
  0xae   : > { %v6637_v35 = vpop.eup %6636  ;;  %v6090_v38 = vmul.f32 -1.442695, %v7269_v33  ;;  %v1638_v60 = vpop.f32.mrf.mxu2 }
  0xaf   : > { %v6639_v39 = vpop.eup %6638  ;;  %v7280_v40 = vadd.f32 1.0, %v6637_v35  ;;  %v7315_v0 = vadd.f32 %v7266_v32, %v1638_v60  ;;  %v1029_v8 = vpop.f32.mrf.mxu0 }
  0xb0   : > { %v1328_v42 = vmul.f32 %v6639_v39, %v1311_v28  ;;  %6642 = vpow2.f32 %v6090_v38  ;;  %v6641_v46 = vpop.eup %6640  ;;  %vm1333_vm3 = vweird.f32 %v6639_v39  ;;  %v7333_v26 = vadd.f32 %v7252_v22, %v1029_v8 }
  0xb1   : > { %6644 = vrcp.f32 %v7280_v40  ;;  %v7294_v49 = vadd.f32 1.0, %v6641_v46  ;;  %v1351_v50 = vand.u32 2147483647, %v7280_v40  ;;  %v1353_v53 = vand.u32 2147483648, %v7280_v40  ;;  %vm7299_vm5 = vmor %vm1332_vm2, %vm1333_vm3 }
  0xb2   : > { %v1329_v47 = vsub.f32 1.0, %v1328_v42  ;;  %6646 = vpow2.f32 %v6114_v43  ;;  %vm1347_vm7 = vweird.f32 %v7280_v40  ;;  %v6115_v25 = vmul.f32 -1.442695, %v7315_v0 }
  0xb3   : > { %v1230_v51 = vpop.f32.mrf.mxu1  ;;  %6648 = vpow2.f32 %v6045_v48  ;;  %vm7308_vm8 = vcmp.eq.f32.partialorder %v1351_v50, 8.507059e+37  ;;  %v1059_v4 = vand.u32 2147483647, %v7294_v49  ;;  %v1354_v7 = vor.u32 1.1754944e-38, %v1353_v53 }
  0xb4   : > { %v1330_v52 = vmul.f32 %v6639_v39, %v1329_v47  ;;  %6650 = vrcp.f32 %v7294_v49  ;;  %v7318_v1 = vadd.f32 %v7243_v18, %v1230_v51  ;;  %v1061_v11 = vand.u32 2147483648, %v7294_v49 }
  0xb5   : > { %vm1055_vm9 = vweird.f32 %v7294_v49  ;;  %vm7340_vm11 = vcmp.eq.f32.partialorder %v1059_v4, 8.507059e+37  ;;  %v6046_v47 = vmul.f32 -1.442695, %v7333_v26 }
  0xb6   : > { %v6643_v57 = vpop.eup %6642  ;;  %v1331_v58 = vadd.f32 %v6639_v39, %v1330_v52  ;;  %v6091_v27 = vmul.f32 -1.442695, %v7318_v1  ;;  %v1062_v35 = vor.u32 1.1754944e-38, %v1061_v11 }
  0xb7   : > { %v6645_v61 = vpop.eup %6644  ;;  %v7312_v63 = vadd.f32 1.0, %v6643_v57  ;;  %v1031_v11 = vpop.f32.mrf.mxu0 }
  0xb8   : > { %v6647_v2 = vpop.eup %6646  ;;  %v1335_v3 = vsel %vm7299_vm5, %v6639_v39, %v1331_v58  ;;  %v1343_v5 = vmul.f32 %v6645_v61, %v7280_v40  ;;  %vm1348_vm10 = vweird.f32 %v6645_v61 }
  0xb9   : > { %v1340_v10 = vsel %vm1337_vm6, %v1339_v55, %v1335_v3  ;;  %v7325_v16 = vadd.f32 1.0, %v6647_v2  ;;  %6652 = vrcp.f32 %v7312_v63  ;;  %v6649_v17 = vpop.eup %6648  ;;  %vm7352_vm13 = vmor %vm1347_vm7, %vm1348_vm10  ;;  %vm1362_vm14 = vweird.f32 %v7312_v63 }
  0xba   : > { %v1567_v19 = vmul.f32 %v1340_v10, %v7246_v20  ;;  %v1344_v21 = vsub.f32 1.0, %v1343_v5  ;;  %v6651_v23 = vpop.eup %6650  ;;  %v7344_v34 = vadd.f32 1.0, %v6649_v17  ;;  %v1366_v45 = vand.u32 2147483647, %v7312_v63  ;;  %v1641_v5 = vpop.f32.mrf.mxu2 }
  0xbb   : > { %6654 = vrcp.f32 %v7325_v16  ;;  %v7336_v28 = vpop.f32.mrf.mxu1  ;;  %v1051_v20 = vmul.f32 %v6651_v23, %v7294_v49  ;;  %v1671_v39 = vand.u32 2147483647, %v7325_v16  ;;  %v1673_v42 = vand.u32 2147483648, %v7325_v16 }
  0xbc   : > { %1583 = vst.msk [vmem:[#allocation2 + $0x20] sm:$0xff] %vm10353_vm4, %v1567_v19  ;;  %v1345_v31 = vmul.f32 %v6645_v61, %v1344_v21  ;;  %6656 = vrcp.f32 %v7344_v34  ;;  %vm1667_vm15 = vweird.f32 %v7325_v16  ;;  %v1368_v40 = vand.u32 2147483648, %v7312_v63 }
  0xbd   : > { %v1052_v43 = vsub.f32 1.0, %v1051_v20  ;;  %6658 = vpow2.f32 %v6115_v25  ;;  %vm1056_vm2 = vweird.f32 %v6651_v23  ;;  %vm7369_vm3 = vcmp.eq.f32.partialorder %v1671_v39, 8.507059e+37 }
  0xbe   : > { %v1346_v44 = vadd.f32 %v6645_v61, %v1345_v31  ;;  %v1674_v55 = vor.u32 1.1754944e-38, %v1673_v42  ;;  %6660 = vpow2.f32 %v6046_v47  ;;  %vm7375_vm5 = vcmp.eq.f32.partialorder %v1366_v45, 8.507059e+37  ;;  %vm1057_vm6 = vmor %vm1055_vm9, %vm1056_vm2 }
  0xbf   : > { %v6653_v46 = vpop.eup %6652  ;;  %v1053_v48 = vmul.f32 %v6651_v23, %v1052_v43  ;;  %6662 = vpow2.f32 %v6091_v27  ;;  %vm10352_vm10 = vcmp.eq.s32.totalorder %v7306_v59, 1  ;;  %vm1070_vm9 = vweird.f32 %v7344_v34 }
  0xc0   : > { %v1350_v50 = vsel %vm7352_vm13, %v6645_v61, %v1346_v44  ;;  %v1358_v51 = vmul.f32 %v6653_v46, %v7312_v63  ;;  %v1076_v61 = vand.u32 2147483648, %v7344_v34  ;;  %vm1363_vm7 = vweird.f32 %v6653_v46 }
  0xc1   : > { %v6655_v52 = vpop.eup %6654  ;;  %v1355_v53 = vsel %vm7308_vm8, %v1354_v7, %v1350_v50  ;;  %v1054_v56 = vadd.f32 %v6651_v23, %v1053_v48  ;;  %vm7393_vm13 = vmor %vm1362_vm14, %vm1363_vm7  ;;  %v7407_v38 = vadd.f32 %v7266_v32, %v1641_v5  ;;  %v7413_v42 = vadd.f32 %v7252_v22, %v1031_v11 }
  0xc2   : > { %v1568_v57 = vmul.f32 %v1355_v53, %v7255_v24  ;;  %v1663_v58 = vmul.f32 %v6655_v52, %v7325_v16  ;;  %v1359_v62 = vsub.f32 1.0, %v1358_v51  ;;  %v6657_v2 = vpop.eup %6656  ;;  %vm1668_vm8 = vweird.f32 %v6655_v52 }
  0xc3   : > { %v1058_v3 = vsel %vm1057_vm6, %v6651_v23, %v1054_v56  ;;  %v1369_v24 = vor.u32 1.1754944e-38, %v1368_v40  ;;  %v6659_v7 = vpop.eup %6658  ;;  %v1066_v49 = vmul.f32 %v6657_v2, %v7344_v34  ;;  %v1235_v17 = vpop.f32.mrf.mxu1  ;;  %v1074_v23 = vand.u32 2147483647, %v7344_v34 }
  0xc4   : > { %1584 = vst.msk [vmem:[#allocation2 + $0x28] sm:$0xff] %vm10353_vm4, %v1568_v57  ;;  %v1664_v4 = vsub.f32 1.0, %v1663_v58  ;;  %v1063_v8 = vsel %vm7340_vm11, %v1062_v35, %v1058_v3  ;;  %v1360_v10 = vmul.f32 %v6653_v46, %v1359_v62  ;;  %v7397_v27 = vadd.f32 1.0, %v6659_v7  ;;  %v6661_v20 = vpop.eup %6660  ;;  %vm7402_vm11 = vmor %vm1667_vm15, %vm1668_vm8 }
  0xc5   : > { %v1110_v19 = vmul.f32 %v1063_v8, %v7259_v29  ;;  %v1067_v29 = vsub.f32 1.0, %v1066_v49  ;;  %v1077_v31 = vor.u32 1.1754944e-38, %v1076_v61  ;;  %v6663_v16 = vpop.eup %6662  ;;  %vm1071_vm14 = vweird.f32 %v6657_v2 }
  0xc6   : > { %v1665_v21 = vmul.f32 %v6655_v52, %v1664_v4  ;;  %v1361_v35 = vadd.f32 %v6653_v46, %v1360_v10  ;;  %6664 = vrcp.f32 %v7397_v27  ;;  %v7420_v45 = vadd.f32 %v7243_v18, %v7336_v28  ;;  %vm1072_vm15 = vmor %vm1070_vm9, %vm1071_vm14 }
  0xc7   : > { %v1117_v63 = vsel %vm7346_vm12, %v1110_v19, 0.0  ;;  %v1068_v43 = vmul.f32 %v6657_v2, %v1067_v29  ;;  %v7426_v22 = vadd.f32 1.0, %v6661_v20  ;;  %v7428_v48 = vadd.f32 1.0, %v6663_v16  ;;  %v7484_v16 = vld [vmem:[#allocation2 + $0x20] sm:$0xff] }
  0xc8   : > { %v1666_v39 = vadd.f32 %v6655_v52, %v1665_v21  ;;  %1122 = vst.msk [vmem:[#allocation2] sm:$0xff] %vm10353_vm4, %v1117_v63  ;;  %v1365_v44 = vsel %vm7393_vm13, %v6653_v46, %v1361_v35  ;;  %v6116_v53 = vmul.f32 -1.442695, %v7407_v38  ;;  %v1688_v56 = vand.u32 2147483648, %v7397_v27 }
  0xc9   : > { %v1370_v47 = vsel %vm7375_vm5, %v1369_v24, %v1365_v44  ;;  %v1069_v51 = vadd.f32 %v6657_v2, %v1068_v43  ;;  %6666 = vrcp.f32 %v7426_v22  ;;  %vm1075_vm2 = vcmp.eq.f32.partialorder %v1074_v23, 8.507059e+37 }
  0xca   : > { %v1670_v40 = vsel %vm7402_vm11, %v6655_v52, %v1666_v39  ;;  %v1569_v46 = vmul.f32 %v1370_v47, %v7269_v33  ;;  %v1686_v52 = vand.u32 2147483647, %v7397_v27  ;;  %6668 = vrcp.f32 %v7428_v48 }
  0xcb   : > { %v1675_v50 = vsel %vm7369_vm3, %v1674_v55, %v1670_v40  ;;  %v1073_v57 = vsel %vm1072_vm15, %v6657_v2, %v1069_v51  ;;  %v6047_v33 = vmul.f32 -1.442695, %v7413_v42  ;;  %v1643_v55 = vpop.f32.mrf.mxu2  ;;  %v7446_v58 = vadd.f32 %v7243_v18, %v1235_v17  ;;  %v1238_v2 = vpop.f32.mrf.mxu1 }
  0xcc   : > { %v1722_v28 = vmul.f32 %v1675_v50, %v7277_v36  ;;  %1585 = vst.msk [vmem:[#allocation2 + $0x30] sm:$0xff] %vm10353_vm4, %v1569_v46  ;;  %v6665_v54 = vpop.eup %6664  ;;  %v1078_v34 = vsel %vm1075_vm2, %v1077_v31, %v1073_v57  ;;  %vm1682_vm3 = vweird.f32 %v7397_v27  ;;  %v6092_v62 = vmul.f32 -1.442695, %v7420_v45 }
  0xcd   : > { %v1111_v60 = vmul.f32 %v1078_v34, %v7283_v41  ;;  %v1678_v61 = vmul.f32 %v6665_v54, %v7397_v27  ;;  %vm1683_vm5 = vweird.f32 %v6665_v54  ;;  %vm7453_vm6 = vcmp.eq.f32.partialorder %v1686_v52, 8.507059e+37 }
  0xce   : > { %v1729_v36 = vsel %vm10352_vm10, %v1722_v28, 0.0  ;;  %v1689_v4 = vor.u32 1.1754944e-38, %v1688_v56  ;;  %6670 = vpow2.f32 %v6116_v53  ;;  %vm1085_vm7 = vweird.f32 %v7426_v22  ;;  %vm7476_vm8 = vmor %vm1682_vm3, %vm1683_vm5  ;;  %v7502_v56 = vld [vmem:[#allocation2 + $0x28] sm:$0xff] }
  0xcf   : > { %1733 = vst.msk [vmem:[#allocation2 + $0xa0] sm:$0xff] %vm10353_vm4, %v1729_v36  ;;  %v1118_v24 = vsel %vm7346_vm12, %v1111_v60, 0.0  ;;  %v1679_v5 = vsub.f32 1.0, %v1678_v61  ;;  %6672 = vpow2.f32 %v6047_v33  ;;  %v7461_v41 = vadd.f32 %v7266_v32, %v1643_v55  ;;  %v6667_v7 = vpop.eup %6666 }
  0xd0   : > { %1123 = vst.msk [vmem:[#allocation2 + $0x8] sm:$0xff] %vm10353_vm4, %v1118_v24  ;;  %v1089_v8 = vand.u32 2147483647, %v7426_v22  ;;  %v1091_v49 = vand.u32 2147483648, %v7426_v22  ;;  %v1383_v10 = vand.u32 2147483648, %v7428_v48  ;;  %v7468_v11 = vadd.f32 %v7243_v18, %v1238_v2  ;;  %v6669_v17 = vpop.eup %6668 }
  0xd1   : > { %v1680_v19 = vmul.f32 %v6665_v54, %v1679_v5  ;;  %v1081_v21 = vmul.f32 %v6667_v7, %v7426_v22  ;;  %v6117_v23 = vmul.f32 -1.442695, %v7461_v41  ;;  %v6093_v32 = vmul.f32 -1.442695, %v7446_v58 }
  0xd2   : > { %v1373_v20 = vmul.f32 %v6669_v17, %v7428_v48  ;;  %vm1377_vm9 = vweird.f32 %v7428_v48  ;;  %6674 = vpow2.f32 %v6092_v62  ;;  %v6094_v30 = vmul.f32 -1.442695, %v7468_v11  ;;  %v1737_v62 = vld [vmem:[%s10338_s4] sm:$0xf] }
  0xd3   : > { %v1681_v29 = vadd.f32 %v6665_v54, %v1680_v19  ;;  %v1082_v31 = vsub.f32 1.0, %v1081_v21  ;;  %v1381_v35 = vand.u32 2147483647, %v7428_v48  ;;  %6676 = vpow2.f32 %v6117_v23 }
  0xd4   : > { %v6671_v63 = vpop.eup %6670  ;;  %vm1086_vm13 = vweird.f32 %v6667_v7  ;;  %v1374_v39 = vsub.f32 1.0, %v1373_v20  ;;  %vm1378_vm11 = vweird.f32 %v6669_v17  ;;  %v1384_v27 = vor.u32 1.1754944e-38, %v1383_v10 }
  0xd5   : > { %v6673_v43 = vpop.eup %6672  ;;  %v1685_v44 = vsel %vm7476_vm8, %v6665_v54, %v1681_v29  ;;  %v1083_v40 = vmul.f32 %v6667_v7, %v1082_v31  ;;  %v7488_v47 = vadd.f32 1.0, %v6671_v63  ;;  %6678 = vpow2.f32 %v6093_v32  ;;  %vm7497_vm14 = vmor %vm1377_vm9, %vm1378_vm11  ;;  %v1240_v29 = vpop.f32.mrf.mxu1 }
  0xd6   : > { %v1690_v50 = vsel %vm7453_vm6, %v1689_v4, %v1685_v44  ;;  %v1375_v51 = vmul.f32 %v6669_v17, %v1374_v39  ;;  %v7492_v46 = vadd.f32 1.0, %v6673_v43  ;;  %6680 = vpow2.f32 %v6094_v30  ;;  %vm1087_vm15 = vmor %vm1085_vm7, %vm1086_vm13 }
  0xd7   : > { %v1723_v53 = vmul.f32 %v1690_v50, %v7315_v0  ;;  %v1084_v28 = vadd.f32 %v6667_v7, %v1083_v40  ;;  %6682 = vrcp.f32 %v7488_v47  ;;  %v2409_v57 = vpack.c.bf16 %v7484_v16, %v7484_v16 }
  0xd8   : > { %v6675_v33 = vpop.eup %6674  ;;  %v1092_v0 = vor.u32 1.1754944e-38, %v1091_v49  ;;  %v1376_v54 = vadd.f32 %v6669_v17, %v1375_v51  ;;  %vm1382_vm2 = vcmp.eq.f32.partialorder %v1381_v35, 8.507059e+37  ;;  %6684 = vrcp.f32 %v7492_v46 }
  0xd9   : > { %v6677_v48 = vpop.eup %6676  ;;  %v1730_v36 = vsel %vm10352_vm10, %v1723_v53, 0.0  ;;  %v1088_v34 = vsel %vm1087_vm15, %v6667_v7, %v1084_v28  ;;  %vm1090_vm3 = vcmp.eq.f32.partialorder %v1089_v8, 8.507059e+37  ;;  %v1701_v55 = vand.u32 2147483647, %v7488_v47 }
  0xda   : > { %1734 = vst.msk [vmem:[#allocation2 + $0xa8] sm:$0xff] %vm10353_vm4, %v1730_v36  ;;  %v1093_v60 = vsel %vm1090_vm3, %v1092_v0, %v1088_v34  ;;  %v1380_v22 = vsel %vm7497_vm14, %v6669_v17, %v1376_v54  ;;  %v1703_v61 = vand.u32 2147483648, %v7488_v47  ;;  %v2410_v2 = vpack.c.bf16 %v7502_v56, %v7502_v56 }
  0xdb   : > { %v6679_v3 = vpop.eup %6678  ;;  %v1112_v4 = vmul.f32 %v1093_v60, %v7333_v26  ;;  %v1385_v24 = vsel %vm1382_vm2, %v1384_v27, %v1380_v22  ;;  %v1104_v5 = vand.u32 2147483647, %v7492_v46  ;;  %v7524_v7 = vunpack.c.l.b16 %v2409_v57 }
  0xdc   : > { %v6681_v8 = vpop.eup %6680  ;;  %v1570_v49 = vmul.f32 %v1385_v24, %v7318_v1  ;;  %vm1697_vm5 = vweird.f32 %v7488_v47  ;;  %v7528_v10 = vadd.f32 1.0, %v6675_v33  ;;  %v7530_v17 = vadd.f32 1.0, %v6677_v48 }
  0xdd   : > { %v6683_v19 = vpop.eup %6682  ;;  %v1119_v21 = vsel %vm7346_vm12, %v1112_v4, 0.0  ;;  %vm7534_vm6 = vcmp.eq.f32.partialorder %v1701_v55, 8.507059e+37  ;;  %vm1100_vm7 = vweird.f32 %v7492_v46  ;;  %v1106_v23 = vand.u32 2147483648, %v7492_v46 }
  0xde   : > { %v1743_v1 = vsel %vm10350_vm0, %v1737_v62, 0  ;;  %v6685_v32 = vpop.eup %6684  ;;  %1124 = vst.msk [vmem:[#allocation2 + $0x10] sm:$0xff] %vm10353_vm4, %v1119_v21  ;;  %v1693_v25 = vmul.f32 %v6683_v19, %v7488_v47  ;;  %v1704_v20 = vor.u32 1.1754944e-38, %v1703_v61  ;;  %6686 = vrcp.f32 %v7528_v10 }
  0xdf   : > { %v7544_v30 = vadd.f32 1.0, %v6679_v3  ;;  %1752 = vmatpush.bf16.msrb.mxu1 %v1743_v1  ;;  %6584 = vmatpush.bf16.msra.mxu3 %v1743_v1  ;;  %1586 = vst.msk [vmem:[#allocation2 + $0x38] sm:$0xff] %vm10353_vm4, %v1570_v49  ;;  %v1096_v31 = vmul.f32 %v6685_v32, %v7492_v46  ;;  %vm7548_vm8 = vcmp.eq.f32.partialorder %v1104_v5, 8.507059e+37  ;;  %v1396_v63 = vand.u32 2147483647, %v7528_v10  ;;  %v1243_v49 = vpop.f32.mrf.mxu1 }
  0xe0   : > { %v1398_v39 = vand.u32 2147483648, %v7528_v10  ;;  %v1694_v27 = vsub.f32 1.0, %v1693_v25  ;;  %vm1698_vm9 = vweird.f32 %v6683_v19  ;;  %6688 = vrcp.f32 %v7530_v17 }
  0xe1   : > { %v7555_v43 = vadd.f32 1.0, %v6681_v8  ;;  %v1097_v44 = vsub.f32 1.0, %v1096_v31  ;;  %v1107_v40 = vor.u32 1.1754944e-38, %v1106_v23  ;;  %v1716_v50 = vand.u32 2147483647, %v7530_v17  ;;  %vm7567_vm14 = vmor %vm1697_vm5, %vm1698_vm9 }
  0xe2   : > { %v1718_v51 = vand.u32 2147483648, %v7530_v17  ;;  %6118 = vmatmul.msk.bf16.vlgmr.msrb.gmra.mxu1 %vm10351_vm1, %v7197_v6  ;;  %6121 = vmatmul.msk.bf16.vlgmr.msra.gmra.mxu3 %vm10351_vm1, %v7222_v13  ;;  %v1695_v53 = vmul.f32 %v6683_v19, %v1694_v27  ;;  %vm1101_vm13 = vweird.f32 %v6685_v32  ;;  %vm1392_vm11 = vweird.f32 %v7528_v10 }
  0xe3   : > { %6690 = vrcp.f32 %v7544_v30  ;;  %v1098_v52 = vmul.f32 %v6685_v32, %v1097_v44  ;;  %vm7571_vm15 = vcmp.eq.f32.partialorder %v1396_v63, 8.507059e+37  ;;  %v1399_v6 = vor.u32 1.1754944e-38, %v1398_v39  ;;  %vm1102_vm9 = vmor %vm1100_vm7, %vm1101_vm13  ;;  %v7636_v44 = vld [vmem:[#allocation2] sm:$0xff] }
  0xe4   : > { %vm1712_vm2 = vweird.f32 %v7530_v17  ;;  %v6687_v13 = vpop.eup %6686  ;;  %v1696_v33 = vadd.f32 %v6683_v19, %v1695_v53  ;;  %vm1407_vm3 = vweird.f32 %v7544_v30  ;;  %v1411_v0 = vand.u32 2147483647, %v7544_v30  ;;  %v7641_v53 = vld [vmem:[#allocation2 + $0x8] sm:$0xff] }
  0xe5   : > { %6692 = vrcp.f32 %v7555_v43  ;;  %v1099_v47 = vadd.f32 %v6685_v32, %v1098_v52  ;;  %v1388_v54 = vmul.f32 %v6687_v13, %v7528_v10  ;;  %vm7580_vm5 = vcmp.eq.f32.partialorder %v1716_v50, 8.507059e+37 }
  0xe6   : > { %v1719_v36 = vor.u32 1.1754944e-38, %v1718_v51  ;;  %v1413_v34 = vand.u32 2147483648, %v7544_v30  ;;  %v6689_v55 = vpop.eup %6688  ;;  %v1700_v60 = vsel %vm7567_vm14, %v6683_v19, %v1696_v33  ;;  %vm1393_vm0 = vweird.f32 %v6687_v13 }
  0xe7   : > { %vm1422_vm1 = vweird.f32 %v7555_v43  ;;  %v1426_v22 = vand.u32 2147483647, %v7555_v43  ;;  %v1705_v61 = vsel %vm7534_vm6, %v1704_v20, %v1700_v60  ;;  %v1103_v62 = vsel %vm1102_vm9, %v6685_v32, %v1099_v47  ;;  %vm7611_vm6 = vmor %vm1392_vm11, %vm1393_vm0 }
  0xe8   : > { %v1389_v3 = vsub.f32 1.0, %v1388_v54  ;;  %v1708_v4 = vmul.f32 %v6689_v55, %v7530_v17  ;;  %v1724_v5 = vmul.f32 %v1705_v61, %v7407_v38  ;;  %v1108_v8 = vsel %vm7548_vm8, %v1107_v40, %v1103_v62  ;;  %v7690_v61 = vld [vmem:[#allocation2 + $0x30] sm:$0xff]  ;;  %v1245_v62 = vpop.f32.mrf.mxu1 }
  0xe9   : > { %v6691_v24 = vpop.eup %6690  ;;  %vm1713_vm14 = vweird.f32 %v6689_v55  ;;  %vm7598_vm7 = vcmp.eq.f32.partialorder %v1411_v0, 8.507059e+37  ;;  %v1113_v19 = vmul.f32 %v1108_v8, %v7413_v42  ;;  %v2542_v42 = vunpack.c.l.b16 %v2410_v2 }
  0xea   : > { %v1390_v21 = vmul.f32 %v6687_v13, %v1389_v3  ;;  %v1709_v26 = vsub.f32 1.0, %v1708_v4  ;;  %v1403_v23 = vmul.f32 %v6691_v24, %v7544_v30  ;;  %v1731_v38 = vsel %vm10352_vm10, %v1724_v5, 0.0  ;;  %vm7628_vm0 = vmor %vm1712_vm2, %vm1713_vm14 }
  0xeb   : > { %v7604_v1 = vpop.eup %6692  ;;  %vm1408_vm8 = vweird.f32 %v6691_v24  ;;  %v7619_v25 = vadd.f32 %v7243_v18, %v1240_v29  ;;  %1735 = vst.msk [vmem:[#allocation2 + $0xb0] sm:$0xff] %vm10353_vm4, %v1731_v38  ;;  %v1120_v20 = vsel %vm7346_vm12, %v1113_v19, 0.0  ;;  %v1414_v2 = vor.u32 1.1754944e-38, %v1413_v34 }
  0xec   : > { %v1391_v31 = vadd.f32 %v6687_v13, %v1390_v21  ;;  %v1710_v35 = vmul.f32 %v6689_v55, %v1709_v26  ;;  %v1404_v10 = vsub.f32 1.0, %v1403_v23  ;;  %1125 = vst.msk [vmem:[#allocation2 + $0x18] sm:$0xff] %vm10353_vm4, %v1120_v20  ;;  %v1418_v29 = vmul.f32 %v7604_v1, %v7555_v43  ;;  %vm7648_vm13 = vmor %vm1407_vm3, %vm1408_vm8 }
  0xed   : > { %v2563_v39 = vpack.c.b16 %v2542_v42, %v7524_v7  ;;  %v6095_v27 = vmul.f32 -1.442695, %v7619_v25  ;;  %v1428_v17 = vand.u32 2147483648, %v7555_v43  ;;  %vm1423_vm11 = vweird.f32 %v7604_v1 }
  0xee   : > { %v1395_v40 = vsel %vm7611_vm6, %v6687_v13, %v1391_v31  ;;  %v1711_v50 = vadd.f32 %v6689_v55, %v1710_v35  ;;  %v1405_v51 = vmul.f32 %v6691_v24, %v1404_v10  ;;  %v1419_v52 = vsub.f32 1.0, %v1418_v29  ;;  %vm7676_vm2 = vmor %vm1422_vm1, %vm1423_vm11 }
  0xef   : > { %v1400_v28 = vsel %vm7571_vm15, %v1399_v6, %v1395_v40  ;;  %2577 = vrot.lane.b32.xlu2 %v2563_v39, %s7066_s20  ;;  %6694 = vpow2.f32 %v6095_v27  ;;  %v2405_v30 = vpack.c.bf16 %v7636_v44, %v7636_v44  ;;  %vm7662_vm15 = vcmp.eq.f32.partialorder %v1426_v22, 8.507059e+37 }
  0xf0   : > { %v1571_v13 = vmul.f32 %v1400_v28, %v7420_v45  ;;  %v1715_v57 = vsel %vm7628_vm0, %v6689_v55, %v1711_v50  ;;  %v1406_v6 = vadd.f32 %v6691_v24, %v1405_v51  ;;  %v1420_v0 = vmul.f32 %v7604_v1, %v1419_v52 }
  0xf1   : > { %v1720_v33 = vsel %vm7580_vm5, %v1719_v36, %v1715_v57  ;;  %v2406_v54 = vpack.c.bf16 %v7641_v53, %v7641_v53  ;;  %v1429_v36 = vor.u32 1.1754944e-38, %v1428_v17  ;;  %v2537_v55 = vunpack.c.l.b16 %v2405_v30 }
  0xf2   : > { %1587 = vst.msk [vmem:[#allocation2 + $0x40] sm:$0xff] %vm10353_vm4, %v1571_v13  ;;  %v1725_v45 = vmul.f32 %v1720_v33, %v7461_v41  ;;  %v1410_v34 = vsel %vm7648_vm13, %v6691_v24, %v1406_v6  ;;  %vm10444_vm3 = vcmask 64512   ;;  %v1421_v60 = vadd.f32 %v7604_v1, %v1420_v0  ;;  %v1248_v13 = vpop.f32.mrf.mxu1 }
  0xf3   : > { %6119 = vmatmul.msk.bf16.gmra.mxu1 %vm10444_vm3, %v7210_v9  ;;  %vm10445_vm5 = vmmov %vm10444_vm3  ;;  %v1415_v41 = vsel %vm7598_vm7, %v1414_v2, %v1410_v34  ;;  %v2538_v22 = vunpack.c.l.b16 %v2406_v54  ;;  %v7688_v43 = vadd.f32 %v7243_v18, %v1243_v49  ;;  %v624_v4 = vlaneseq  ;;  %v7701_v49 = vld [vmem:[#allocation2 + $0x10] sm:$0xff]  ;;  %v7764_v34 = vld [vmem:[#allocation2 + $0x18] sm:$0xff] }
  0xf4   : > { %6122 = vmatmul.msk.bf16.gmra.mxu3 %vm10445_vm5, %v7227_v14  ;;  %v1732_v3 = vsel %vm10352_vm10, %v1725_v45, 0.0  ;;  %v1572_v9 = vmul.f32 %v1415_v41, %v7446_v58  ;;  %v1425_v14 = vsel %vm7676_vm2, %v7604_v1, %v1421_v60  ;;  %v2265_v46 = vrot.slane %v7502_v56, 1  ;;  %vm10452_vm0 = vmmov %vm10444_vm3 }
  0xf5   : > { %v6695_v24 = vpop.eup %6694  ;;  %1736 = vst.msk [vmem:[#allocation2 + $0xb8] sm:$0xff] %vm10353_vm4, %v1732_v3  ;;  %v2561_v5 = vpack.c.b16 %v2538_v22, %v2537_v55  ;;  %v6096_v8 = vmul.f32 -1.442695, %v7688_v43  ;;  %v1430_v58 = vsel %vm7662_vm15, %v1429_v36, %v1425_v14  ;;  %v7708_v21 = vshrl.u32 %v624_v4, 7  ;;  %vm10453_vm13 = vmmov %vm10452_vm0 }
  0xf6   : > { %1588 = vst.msk [vmem:[#allocation2 + $0x48] sm:$0xff] %vm10353_vm4, %v1572_v9  ;;  %v7706_v19 = vadd.f32 1.0, %v6695_v24  ;;  %v2266_v26 = vrot.slane %v7690_v61, 1  ;;  %v1573_v23 = vmul.f32 %v1430_v58, %v7468_v11  ;;  %v2261_v1 = vrot.slane %v7641_v53, 1  ;;  %v7781_v58 = vld [vmem:[#allocation2 + $0x38] sm:$0xff] }
  0xf7   : > { %2573 = vrot.lane.b32.xlu1 %v2561_v5, %s7066_s20  ;;  %6696 = vpow2.f32 %v6096_v8  ;;  %v7715_v56 = vadd.f32 %v7243_v18, %v1245_v62  ;;  %v2264_v32 = vrot.slane %v7484_v16, 1  ;;  %v2262_v42 = vrot.slane %v7701_v49, 1 }
  0xf8   : > { %6698 = vrcp.f32 %v7706_v19  ;;  %v1441_v38 = vand.u32 2147483647, %v7706_v19  ;;  %1589 = vst.msk [vmem:[#allocation2 + $0x50] sm:$0xff] %vm10353_vm4, %v1573_v23  ;;  %v630_v11 = vadd.s32 40, %v7708_v21  ;;  %vm10365_vm1 = vcmp.lt.s32.totalorder %v7708_v21, 7 }
  0xf9   : > { %v6097_v20 = vmul.f32 -1.442695, %v7715_v56  ;;  %v626_v31 = vadd.s32 8, %v7708_v21  ;;  %v2260_v35 = vrot.slane %v7636_v44, 1  ;;  %v2302_v10 = vsel %vm10365_vm1, %v2265_v46, %v2266_v26  ;;  %v7783_v23 = vld [vmem:[#allocation2 + $0x40] sm:$0xff] }
  0xfa   : > { %v2303_v63 = vsel %vm10365_vm1, %v2264_v32, %v2265_v46  ;;  %v688_v2 = vand.u32 15, %v630_v11  ;;  %vm1437_vm9 = vweird.f32 %v7706_v19  ;;  %v1443_v27 = vand.u32 2147483648, %v7706_v19 }
  0xfb   : > { %v2433_v29 = vpack.c.bf16 %v2303_v63, %v2303_v63  ;;  %6700 = vpow2.f32 %v6097_v20  ;;  %v660_v39 = vand.u32 15, %v626_v31  ;;  %v2306_v40 = vsel %vm10365_vm1, %v2261_v1, %v2262_v42 }
  0xfc   : > { %v2307_v50 = vsel %vm10365_vm1, %v2260_v35, %v2261_v1  ;;  %vm7745_vm14 = vcmp.eq.f32.partialorder %v1441_v38, 8.507059e+37  ;;  %vm7749_vm7 = vcmp.ne.s32.totalorder %v688_v2, 15  ;;  %v2407_v48 = vpack.c.bf16 %v7701_v49, %v7701_v49  ;;  %v7867_v1 = vld [vmem:[%s10342_s8] ss:$0 sm:$0xff] }
  0xfd   : > { %v6697_v51 = vpop.eup %6696  ;;  %vm7753_vm6 = vcmp.ne.s32.totalorder %v660_v39, 15  ;;  %v2429_v52 = vpack.c.bf16 %v2307_v50, %v2307_v50  ;;  %v2362_v30 = vsel %vm7749_vm7, %v2302_v10, 0.0  ;;  %v2625_v33 = vunpack.c.l.b16 %v2433_v29 }
  0xfe   : > { %v6699_v57 = vpop.eup %6698  ;;  %v7757_v6 = vadd.f32 1.0, %v6697_v51  ;;  %v2358_v0 = vsel %vm7753_vm6, %v2306_v40, 0.0  ;;  %v2434_v54 = vpack.c.bf16 %v2362_v30, %v2362_v30  ;;  %v1444_v9 = vor.u32 1.1754944e-38, %v1443_v27 }
  0xff   : > { %v1433_v47 = vmul.f32 %v6699_v57, %v7706_v19  ;;  %v2430_v45 = vpack.c.bf16 %v2358_v0, %v2358_v0  ;;  %vm1438_vm8 = vweird.f32 %v6699_v57  ;;  %v2621_v62 = vunpack.c.l.b16 %v2429_v52 }
 0x100   : > { %6702 = vrcp.f32 %v7757_v6  ;;  %v1456_v36 = vand.u32 2147483647, %v7757_v6  ;;  %v1458_v55 = vand.u32 2147483648, %v7757_v6  ;;  %v2626_v22 = vunpack.c.l.b16 %v2434_v54  ;;  %vm7788_vm15 = vmor %vm1437_vm9, %vm1438_vm8 }
 0x101   : > { %v6701_v41 = vpop.eup %6700  ;;  %v1434_v60 = vsub.f32 1.0, %v1433_v47  ;;  %v2622_v3 = vunpack.c.l.b16 %v2430_v45  ;;  %v2263_v24 = vrot.slane %v7764_v34, 1  ;;  %v2408_v14 = vpack.c.bf16 %v7764_v34, %v7764_v34 }
 0x102   : > { %v7771_v4 = vadd.f32 1.0, %v6701_v41  ;;  %vm1452_vm11 = vweird.f32 %v7757_v6  ;;  %v2647_v8 = vpack.c.b16 %v2626_v22, %v2625_v33  ;;  %v2539_v38 = vunpack.c.l.b16 %v2407_v48  ;;  %v7843_v41 = vld [vmem:[#allocation2 + $0x48] sm:$0xff] }
 0x103   : > { %6120 = vmatmul.msk.bf16.gmra.mxu1 %vm10452_vm0, %v7217_v12  ;;  %v1435_v5 = vmul.f32 %v6699_v57, %v1434_v60  ;;  %v2645_v46 = vpack.c.b16 %v2622_v3, %v2621_v62  ;;  %v7792_v12 = vor.u32 1.1754944e-38, %v1458_v55  ;;  %vm7796_vm2 = vcmp.eq.f32.partialorder %v1456_v36, 8.507059e+37 }
 0x104   : > { %6123 = vmatmul.msk.bf16.gmra.mxu3 %vm10453_vm13, %v7232_v15  ;;  %6704 = vrcp.f32 %v7771_v4  ;;  %v1471_v15 = vand.u32 2147483647, %v7771_v4  ;;  %2661 = vrot.lane.b32.xlu2 %v2647_v8, %s7067_s21  ;;  %v2540_v19 = vunpack.c.l.b16 %v2408_v14  ;;  %v7803_v31 = vadd.f32 %v7243_v18, %v1248_v13  ;;  %v1250_v18 = vpop.f32.mrf.mxu1 }
 0x105   : > { %v1436_v11 = vadd.f32 %v6699_v57, %v1435_v5  ;;  %2657 = vrot.lane.b32.xlu1 %v2645_v46, %s7067_s21  ;;  %v632_v10 = vadd.s32 56, %v7708_v21  ;;  %vm1467_vm3 = vweird.f32 %v7771_v4  ;;  %v1473_v2 = vand.u32 2147483648, %v7771_v4 }
 0x106   : > { %v6703_v63 = vpop.eup %6702  ;;  %v2267_v29 = vrot.slane %v7781_v58, 1  ;;  %v2268_v39 = vrot.slane %v7783_v23, 1  ;;  %v2562_v50 = vpack.c.b16 %v2540_v19, %v2539_v38  ;;  %v6098_v52 = vmul.f32 -1.442695, %v7803_v31 }
 0x107   : > { %v1440_v27 = vsel %vm7788_vm15, %v6699_v57, %v1436_v11  ;;  %v1448_v40 = vmul.f32 %v6703_v63, %v7757_v6  ;;  %vm1453_vm5 = vweird.f32 %v6703_v63  ;;  %v702_v13 = vand.u32 15, %v632_v10 }
 0x108   : > { %v1445_v51 = vsel %vm7745_vm14, %v1444_v9, %v1440_v27  ;;  %v2300_v30 = vsel %vm10365_vm1, %v2267_v29, %v2268_v39  ;;  %vm7821_vm9 = vcmp.eq.f32.partialorder %v1471_v15, 8.507059e+37  ;;  %2575 = vrot.lane.b32.xlu0 %v2562_v50, %s7066_s20  ;;  %v2301_v17 = vsel %vm10365_vm1, %v2266_v26, %v2267_v29  ;;  %vm7848_vm0 = vmor %vm1452_vm11, %vm1453_vm5 }
 0x109   : > { %v1574_v33 = vmul.f32 %v1445_v51, %v7619_v25  ;;  %v1449_v0 = vsub.f32 1.0, %v1448_v40  ;;  %v628_v47 = vadd.s32 24, %v7708_v21  ;;  %6706 = vpow2.f32 %v6098_v52 }
 0x10a   : > { %v6705_v54 = vpop.eup %6704  ;;  %vm7831_vm14 = vcmp.ne.s32.totalorder %v702_v13, 15  ;;  %v2435_v25 = vpack.c.bf16 %v2301_v17, %v2301_v17  ;;  %v2304_v48 = vsel %vm10365_vm1, %v2263_v24, %v2264_v32  ;;  %v2305_v62 = vsel %vm10365_vm1, %v2262_v42, %v2263_v24 }
 0x10b   : > { %1590 = vst.msk [vmem:[#allocation2 + $0x58] sm:$0xff] %vm10353_vm4, %v1574_v33  ;;  %v1450_v36 = vmul.f32 %v6703_v63, %v1449_v0  ;;  %v1463_v55 = vmul.f32 %v6705_v54, %v7771_v4  ;;  %vm1468_vm8 = vweird.f32 %v6705_v54  ;;  %v2364_v26 = vsel %vm7831_vm14, %v2300_v30, 0.0  ;;  %v7003_v30 = vld [vmem:[%s7194_s3 + $0x30] sm:$0xff] }
 0x10c   : > { %v2436_v16 = vpack.c.bf16 %v2364_v26, %v2364_v26  ;;  %v2627_v32 = vunpack.c.l.b16 %v2435_v25  ;;  %v674_v22 = vand.u32 15, %v628_v47  ;;  %v2431_v14 = vpack.c.bf16 %v2305_v62, %v2305_v62  ;;  %vm7882_vm11 = vmor %vm1467_vm3, %vm1468_vm8  ;;  %v1253_v52 = vpop.f32.mrf.mxu1  ;;  %v7901_v47 = vld [vmem:[#allocation2 + $0x50] sm:$0xff] }
 0x10d   : > { %v1451_v3 = vadd.f32 %v6703_v63, %v1450_v36  ;;  %v1464_v9 = vsub.f32 1.0, %v1463_v55  ;;  %v2413_v5 = vpack.c.bf16 %v7783_v23, %v7783_v23  ;;  %v2414_v46 = vpack.c.bf16 %v7843_v41, %v7843_v41 }
 0x10e   : > { %v2628_v8 = vunpack.c.l.b16 %v2436_v16  ;;  %vm7858_vm13 = vcmp.ne.s32.totalorder %v674_v22, 15  ;;  %v7870_v42 = vadd.f32 %v7867_v1, %v1250_v18  ;;  %v1474_v38 = vor.u32 1.1754944e-38, %v1473_v2 }
 0x10f   : > { %v1455_v24 = vsel %vm7848_vm0, %v6703_v63, %v1451_v3  ;;  %v1465_v15 = vmul.f32 %v6705_v54, %v1464_v9  ;;  %v2360_v11 = vsel %vm7858_vm13, %v2304_v48, 0.0  ;;  %v6707_v19 = vpop.eup %6706  ;;  %v2623_v40 = vunpack.c.l.b16 %v2431_v14 }
 0x110   : > { %v1460_v10 = vsel %vm7796_vm2, %v7792_v12, %v1455_v24  ;;  %v2648_v27 = vpack.c.b16 %v2628_v8, %v2627_v32  ;;  %v2432_v63 = vpack.c.bf16 %v2360_v11, %v2360_v11  ;;  %v7887_v18 = vadd.f32 1.0, %v6707_v19 }
 0x111   : > { %v1575_v2 = vmul.f32 %v1460_v10, %v7688_v43  ;;  %v1466_v50 = vadd.f32 %v6705_v54, %v1465_v15  ;;  %v2546_v51 = vunpack.c.l.b16 %v2414_v46  ;;  %v2545_v20 = vunpack.c.l.b16 %v2413_v5 }
 0x112   : > { %2663 = vrot.lane.b32.xlu1 %v2648_v27, %s7067_s21  ;;  %v2624_v12 = vunpack.c.l.b16 %v2432_v63  ;;  %v6099_v4 = vmul.f32 -1.442695, %v7870_v42  ;;  %v2412_v13 = vpack.c.bf16 %v7781_v58, %v7781_v58  ;;  %vm10468_vm15 = vcmask 64512   ;;  %v7913_v55 = vld [vmem:[#allocation2 + $0x58] sm:$0xff] }
 0x113   : > { %1591 = vst.msk [vmem:[#allocation2 + $0x60] sm:$0xff] %vm10353_vm4, %v1575_v2  ;;  %v1470_v43 = vsel %vm7882_vm11, %v6705_v54, %v1466_v50  ;;  %6708 = vrcp.f32 %v7887_v18  ;;  %v2565_v17 = vpack.c.b16 %v2546_v51, %v2545_v20  ;;  %v2411_v48 = vpack.c.bf16 %v7690_v61, %v7690_v61  ;;  %vm10473_vm11 = vmmov %vm10468_vm15 }
 0x114   : > { %6124 = vmatmul.msk.bf16.gmra.mxu3 %vm10468_vm15, %v7003_v30  ;;  %v1475_v33 = vsel %vm7821_vm9, %v1474_v38, %v1470_v43  ;;  %v2646_v0 = vpack.c.b16 %v2624_v12, %v2623_v40  ;;  %6710 = vpow2.f32 %v6099_v4  ;;  %vm1482_vm2 = vweird.f32 %v7887_v18  ;;  %v1255_v46 = vpop.f32.mrf.mxu1 }
 0x115   : > { %v1576_v25 = vmul.f32 %v1475_v33, %v7715_v56  ;;  %2581 = vrot.lane.b32.xlu2 %v2565_v17, %s7066_s20  ;;  %v2544_v54 = vunpack.c.l.b16 %v2412_v13  ;;  %v7910_v57 = vadd.f32 %v7867_v1, %v1253_v52  ;;  %v634_v36 = vadd.s32 72, %v7708_v21 }
 0x116   : > { %2659 = vrot.lane.b32.xlu0 %v2646_v0, %s7067_s21  ;;  %v2269_v56 = vrot.slane %v7843_v41, 1  ;;  %v2270_v61 = vrot.slane %v7901_v47, 1  ;;  %v2415_v26 = vpack.c.bf16 %v7901_v47, %v7901_v47  ;;  %v2416_v60 = vpack.c.bf16 %v7913_v55, %v7913_v55 }
 0x117   : > { %1592 = vst.msk [vmem:[#allocation2 + $0x68] sm:$0xff] %vm10353_vm4, %v1576_v25  ;;  %v1486_v16 = vand.u32 2147483647, %v7887_v18  ;;  %v1488_v32 = vand.u32 2147483648, %v7887_v18  ;;  %v6100_v22 = vmul.f32 -1.442695, %v7910_v57  ;;  %v2543_v9 = vunpack.c.l.b16 %v2411_v48 }
 0x118   : > { %v716_v62 = vand.u32 15, %v634_v36  ;;  %v2298_v14 = vsel %vm10365_vm1, %v2269_v56, %v2270_v61  ;;  %v2547_v5 = vunpack.c.l.b16 %v2415_v26  ;;  %v2548_v8 = vunpack.c.l.b16 %v2416_v60  ;;  %v7004_v36 = vld [vmem:[%s7194_s3 + $0x38] sm:$0xff] }
 0x119   : > { %v6709_v3 = vpop.eup %6708  ;;  %6712 = vpow2.f32 %v6100_v22  ;;  %v2299_v38 = vsel %vm10365_vm1, %v2268_v39, %v2269_v56  ;;  %v2564_v19 = vpack.c.b16 %v2544_v54, %v2543_v9  ;;  %v7939_v27 = vadd.f32 %v7867_v1, %v1255_v46 }
 0x11a   : > { %v1478_v24 = vmul.f32 %v6709_v3, %v7887_v18  ;;  %vm7928_vm3 = vcmp.ne.s32.totalorder %v716_v62, 15  ;;  %v6711_v11 = vpop.eup %6710  ;;  %v2566_v29 = vpack.c.b16 %v2548_v8, %v2547_v5  ;;  %vm1483_vm5 = vweird.f32 %v6709_v3  ;;  %v7959_v48 = vld [vmem:[#allocation2 + $0x60] sm:$0xff] }
 0x11b   : > { %v2366_v10 = vsel %vm7928_vm3, %v2298_v14, 0.0  ;;  %v1322_v40 = vadd.f32 1.0, %v6711_v11  ;;  %v2437_v50 = vpack.c.bf16 %v2299_v38, %v2299_v38  ;;  %v6101_v51 = vmul.f32 -1.442695, %v7939_v27  ;;  %vm7947_vm9 = vmor %vm1482_vm2, %vm1483_vm5 }
 0x11c   : > { %v1479_v63 = vsub.f32 1.0, %v1478_v24  ;;  %v2438_v2 = vpack.c.bf16 %v2366_v10, %v2366_v10  ;;  %2583 = vrot.lane.b32.xlu1 %v2566_v29, %s7066_s20  ;;  %v2271_v39 = vrot.slane %v7913_v55, 1  ;;  %v1489_v20 = vor.u32 1.1754944e-38, %v1488_v32  ;;  %v1258_v0 = vpop.f32.mrf.mxu1 }
 0x11d   : > { %6714 = vrcp.f32 %v1322_v40  ;;  %vm1487_vm8 = vcmp.eq.f32.partialorder %v1486_v16, 8.507059e+37  ;;  %v2629_v33 = vunpack.c.l.b16 %v2437_v50  ;;  %v636_v17 = vadd.s32 88, %v7708_v21 }
 0x11e   : > { %v1480_v52 = vmul.f32 %v6709_v3, %v1479_v63  ;;  %2579 = vrot.lane.b32.xlu0 %v2564_v19, %s7066_s20  ;;  %6716 = vpow2.f32 %v6101_v51  ;;  %v2630_v30 = vunpack.c.l.b16 %v2438_v2  ;;  %vm1497_vm0 = vweird.f32 %v1322_v40  ;;  %v7968_v9 = vld [vmem:[#allocation2 + $0x68] sm:$0xff] }
 0x11f   : > { %v6713_v4 = vpop.eup %6712  ;;  %v7957_v25 = vadd.f32 %v7867_v1, %v1258_v0  ;;  %v2297_v54 = vsel %vm10365_vm1, %v2270_v61, %v2271_v39  ;;  %v1501_v26 = vand.u32 2147483647, %v1322_v40  ;;  %v1503_v60 = vand.u32 2147483648, %v1322_v40 }
 0x120   : > { %v1481_v13 = vadd.f32 %v6709_v3, %v1480_v52  ;;  %v7951_v43 = vadd.f32 1.0, %v6713_v4  ;;  %v2649_v22 = vpack.c.b16 %v2630_v30, %v2629_v33  ;;  %v2272_v8 = vrot.slane %v7959_v48, 1 }
 0x121   : > { %v6102_v62 = vmul.f32 -1.442695, %v7957_v25  ;;  %v2439_v46 = vpack.c.bf16 %v2297_v54, %v2297_v54  ;;  %v2417_v19 = vpack.c.bf16 %v7959_v48, %v7959_v48  ;;  %v2418_v10 = vpack.c.bf16 %v7968_v9, %v7968_v9 }
 0x122   : > { %v1485_v18 = vsel %vm7947_vm9, %v6709_v3, %v1481_v13  ;;  %6718 = vrcp.f32 %v7951_v43  ;;  %v730_v3 = vand.u32 15, %v636_v17  ;;  %v1516_v61 = vand.u32 2147483647, %v7951_v43 }
 0x123   : > { %v1490_v56 = vsel %vm1487_vm8, %v1489_v20, %v1485_v18  ;;  %v6715_v16 = vpop.eup %6714  ;;  %6720 = vpow2.f32 %v6102_v62  ;;  %v2296_v11 = vsel %vm10365_vm1, %v2271_v39, %v2272_v8  ;;  %vm7988_vm5 = vcmp.eq.f32.partialorder %v1501_v26, 8.507059e+37 }
 0x124   : > { %6125 = vmatmul.msk.bf16.gmra.mxu3 %vm10473_vm11, %v7004_v36  ;;  %v1577_v32 = vmul.f32 %v1490_v56, %v7803_v31  ;;  %v6717_v14 = vpop.eup %6716  ;;  %v1493_v5 = vmul.f32 %v6715_v16, %v1322_v40  ;;  %vm1498_vm15 = vweird.f32 %v6715_v16  ;;  %vm7976_vm2 = vcmp.ne.s32.totalorder %v730_v3, 15  ;;  %v1260_v20 = vpop.f32.mrf.mxu1 }
 0x125   : > { %v7974_v24 = vadd.f32 1.0, %v6717_v14  ;;  %v1504_v63 = vor.u32 1.1754944e-38, %v1503_v60  ;;  %v1518_v2 = vand.u32 2147483648, %v7951_v43  ;;  %v2368_v52 = vsel %vm7976_vm2, %v2296_v11, 0.0  ;;  %vm7998_vm9 = vmor %vm1497_vm0, %vm1498_vm15 }
 0x126   : > { %1593 = vst.msk [vmem:[#allocation2 + $0x70] sm:$0xff] %vm10353_vm4, %v1577_v32  ;;  %2665 = vrot.lane.b32.xlu0 %v2649_v22, %s7067_s21  ;;  %v1494_v38 = vsub.f32 1.0, %v1493_v5  ;;  %v2549_v39 = vunpack.c.l.b16 %v2417_v19  ;;  %v2550_v12 = vunpack.c.l.b16 %v2418_v10  ;;  %vm1512_vm8 = vweird.f32 %v7951_v43 }
 0x127   : > { %6722 = vrcp.f32 %v7974_v24  ;;  %vm8004_vm11 = vcmp.eq.f32.partialorder %v1516_v61, 8.507059e+37  ;;  %v2631_v33 = vunpack.c.l.b16 %v2439_v46  ;;  %v2440_v17 = vpack.c.bf16 %v2368_v52, %v2368_v52 }
 0x128   : > { %v6719_v50 = vpop.eup %6718  ;;  %v1495_v51 = vmul.f32 %v6715_v16, %v1494_v38  ;;  %v2567_v18 = vpack.c.b16 %v2550_v12, %v2549_v39  ;;  %v8009_v54 = vadd.f32 %v7867_v1, %v1260_v20  ;;  %v1519_v56 = vor.u32 1.1754944e-38, %v1518_v2 }
 0x129   : > { %v1508_v13 = vmul.f32 %v6719_v50, %v7951_v43  ;;  %v6721_v40 = vpop.eup %6720  ;;  %vm1513_vm0 = vweird.f32 %v6719_v50  ;;  %vm1527_vm15 = vweird.f32 %v7974_v24  ;;  %v2632_v32 = vunpack.c.l.b16 %v2440_v17 }
 0x12a   : > { %v1496_v0 = vadd.f32 %v6715_v16, %v1495_v51  ;;  %v8014_v60 = vadd.f32 1.0, %v6721_v40  ;;  %v6103_v22 = vmul.f32 -1.442695, %v8009_v54  ;;  %v638_v5 = vadd.s32 104, %v7708_v21 }
 0x12b   : > { %v1509_v36 = vsub.f32 1.0, %v1508_v13  ;;  %v2273_v11 = vrot.slane %v7968_v9, 1  ;;  %v1531_v10 = vand.u32 2147483647, %v7974_v24  ;;  %v1533_v29 = vand.u32 2147483648, %v7974_v24 }
 0x12c   : > { %v1500_v26 = vsel %vm7998_vm9, %v6715_v16, %v1496_v0  ;;  %vm8028_vm9 = vmor %vm1512_vm8, %vm1513_vm0  ;;  %6724 = vrcp.f32 %v8014_v60  ;;  %v2650_v43 = vpack.c.b16 %v2632_v32, %v2631_v33  ;;  %v10484_v12 = vmov 0 }
 0x12d   : > { %v8017_v62 = vld [vmem:[#allocation2 + $0x70] sm:$0xff]  ;;  %v6723_v3 = vpop.eup %6722  ;;  %v1505_v1 = vsel %vm7988_vm5, %v1504_v63, %v1500_v26  ;;  %v1510_v14 = vmul.f32 %v6719_v50, %v1509_v36  ;;  %6726 = vpow2.f32 %v6103_v22  ;;  %v744_v63 = vand.u32 15, %v638_v5 }
 0x12e   : > { %2585 = vrot.lane.b32.xlu0 %v2567_v18, %s7066_s20  ;;  %v2274_v61 = vrot.slane %v8017_v62, 1  ;;  %v1578_v16 = vmul.f32 %v1505_v1, %v7870_v42  ;;  %v1523_v38 = vmul.f32 %v6723_v3, %v7974_v24  ;;  %vm1528_vm5 = vweird.f32 %v6723_v3  ;;  %2667 = vrot.lane.b32.xlu2 %v2650_v43, %s7067_s21 }
 0x12f   : > { %v1511_v19 = vadd.f32 %v6719_v50, %v1510_v14  ;;  %vm8047_vm8 = vcmp.ne.s32.totalorder %v744_v63, 15  ;;  %vm8059_vm0 = vmor %vm1527_vm15, %vm1528_vm5  ;;  %v1534_v13 = vor.u32 1.1754944e-38, %v1533_v29  ;;  %v1546_v24 = vand.u32 2147483647, %v8014_v60 }
 0x130   : > { %1594 = vst.msk [vmem:[#allocation2 + $0x78] sm:$0xff] %vm10353_vm4, %v1578_v16  ;;  %v1524_v42 = vsub.f32 1.0, %v1523_v38  ;;  %v2294_v51 = vsel %vm10365_vm1, %v2273_v11, %v2274_v61  ;;  %v10485_v12 = vsel %vm8047_vm8, 4294967295, %v10484_v12  ;;  %v1548_v18 = vand.u32 2147483648, %v8014_v60 }
 0x131   : > { %v1515_v2 = vsel %vm8028_vm9, %v6719_v50, %v1511_v19  ;;  %v2295_v50 = vsel %vm10365_vm1, %v2272_v8, %v2273_v11  ;;  %v2370_v30 = vsel %vm8047_vm8, %v2294_v51, 0.0  ;;  %vm1542_vm9 = vweird.f32 %v8014_v60 }
 0x132   : > { %v1520_v52 = vsel %vm8004_vm11, %v1519_v56, %v1515_v2  ;;  %v1525_v39 = vmul.f32 %v6723_v3, %v1524_v42  ;;  %v2441_v33 = vpack.c.bf16 %v2295_v50, %v2295_v50  ;;  %v6725_v0 = vpop.eup %6724  ;;  %vm1532_vm11 = vcmp.eq.f32.partialorder %v1531_v10, 8.507059e+37 }
 0x133   : > { %v1579_v20 = vmul.f32 %v1520_v52, %v7910_v57  ;;  %v2442_v8 = vpack.c.bf16 %v2370_v30, %v2370_v30  ;;  %v1538_v57 = vmul.f32 %v6725_v0, %v8014_v60  ;;  %v2419_v40 = vpack.c.bf16 %v8017_v62, %v8017_v62  ;;  %v6727_v36 = vpop.eup %6726 }
 0x134   : > { %v1526_v17 = vadd.f32 %v6723_v3, %v1525_v39  ;;  %v2633_v26 = vunpack.c.l.b16 %v2441_v33  ;;  %v640_v22 = vadd.s32 120, %v7708_v21  ;;  %vm1543_vm15 = vweird.f32 %v6725_v0  ;;  %v8096_v39 = vld [vmem:[#allocation2 + $0xb8] sm:$0xff] }
 0x135   : > { %1595 = vst.msk [vmem:[#allocation2 + $0x80] sm:$0xff] %vm10353_vm4, %v1579_v20  ;;  %v2634_v32 = vunpack.c.l.b16 %v2442_v8  ;;  %v1539_v14 = vsub.f32 1.0, %v1538_v57  ;;  %v8075_v5 = vadd.f32 1.0, %v6727_v36  ;;  %vm8086_vm5 = vmor %vm1542_vm9, %vm1543_vm15  ;;  %v1549_v10 = vor.u32 1.1754944e-38, %v1548_v18 }
 0x136   : > { %v1530_v56 = vsel %vm8059_vm0, %v6723_v3, %v1526_v17  ;;  %v2551_v29 = vunpack.c.l.b16 %v2419_v40  ;;  %v758_v42 = vand.u32 15, %v640_v22  ;;  %v10356_v43 = vrot.slane %v7641_v53, 7 }
 0x137   : > { %v1535_v1 = vsel %vm1532_vm11, %v1534_v13, %v1530_v56  ;;  %v8077_v16 = vld [vmem:[#allocation2 + $0x78] sm:$0xff]  ;;  %v2651_v38 = vpack.c.b16 %v2634_v32, %v2633_v26  ;;  %v1540_v19 = vmul.f32 %v6725_v0, %v1539_v14  ;;  %6728 = vrcp.f32 %v8075_v5 }
 0x138   : > { %v1580_v46 = vmul.f32 %v1535_v1, %v7939_v27  ;;  %v2420_v11 = vpack.c.bf16 %v8077_v16, %v8077_v16  ;;  %vm1547_vm0 = vcmp.eq.f32.partialorder %v1546_v24, 8.507059e+37  ;;  %v2275_v2 = vrot.slane %v8077_v16, 1 }
 0x139   : > { %2669 = vrot.lane.b32.xlu1 %v2651_v38, %s7067_s21  ;;  %v1541_v63 = vadd.f32 %v6725_v0, %v1540_v19  ;;  %v2139_v51 = vrot.slane %v7636_v44, 7  ;;  %vm8100_vm11 = vcmp.ne.s32.totalorder %v758_v42, 15  ;;  %v10490_v20 = vmov 0  ;;  %v6545_v44 = vld [vmem:[%s10339_s5 + $0x8] sm:$0x30] }
 0x13a   : > { %1596 = vst.msk [vmem:[#allocation2 + $0x88] sm:$0xff] %vm10353_vm4, %v1580_v46  ;;  %v2552_v27 = vunpack.c.l.b16 %v2420_v11  ;;  %v10491_v20 = vsel %vm8100_vm11, 4294967295, %v10490_v20  ;;  %v2293_v13 = vsel %vm10365_vm1, %v2274_v61, %v2275_v2  ;;  %vm10357_vm9 = vcmp.lt.s32.totalorder %v7708_v21, 1 }
 0x13b   : > { %v1545_v50 = vsel %vm8086_vm5, %v6725_v0, %v1541_v63  ;;  %v2443_v33 = vpack.c.bf16 %v2293_v13, %v2293_v13  ;;  %v653_v17 = vand.u32 15, %v7708_v21  ;;  %v10354_v24 = vrot.slane %v8096_v39, 7 }
 0x13c   : > { %v2568_v52 = vpack.c.b16 %v2552_v27, %v2551_v29  ;;  %v8094_v60 = vld [vmem:[#allocation2 + $0x80] sm:$0xff]  ;;  %v1550_v30 = vsel %vm1547_vm0, %v1549_v10, %v1545_v50  ;;  %v8120_v61 = vsel %vm10357_vm9, %v2139_v51, %v10356_v43  ;;  %v629_v40 = vadd.s32 32, %v7708_v21 }
 0x13d   : > { %v2276_v4 = vrot.slane %v8094_v60, 1  ;;  %v6729_v0 = vpop.eup %6728  ;;  %v1581_v8 = vmul.f32 %v1550_v30, %v7957_v25  ;;  %v2421_v25 = vpack.c.bf16 %v8094_v60, %v8094_v60  ;;  %v10359_v56 = vrot.slane %v7764_v34, 7 }
 0x13e   : > { %2587 = vrot.lane.b32.xlu2 %v2568_v52, %s7066_s20  ;;  %v1553_v18 = vmul.f32 %v6729_v0, %v8075_v5  ;;  %vm1557_vm15 = vweird.f32 %v8075_v5  ;;  %v1563_v26 = vand.u32 2147483648, %v8075_v5  ;;  %vm1558_vm5 = vweird.f32 %v6729_v0 }
 0x13f   : > { %v2292_v57 = vsel %vm10365_vm1, %v2275_v2, %v2276_v4  ;;  %1597 = vst.msk [vmem:[#allocation2 + $0x90] sm:$0xff] %vm10353_vm4, %v1581_v8  ;;  %v1561_v14 = vand.u32 2147483647, %v8075_v5  ;;  %v2635_v38 = vunpack.c.l.b16 %v2443_v33  ;;  %vm8137_vm0 = vcmp.ne.s32.totalorder %v653_v17, 0  ;;  %vm8147_vm10 = vmor %vm1557_vm15, %vm1558_vm5  ;;  %v6556_v17 = vld [vmem:[%s10339_s5 + $0x10] sm:$0x30] }
 0x140   : > { %v2372_v36 = vsel %vm8100_vm11, %v2292_v57, 0.0  ;;  %v1554_v1 = vsub.f32 1.0, %v1553_v18  ;;  %v10492_v19 = vmov 0  ;;  %v2187_v3 = vsel %vm10357_vm9, %v10354_v24, %v2139_v51  ;;  %v6296_v51 = vld [vmem:[%s10339_s5 + $0x10] sm:$0xf]  ;;  %v8165_v57 = vld [vmem:[#allocation2 + $0x28] sm:$0xff] }
 0x141   : > { %v2444_v32 = vpack.c.bf16 %v2372_v36, %v2372_v36  ;;  %v8132_v22 = vld [vmem:[#allocation2 + $0x88] sm:$0xff]  ;;  %v10493_v19 = vsel %vm8137_vm0, 4294967295, %v10492_v19  ;;  %v681_v29 = vand.u32 15, %v629_v40  ;;  %v2553_v27 = vunpack.c.l.b16 %v2421_v25  ;;  %v7006_v25 = vld [vmem:[#allocation2 + $0x20] sm:$0xff] }
 0x142   : > { %v2422_v46 = vpack.c.bf16 %v8132_v22, %v8132_v22  ;;  %10494 = vst [vmem:[#allocation9_spill] sm:$0xff] %v10493_v19  ;;  %v1555_v10 = vmul.f32 %v6729_v0, %v1554_v1  ;;  %v1564_v2 = vor.u32 1.1754944e-38, %v1563_v26  ;;  %v642_v50 = vadd.s32 136, %v7708_v21 }
 0x143   : > { %v2636_v11 = vunpack.c.l.b16 %v2444_v32  ;;  %v2277_v13 = vrot.slane %v8132_v22, 1  ;;  %vm8156_vm4 = vcmp.eq.f32.partialorder %v1561_v14, 8.507059e+37  ;;  %v2236_v8 = vsel %vm8137_vm0, %v2187_v3, 0.0 }
 0x144   : > { %v2554_v42 = vunpack.c.l.b16 %v2422_v46  ;;  %v1556_v30 = vadd.f32 %v6729_v0, %v1555_v10  ;;  %v10355_v18 = vrot.slane %v8165_v57, 7  ;;  %v772_v40 = vand.u32 15, %v642_v50  ;;  %v8187_v10 = vld [vmem:[#allocation2 + $0xa8] sm:$0xff] }
 0x145   : > { %v2652_v52 = vpack.c.b16 %v2636_v11, %v2635_v38  ;;  %vm10358_vm15 = vcmask 1045504   ;;  %v6297_v36 = vor.u32 %v6556_v17, %v6296_v51  ;;  %v2143_v26 = vrot.slane %v7006_v25, 7 }
 0x146   : > { %v2569_v5 = vpack.c.b16 %v2554_v42, %v2553_v27  ;;  %v1560_v32 = vsel %vm8147_vm10, %v6729_v0, %v1556_v30  ;;  %v8172_v1 = vld [vmem:[#allocation2 + $0x90] sm:$0xff]  ;;  %v2291_v14 = vsel %vm10365_vm1, %v2276_v4, %v2277_v13  ;;  %v2382_v46 = vpack.c.bf16 %v8120_v61, %v8120_v61  ;;  %v8185_v0 = vld [vmem:[#allocation2 + $0xa0] sm:$0xff] }
 0x147   : > { %2671 = vrot.lane.b32.xlu0 %v2652_v52, %s7067_s21  ;;  %v1565_v38 = vsel %vm8156_vm4, %v1564_v2, %v1560_v32  ;;  %vm8180_vm5 = vcmp.ne.s32.totalorder %v772_v40, 15  ;;  %v10499_v11 = vmov 0  ;;  %v2278_v3 = vrot.slane %v8172_v1, 1 }
 0x148   : > { %2589 = vrot.lane.b32.xlu1 %v2569_v5, %s7066_s20  ;;  %v10500_v11 = vsel %vm8180_vm5, 4294967295, %v10499_v11  ;;  %v2381_v27 = vpack.c.bf16 %v2236_v8, %v2236_v8  ;;  %v1582_v42 = vmul.f32 %v1565_v38, %v8009_v54  ;;  %vm8190_vm10 = vcmp.ne.s32.totalorder %v681_v29, 0  ;;  %v8205_v29 = vld [vmem:[#allocation2 + $0xb0] sm:$0xff] }
 0x149   : > { %10501 = vst [vmem:[#allocation10_spill] sm:$0xff] %v10500_v11  ;;  %v10502_v4 = vmov 0  ;;  %v2183_v61 = vsel %vm10357_vm9, %v10359_v56, %v2143_v26  ;;  %v3343_v63 = vsel %vm10358_vm15, %v6297_v36, 0  ;;  %v2182_v2 = vsel %vm10357_vm9, %v2143_v26, %v10355_v18 }
 0x14a   : > { %v10503_v4 = vsel %vm8190_vm10, 4294967295, %v10502_v4  ;;  %v2290_v52 = vsel %vm10365_vm1, %v2277_v13, %v2278_v3  ;;  %v2445_v54 = vpack.c.bf16 %v2291_v14, %v2291_v14  ;;  %3352 = vmatpush.bf16.msra.mxu1 %v3343_v63  ;;  %vm10504_vm4 = vcmask 31744  }
 0x14b   : > { %1598 = vst.msk [vmem:[#allocation2 + $0x98] sm:$0xff] %vm10504_vm4, %v1582_v42  ;;  %v2374_v50 = vsel %vm8180_vm5, %v2290_v52, 0.0  ;;  %v2281_v51 = vrot.slane %v8187_v10, 1  ;;  %v2280_v30 = vrot.slane %v8185_v0, 1  ;;  %v644_v33 = vadd.s32 152, %v7708_v21 }
 0x14c   : > { %v2240_v5 = vsel %vm8190_vm10, %v2183_v61, 0.0  ;;  %v2446_v17 = vpack.c.bf16 %v2374_v50, %v2374_v50  ;;  %v8215_v13 = vunpack.c.l.b16 %v2381_v27  ;;  %v8217_v8 = vunpack.c.l.b16 %v2382_v46 }
 0x14d   : > { %v2425_v40 = vpack.c.bf16 %v8185_v0, %v8185_v0  ;;  %v2426_v36 = vpack.c.bf16 %v8187_v10, %v8187_v10  ;;  %v646_v25 = vadd.s32 168, %v7708_v21  ;;  %v2282_v26 = vrot.slane %v8205_v29, 1 }
 0x14e   : > { %v2637_v32 = vunpack.c.l.b16 %v2445_v54  ;;  %v2638_v14 = vunpack.c.l.b16 %v2446_v17  ;;  %v2423_v38 = vpack.c.bf16 %v8172_v1, %v8172_v1  ;;  %v2386_v46 = vpack.c.bf16 %v2182_v2, %v2182_v2 }
 0x14f   : > { %v786_v42 = vand.u32 15, %v644_v33  ;;  %v800_v61 = vand.u32 15, %v646_v25  ;;  %v2287_v63 = vsel %vm10365_vm1, %v2280_v30, %v2281_v51  ;;  %v2385_v52 = vpack.c.bf16 %v2240_v5, %v2240_v5 }
 0x150   : > { %v2653_v50 = vpack.c.b16 %v2638_v14, %v2637_v32  ;;  %v2286_v24 = vsel %vm10365_vm1, %v2281_v51, %v2282_v26  ;;  %v648_v54 = vadd.s32 184, %v7708_v21  ;;  %v2557_v17 = vunpack.c.l.b16 %v2425_v40 }
 0x151   : > { %vm982_vm4 = vcmp.ne.s32.totalorder %v800_v61, 15  ;;  %v2283_v18 = vrot.slane %v8096_v39, 1  ;;  %v2555_v2 = vunpack.c.l.b16 %v2423_v38  ;;  %v2558_v33 = vunpack.c.l.b16 %v2426_v36  ;;  %v2578_v38 = vpop.permute.xlu2 %2577 }
 0x152   : > { %2673 = vrot.lane.b32.xlu2 %v2653_v50, %s7067_s21  ;;  %v8236_v27 = vld [vmem:[#allocation2 + $0x98] sm:$0xff]  ;;  %v2449_v25 = vpack.c.bf16 %v2287_v63, %v2287_v63  ;;  %v814_v43 = vand.u32 15, %v648_v54  ;;  %vm8240_vm9 = vcmp.ne.s32.totalorder %v786_v42, 15  ;;  %v10505_v32 = vmov 0 }
 0x153   : > { %v2424_v5 = vpack.c.bf16 %v8236_v27, %v8236_v27  ;;  %v10506_v32 = vsel %vm8240_vm9, 4294967295, %v10505_v32  ;;  %v2279_v51 = vrot.slane %v8236_v27, 1  ;;  %v2378_v40 = vsel %vm982_vm4, %v2286_v24, 0.0 }
 0x154   : > { %10507 = vst [vmem:[#allocation11_spill] sm:$0xff] %v10506_v32  ;;  %v2481_v14 = vunpack.c.l.b16 %v2385_v52  ;;  %v2482_v61 = vunpack.c.l.b16 %v2386_v46  ;;  %vm984_vm15 = vcmp.ne.s32.totalorder %v814_v43, 15  ;;  %v2308_v36 = vsel %vm10365_vm1, %v2283_v18, %v2260_v35  ;;  %v6240_v43 = vld [vmem:[%s10339_s5 + $0x8] sm:$0xf] }
 0x155   : > { %v2556_v63 = vunpack.c.l.b16 %v2424_v5  ;;  %v2288_v50 = vsel %vm10365_vm1, %v2279_v51, %v2280_v30  ;;  %v2289_v42 = vsel %vm10365_vm1, %v2278_v3, %v2279_v51  ;;  %v2285_v54 = vsel %vm10365_vm1, %v2282_v26, %v2283_v18  ;;  %v6184_v3 = vld [vmem:[%s10339_s5] sm:$0xf]  ;;  %v6534_v18 = vld [vmem:[%s10339_s5] sm:$0x30] }
 0x156   : > { %v2376_v35 = vsel %vm8240_vm9, %v2288_v50, 0.0  ;;  %v2447_v24 = vpack.c.bf16 %v2289_v42, %v2289_v42  ;;  %v2450_v46 = vpack.c.bf16 %v2378_v40, %v2378_v40  ;;  %v2380_v30 = vsel %vm984_vm15, %v2308_v36, 0.0 }
 0x157   : > { %v2570_v26 = vpack.c.b16 %v2556_v63, %v2555_v2  ;;  %v2571_v52 = vpack.c.b16 %v2558_v33, %v2557_v17  ;;  %v2448_v5 = vpack.c.bf16 %v2376_v35, %v2376_v35  ;;  %v2641_v51 = vunpack.c.l.b16 %v2449_v25 }
 0x158   : > { %v2639_v56 = vunpack.c.l.b16 %v2447_v24  ;;  %v2451_v19 = vpack.c.bf16 %v2285_v54, %v2285_v54  ;;  %v2452_v11 = vpack.c.bf16 %v2380_v30, %v2380_v30  ;;  %v6241_v32 = vor.u32 %v6545_v44, %v6240_v43 }
 0x159   : > { %2591 = vrot.lane.b32.xlu0 %v2570_v26, %s7066_s20  ;;  %v2640_v40 = vunpack.c.l.b16 %v2448_v5  ;;  %v2427_v36 = vpack.c.bf16 %v8205_v29, %v8205_v29  ;;  %v6185_v50 = vor.u32 %v6534_v18, %v6184_v3  ;;  %v627_v42 = vadd.s32 16, %v7708_v21 }
 0x15a   : > { %2593 = vrot.lane.b32.xlu2 %v2571_v52, %s7066_s20  ;;  %v2642_v59 = vunpack.c.l.b16 %v2450_v46  ;;  %v2428_v17 = vpack.c.bf16 %v8096_v39, %v8096_v39  ;;  %vm10508_vm15 = vcmask 1045504   ;;  %v2141_v33 = vrot.slane %v7701_v49, 7 }
 0x15b   : > { %v3153_v2 = vsel %vm10508_vm15, %v6241_v32, 0  ;;  %v2503_v25 = vpack.c.b16 %v2482_v61, %v2481_v14  ;;  %v2654_v63 = vpack.c.b16 %v2640_v40, %v2639_v56  ;;  %vm10509_vm4 = vmmov %vm10508_vm15  ;;  %v667_v43 = vand.u32 15, %v627_v42 }
 0x15c   : > { %3162 = vmatpush.bf16.msrb.mxu2 %v3153_v2  ;;  %v2960_v54 = vsel %vm10509_vm4, %v6185_v50, 0  ;;  %v2643_v44 = vunpack.c.l.b16 %v2451_v19  ;;  %v2644_v35 = vunpack.c.l.b16 %v2452_v11  ;;  %v10510_v24 = vrot.slane %v7764_v34, 7 }
 0x15d   : > { %2969 = vmatpush.bf16.msrb.mxu0 %v2960_v54  ;;  %vm10511_vm1 = vcmp.lt.s32.totalorder %v7708_v21, 1  ;;  %v10512_v30 = vrot.slane %v7641_v53, 7  ;;  %vm10514_vm9 = vcmask 31744   ;;  %2675 = vrot.lane.b32.xlu1 %v2654_v63, %s7067_s21  ;;  %v2559_v14 = vunpack.c.l.b16 %v2427_v36 }
 0x15e   : > { %v2184_v46 = vsel %vm10511_vm1, %v2141_v33, %v10510_v24  ;;  %vm10513_vm15 = vmmov %vm10511_vm1  ;;  %v2689_v49 = vsel %vm10514_vm9, %v2503_v25, %v2578_v38  ;;  %v2662_v56 = vpop.permute.xlu2 %2661  ;;  %vm8289_vm4 = vcmp.ne.s32.totalorder %v667_v43, 0  ;;  %vm10517_vm0 = vcmask 64512  }
 0x15f   : > { %v2185_v32 = vsel %vm10513_vm15, %v10512_v30, %v2141_v33  ;;  %v2384_v11 = vpack.c.bf16 %v2184_v46, %v2184_v46  ;;  %v2722_v34 = vsel %vm10517_vm0, %v2689_v49, %v2662_v56  ;;  %v2655_v61 = vpack.c.b16 %v2642_v59, %v2641_v51  ;;  %v7007_v49 = vld [vmem:[#allocation2 + $0x30] sm:$0xff] }
 0x160   : > { %v2560_v3 = vunpack.c.l.b16 %v2428_v17  ;;  %v2238_v53 = vsel %vm8289_vm4, %v2185_v32, 0.0  ;;  %v2757_v18 = vunpack.c.l.b16 %v2722_v34  ;;  %v2758_v26 = vunpack.c.h.b16 %v2722_v34 }
 0x161   : > { %v2383_v52 = vpack.c.bf16 %v2238_v53, %v2238_v53  ;;  %v2480_v38 = vunpack.c.l.b16 %v2384_v11  ;;  %vm10368_vm1 = vcmask 93184   ;;  %v2656_v5 = vpack.c.b16 %v2644_v35, %v2643_v44  ;;  %2677 = vrot.lane.b32.xlu0 %v2655_v61, %s7067_s21 }
 0x162   : > { %v2781_v40 = vpack.c.b16 %v2757_v18, %v2757_v18  ;;  %v2782_v36 = vpack.c.b16 %v2758_v26, %v2758_v26  ;;  %v2572_v59 = vpack.c.b16 %v2560_v3, %v2559_v14  ;;  %vm10369_vm9 = vcmask 97280  }
 0x163   : > { %v2479_v50 = vunpack.c.l.b16 %v2383_v52  ;;  %2679 = vrot.lane.b32.xlu2 %v2656_v5, %s7067_s21  ;;  %v10518_v2 = vpack.c.b16 %v8217_v8, %v8215_v13  ;;  %vm10519_vm0 = vcmask 31744   ;;  %vm10520_vm15 = vcmask 64512  }
 0x164   : > { %2830 = vst.msk [vmem:[#allocation3 + $0x10] sm:$0xf] %vm10368_vm1, %v2781_v40  ;;  %v635_v44 = vadd.s32 80, %v7708_v21  ;;  %v631_v46 = vadd.s32 48, %v7708_v21  ;;  %v2149_v13 = vrot.slane %v7901_v47, 7  ;;  %v2145_v56 = vrot.slane %v7007_v49, 7 }
 0x165   : > { %v2502_v51 = vpack.c.b16 %v2480_v38, %v2479_v50  ;;  %2831 = vst.msk [vmem:[#allocation3 + $0x14] sm:$0xf] %vm10368_vm1, %v2782_v36  ;;  %2595 = vrot.lane.b32.xlu1 %v2572_v59, %s7066_s20  ;;  %v2150_v14 = vrot.slane %v7913_v55, 7  ;;  %v2146_v11 = vrot.slane %v7781_v58, 7  ;;  %v2148_v34 = vrot.slane %v7843_v41, 7 }
 0x166   : > { %v723_v32 = vand.u32 15, %v635_v44  ;;  %v695_v8 = vand.u32 15, %v631_v46  ;;  %v633_v61 = vadd.s32 64, %v7708_v21  ;;  %v10521_v3 = vmov 0 }
 0x167   : > { %v10525_v47 = vmov 0  ;;  %v10527_v18 = vrot.slane %v8165_v57, 7  ;;  %v2147_v40 = vrot.slane %v7783_v23, 7  ;;  %v645_v55 = vadd.s32 160, %v7708_v21 }
 0x168   : > { %v709_v52 = vand.u32 15, %v633_v61 }
 0x169   : > { %v2574_v17 = vpop.permute.xlu1 %2573 }
 0x16a   : > { %v2683_v33 = vsel %vm10519_vm0, %v10518_v2, %v2574_v17  ;;  %vm8316_vm0 = vcmp.ne.s32.totalorder %v723_v32, 0 }
 0x16b   : > { %v10522_v3 = vsel %vm8316_vm0, 4294967295, %v10521_v3 }
 0x16c   : > { %v6546_v42 = vld [vmem:[#allocation3 + $0x10] sm:$0xff]  ;;  %10523 = vst [vmem:[#allocation12_spill] sm:$0xff] %v10522_v3 }
 0x16d   : > { %6298 = vmatmul.msk.bf16.vlgmr.msra.gmra.mxu1 %vm10369_vm9, %v6546_v42 }
 0x16f   : > { %v2582_v42 = vpop.permute.xlu2 %2581 }
 0x177   : > { %v2658_v25 = vpop.permute.xlu1 %2657 }
 0x178   : > { %v2718_v63 = vsel %vm10520_vm15, %v2683_v33, %v2658_v25  ;;  %vm10524_vm15 = vcmp.lt.s32.totalorder %v7708_v21, 1  ;;  %v10533_v25 = vmov 0 }
 0x179   : > { %v2753_v54 = vunpack.c.l.b16 %v2718_v63  ;;  %v2754_v43 = vunpack.c.h.b16 %v2718_v63  ;;  %v2177_v53 = vsel %vm10524_vm15, %v2148_v34, %v2149_v13  ;;  %vm10528_vm9 = vmmov %vm10524_vm15  ;;  %vm10535_vm15 = vcmask 64512  }
 0x17a   : > { %v2576_v30 = vpop.permute.xlu0 %2575  ;;  %v2181_v58 = vsel %vm10528_vm9, %v10527_v18, %v2145_v56  ;;  %vm10529_vm5 = vmmov %vm10528_vm9  ;;  %v2246_v5 = vsel %vm8316_vm0, %v2177_v53, 0.0  ;;  %vm10531_vm9 = vcmask 97280   ;;  %vm10536_vm0 = vcmp.lt.s32.totalorder %v7708_v21, 1 }
 0x17b   : > { %v2777_v35 = vpack.c.b16 %v2753_v54, %v2753_v54  ;;  %v2778_v24 = vpack.c.b16 %v2754_v43, %v2754_v43  ;;  %v2176_v41 = vsel %vm10529_vm5, %v2149_v13, %v2150_v14  ;;  %vm10530_vm11 = vmmov %vm10529_vm5  ;;  %vm10532_vm5 = vcmask 31744  }
 0x17c   : > { %v2180_v26 = vsel %vm10530_vm11, %v2145_v56, %v2146_v11  ;;  %v2392_v36 = vpack.c.bf16 %v2176_v41, %v2176_v41  ;;  %v2686_v17 = vsel %vm10532_vm5, %v2502_v51, %v2576_v30  ;;  %v2391_v33 = vpack.c.bf16 %v2246_v5, %v2246_v5 }
 0x17d   : > { %2826 = vst.msk [vmem:[#allocation3] sm:$0xf] %vm10368_vm1, %v2777_v35  ;;  %v2388_v59 = vpack.c.bf16 %v2180_v26, %v2180_v26  ;;  %vm8343_vm11 = vcmp.ne.s32.totalorder %v709_v52, 0  ;;  %v2179_v54 = vsel %vm10536_vm0, %v2146_v11, %v2147_v40  ;;  %vm10538_vm5 = vcmask 93184  }
 0x17e   : > { %2827 = vst.msk [vmem:[#allocation3 + $0x4] sm:$0xf] %vm10368_vm1, %v2778_v24  ;;  %vm8322_vm1 = vcmp.ne.s32.totalorder %v695_v8, 0  ;;  %v10534_v25 = vsel %vm8343_vm11, 4294967295, %v10533_v25  ;;  %v2488_v35 = vunpack.c.l.b16 %v2392_v36  ;;  %v2487_v32 = vunpack.c.l.b16 %v2391_v33 }
 0x17f   : > { %v10526_v47 = vsel %vm8322_vm1, 4294967295, %v10525_v47  ;;  %v2242_v57 = vsel %vm8322_vm1, %v2181_v58, 0.0  ;;  %v2484_v46 = vunpack.c.l.b16 %v2388_v59  ;;  %v2244_v13 = vsel %vm8343_vm11, %v2179_v54, 0.0 }
 0x180   : > { %v2387_v23 = vpack.c.bf16 %v2242_v57, %v2242_v57  ;;  %v2506_v56 = vpack.c.b16 %v2488_v35, %v2487_v32  ;;  %v2389_v53 = vpack.c.bf16 %v2244_v13, %v2244_v13  ;;  %vm10542_vm1 = vcmask 64512  }
 0x181   : > { %vm10543_vm11 = vmmov %vm10542_vm1  ;;  %v2160_v57 = vrot.slane %v8187_v10, 7  ;;  %v2159_v36 = vrot.slane %v8185_v0, 7 }
 0x182   : > { %v2483_v8 = vunpack.c.l.b16 %v2387_v23 }
 0x184   : > { %v2664_v50 = vpop.permute.xlu1 %2663  ;;  %v2504_v11 = vpack.c.b16 %v2484_v46, %v2483_v8  ;;  %v2151_v8 = vrot.slane %v7959_v48, 7 }
 0x185   : > { %v6524_v38 = vld [vmem:[#allocation3] sm:$0xff] }
 0x186   : > { %6186 = vmatmul.msk.bf16.vlgmr.msrb.gmra.mxu0 %vm10531_vm9, %v6524_v38  ;;  %vm10537_vm9 = vmmov %vm10536_vm0  ;;  %vm10540_vm0 = vcmask 31744  }
 0x187   : > { %v2178_v24 = vsel %vm10537_vm9, %v2147_v40, %v2148_v34  ;;  %vm10541_vm9 = vmmov %vm10540_vm0 }
 0x188   : > { %v2660_v2 = vpop.permute.xlu0 %2659  ;;  %v2390_v49 = vpack.c.bf16 %v2178_v24, %v2178_v24  ;;  %v2668_v18 = vpop.permute.xlu2 %2667 }
 0x189   : > { %v2720_v63 = vsel %vm10535_vm15, %v2686_v17, %v2660_v2  ;;  %vm10539_vm15 = vmmov %vm10538_vm5  ;;  %v2485_v2 = vunpack.c.l.b16 %v2389_v53 }
 0x18a   : > { %v2755_v43 = vunpack.c.l.b16 %v2720_v63  ;;  %v2756_v44 = vunpack.c.h.b16 %v2720_v63  ;;  %v2486_v52 = vunpack.c.l.b16 %v2390_v49  ;;  %v2152_v49 = vrot.slane %v7968_v9, 7 }
 0x18c   : > { %v2779_v51 = vpack.c.b16 %v2755_v43, %v2755_v43  ;;  %v2780_v30 = vpack.c.b16 %v2756_v44, %v2756_v44  ;;  %v2505_v43 = vpack.c.b16 %v2486_v52, %v2485_v2  ;;  %v6526_v52 = vld [vmem:[#allocation3 + $0x10] sm:$0xff] }
 0x18e   : > { %2828 = vst.msk [vmem:[#allocation3 + $0x8] sm:$0xf] %vm10538_vm5, %v2779_v51  ;;  %v2584_v61 = vpop.permute.xlu1 %2583 }
 0x18f   : > { %2829 = vst.msk [vmem:[#allocation3 + $0xc] sm:$0xf] %vm10539_vm15, %v2780_v30  ;;  %v2698_v34 = vsel %vm10540_vm0, %v2506_v56, %v2584_v61  ;;  %vm10546_vm15 = vmmov %vm10540_vm0 }
 0x190   : > { %v2580_v58 = vpop.permute.xlu0 %2579  ;;  %v2728_v26 = vsel %vm10542_vm1, %v2698_v34, %v2668_v18  ;;  %vm10544_vm1 = vmmov %vm10538_vm5  ;;  %v2695_v24 = vsel %vm10546_vm15, %v2505_v43, %v2582_v42 }
 0x191   : > { %v2692_v41 = vsel %vm10541_vm9, %v2504_v11, %v2580_v58  ;;  %v2763_v5 = vunpack.c.l.b16 %v2728_v26  ;;  %v2764_v40 = vunpack.c.h.b16 %v2728_v26  ;;  %vm10547_vm0 = vmmov %vm10544_vm1  ;;  %vm10548_vm9 = vcmask 97280  }
 0x192   : > { %v2724_v38 = vsel %vm10543_vm11, %v2692_v41, %v2664_v50  ;;  %v637_v50 = vadd.s32 96, %v7708_v21  ;;  %vm10545_vm11 = vcmp.lt.s32.totalorder %v7708_v21, 1  ;;  %vm10549_vm10 = vmmov %vm10548_vm9  ;;  %v10553_v11 = vmov 0 }
 0x193   : > { %v2759_v59 = vunpack.c.l.b16 %v2724_v38  ;;  %v2760_v17 = vunpack.c.h.b16 %v2724_v38  ;;  %v2787_v33 = vpack.c.b16 %v2763_v5, %v2763_v5  ;;  %v2788_v54 = vpack.c.b16 %v2764_v40, %v2764_v40  ;;  %vm10551_vm8 = vmmov %vm10547_vm0 }
 0x194   : > { %v2166_v0 = vsel %vm10545_vm11, %v2159_v36, %v2160_v57  ;;  %v737_v13 = vand.u32 15, %v637_v50  ;;  %v639_v58 = vadd.s32 112, %v7708_v21  ;;  %v2158_v41 = vrot.slane %v8236_v27, 7 }
 0x195   : > { %v2783_v63 = vpack.c.b16 %v2759_v59, %v2759_v59  ;;  %v2784_v23 = vpack.c.b16 %v2760_v17, %v2760_v17  ;;  %2836 = vst.msk [vmem:[#allocation3 + $0x28] sm:$0xf] %vm10538_vm5, %v2787_v33  ;;  %vm10550_vm5 = vcmask 64512   ;;  %v793_v38 = vand.u32 15, %v645_v55 }
 0x196   : > { %v6535_v44 = vld [vmem:[#allocation3 + $0x8] sm:$0xff]  ;;  %2837 = vst.msk [vmem:[#allocation3 + $0x2c] sm:$0xf] %vm10551_vm8, %v2788_v54  ;;  %vm8378_vm11 = vcmp.ne.s32.totalorder %v737_v13, 0  ;;  %vm10557_vm8 = vmmov %vm10547_vm0  ;;  %v751_v40 = vand.u32 15, %v639_v58  ;;  %v2153_v59 = vrot.slane %v8017_v62, 7  ;;  %v2402_v33 = vpack.c.bf16 %v2166_v0, %v2166_v0 }
 0x197   : > { %v6525_v35 = vld [vmem:[#allocation3 + $0x8] sm:$0xff]  ;;  %2832 = vst.msk [vmem:[#allocation3 + $0x18] sm:$0xf] %vm10544_vm1, %v2783_v63  ;;  %6242 = vmatmul.msk.bf16.vlgmr.msrb.gmra.mxu2 %vm10548_vm9, %v6535_v44  ;;  %vm10552_vm1 = vmmov %vm10547_vm0  ;;  %v10554_v11 = vsel %vm8378_vm11, 4294967295, %v10553_v11  ;;  %v641_v17 = vadd.s32 128, %v7708_v21  ;;  %v2154_v63 = vrot.slane %v8077_v16, 7 }
 0x198   : > { %2833 = vst.msk [vmem:[#allocation3 + $0x1c] sm:$0xf] %vm10547_vm0, %v2784_v23  ;;  %v2666_v46 = vpop.permute.xlu0 %2665  ;;  %6187 = vmatmul.msk.bf16.gmra.mxu0 %vm10549_vm10, %v6525_v35  ;;  %vm10556_vm10 = vcmp.lt.s32.totalorder %v7708_v21, 1  ;;  %vm10559_vm0 = vmmov %vm10548_vm9  ;;  %v2155_v50 = vrot.slane %v8094_v60, 7  ;;  %v2156_v16 = vrot.slane %v8132_v22, 7 }
 0x199   : > { %v2726_v51 = vsel %vm10550_vm5, %v2695_v24, %v2666_v46  ;;  %10555 = vst [vmem:[#allocation13_spill] sm:$0xff] %v10554_v11  ;;  %v2175_v61 = vsel %vm10556_vm10, %v2150_v14, %v2151_v8  ;;  %vm10558_vm15 = vmmov %vm10556_vm10  ;;  %v6536_v14 = vld [vmem:[#allocation3 + $0x10] sm:$0xff]  ;;  %v765_v35 = vand.u32 15, %v641_v17  ;;  %v8413_v46 = vunpack.c.l.b16 %v2402_v33 }
 0x19a   : > { %v2761_v30 = vunpack.c.l.b16 %v2726_v51  ;;  %v2762_v32 = vunpack.c.h.b16 %v2726_v51  ;;  %v2174_v48 = vsel %vm10558_vm15, %v2151_v8, %v2152_v49  ;;  %v2248_v9 = vsel %vm8378_vm11, %v2175_v61, 0.0  ;;  %vm10560_vm9 = vmmov %vm10556_vm10 }
 0x19b   : > { %v2394_v18 = vpack.c.bf16 %v2174_v48, %v2174_v48  ;;  %v2393_v34 = vpack.c.bf16 %v2248_v9, %v2248_v9  ;;  %v2167_v5 = vsel %vm10560_vm9, %v2158_v41, %v2159_v36  ;;  %vm10561_vm5 = vmmov %vm10559_vm0  ;;  %vm957_vm10 = vcmp.ne.s32.totalorder %v793_v38, 0 }
 0x19c   : > { %v2785_v56 = vpack.c.b16 %v2761_v30, %v2761_v30  ;;  %v2786_v42 = vpack.c.b16 %v2762_v32, %v2762_v32  ;;  %v2256_v23 = vsel %vm957_vm10, %v2167_v5, 0.0  ;;  %v10563_v36 = vmov 0  ;;  %vm10566_vm15 = vmmov %vm10560_vm9 }
 0x19d   : > { %v2490_v26 = vunpack.c.l.b16 %v2394_v18  ;;  %v2489_v2 = vunpack.c.l.b16 %v2393_v34  ;;  %v2401_v44 = vpack.c.bf16 %v2256_v23, %v2256_v23  ;;  %v2173_v62 = vsel %vm10566_vm15, %v2152_v49, %v2153_v59 }
 0x19e   : > { %2834 = vst.msk [vmem:[#allocation3 + $0x20] sm:$0xf] %vm10552_vm1, %v2785_v56  ;;  %vm10562_vm1 = vmmov %vm10559_vm0 }
 0x19f   : > { %2835 = vst.msk [vmem:[#allocation3 + $0x24] sm:$0xf] %vm10557_vm8, %v2786_v42  ;;  %v6547_v53 = vld [vmem:[#allocation3 + $0x18] sm:$0xff]  ;;  %v2507_v54 = vpack.c.b16 %v2490_v26, %v2489_v2  ;;  %vm8404_vm8 = vcmp.ne.s32.totalorder %v751_v40, 0  ;;  %v8411_v24 = vunpack.c.l.b16 %v2401_v44  ;;  %v10570_v42 = vmov 0 }
 0x1a0   : > { %6299 = vmatmul.msk.bf16.gmra.mxu1 %vm10559_vm0, %v6547_v53  ;;  %v2586_v43 = vpop.permute.xlu0 %2585  ;;  %v10564_v36 = vsel %vm8404_vm8, 4294967295, %v10563_v36  ;;  %vm10567_vm0 = vmmov %vm10560_vm9  ;;  %vm10568_vm9 = vcmask 31744   ;;  %v2250_v32 = vsel %vm8404_vm8, %v2173_v62, 0.0  ;;  %v6537_v38 = vld [vmem:[#allocation3 + $0x18] sm:$0xff] }
 0x1a1   : > { %10565 = vst [vmem:[#allocation14_spill] sm:$0xff] %v10564_v36  ;;  %v2172_v0 = vsel %vm10567_vm0, %v2153_v59, %v2154_v63  ;;  %v2701_v51 = vsel %vm10568_vm9, %v2507_v54, %v2586_v43  ;;  %v2511_v60 = vpack.c.b16 %v8413_v46, %v8411_v24  ;;  %vm10573_vm10 = vmmov %vm10567_vm0  ;;  %v2395_v18 = vpack.c.bf16 %v2250_v32, %v2250_v32  ;;  %v6527_v5 = vld [vmem:[#allocation3 + $0x18] sm:$0xff]  ;;  %v6549_v32 = vld [vmem:[#allocation3 + $0x28] sm:$0xff] }
 0x1a2   : > { %v2171_v22 = vsel %vm10573_vm10, %v2154_v63, %v2155_v50  ;;  %v2396_v61 = vpack.c.bf16 %v2172_v0, %v2172_v0  ;;  %vm10574_vm15 = vmmov %vm10567_vm0  ;;  %vm10575_vm0 = vcmask 97280   ;;  %vm10576_vm9 = vcmask 93184  }
 0x1a3   : > { %v2170_v53 = vsel %vm10574_vm15, %v2155_v50, %v2156_v16  ;;  %vm10578_vm10 = vmmov %vm10575_vm0  ;;  %v643_v43 = vadd.s32 144, %v7708_v21 }
 0x1a4   : > { %v2398_v34 = vpack.c.bf16 %v2170_v53, %v2170_v53  ;;  %v2492_v55 = vunpack.c.l.b16 %v2396_v61  ;;  %vm10579_vm15 = vmmov %vm10575_vm0  ;;  %v647_v53 = vadd.s32 176, %v7708_v21 }
 0x1a6   : > { %v6548_v8 = vld [vmem:[#allocation3 + $0x20] sm:$0xff]  ;;  %v2494_v40 = vunpack.c.l.b16 %v2398_v34 }
 0x1a7   : > { %6243 = vmatmul.msk.bf16.gmra.mxu2 %vm10561_vm5, %v6536_v14  ;;  %vm10569_vm5 = vcmask 64512   ;;  %v2588_v14 = vpop.permute.xlu2 %2587 }
 0x1a8   : > { %6188 = vmatmul.msk.bf16.gmra.mxu0 %vm10562_vm1, %v6526_v52  ;;  %vm8424_vm1 = vcmp.ne.s32.totalorder %v765_v35, 0  ;;  %v2491_v52 = vunpack.c.l.b16 %v2395_v18  ;;  %v6538_v18 = vld [vmem:[#allocation3 + $0x20] sm:$0xff] }
 0x1a9   : > { %v10571_v42 = vsel %vm8424_vm1, 4294967295, %v10570_v42  ;;  %v2252_v58 = vsel %vm8424_vm1, %v2171_v22, 0.0 }
 0x1aa   : > { %10572 = vst [vmem:[#allocation15_spill] sm:$0xff] %v10571_v42  ;;  %v2397_v26 = vpack.c.bf16 %v2252_v58, %v2252_v58  ;;  %v2508_v59 = vpack.c.b16 %v2492_v55, %v2491_v52  ;;  %v6528_v58 = vld [vmem:[#allocation3 + $0x20] sm:$0xff]  ;;  %v807_v55 = vand.u32 15, %v647_v53 }
 0x1ab   : > { %v2670_v30 = vpop.permute.xlu1 %2669 }
 0x1ac   : > { %v2730_v13 = vsel %vm10569_vm5, %v2701_v51, %v2670_v30  ;;  %vm10577_vm5 = vmmov %vm10576_vm9  ;;  %v2493_v17 = vunpack.c.l.b16 %v2397_v26 }
 0x1ad   : > { %v2765_v49 = vunpack.c.l.b16 %v2730_v13  ;;  %v2766_v56 = vunpack.c.h.b16 %v2730_v13 }
 0x1ae   : > { %v2509_v23 = vpack.c.b16 %v2494_v40, %v2493_v17 }
 0x1af   : > { %v2789_v48 = vpack.c.b16 %v2765_v49, %v2765_v49  ;;  %v2790_v9 = vpack.c.b16 %v2766_v56, %v2766_v56  ;;  %v2674_v35 = vpop.permute.xlu2 %2673  ;;  %v779_v49 = vand.u32 15, %v643_v43  ;;  %v2157_v56 = vrot.slane %v8172_v1, 7 }
 0x1b0   : > { %6300 = vmatmul.msk.bf16.gmra.mxu1 %vm10575_vm0, %v6548_v8  ;;  %vm10580_vm0 = vcmask 31744  }
 0x1b1   : > { %2838 = vst.msk [vmem:[#allocation3 + $0x30] sm:$0xf] %vm10576_vm9, %v2789_v48  ;;  %v2704_v2 = vsel %vm10580_vm0, %v2508_v59, %v2588_v14  ;;  %vm10581_vm9 = vcmask 64512   ;;  %vm8450_vm1 = vcmp.ne.s32.totalorder %v779_v49, 0  ;;  %v10588_v48 = vmov 0 }
 0x1b2   : > { %2839 = vst.msk [vmem:[#allocation3 + $0x34] sm:$0xf] %vm10577_vm5, %v2790_v9  ;;  %vm10582_vm5 = vmmov %vm10580_vm0  ;;  %vm10585_vm0 = vcmask 97280   ;;  %v10589_v48 = vsel %vm8450_vm1, 4294967295, %v10588_v48  ;;  %v2161_v14 = vrot.slane %v8205_v29, 7 }
 0x1b3   : > { %10590 = vst [vmem:[#allocation16_spill] sm:$0xff] %v10589_v48 }
 0x1b7   : > { %6244 = vmatmul.msk.bf16.gmra.mxu2 %vm10578_vm10, %v6537_v38  ;;  %vm10583_vm10 = vmmov %vm10581_vm9 }
 0x1b8   : > { %6189 = vmatmul.msk.bf16.gmra.mxu0 %vm10579_vm15, %v6527_v5  ;;  %vm10584_vm15 = vcmask 93184   ;;  %v10596_v5 = vrot.slane %v8096_v39, 7 }
 0x1b9   : > { %v2672_v33 = vpop.permute.xlu0 %2671  ;;  %v6550_v59 = vld [vmem:[#allocation3 + $0x30] sm:$0xff] }
 0x1ba   : > { %v2732_v63 = vsel %vm10581_vm9, %v2704_v2, %v2672_v33  ;;  %v2590_v54 = vpop.permute.xlu1 %2589  ;;  %vm10586_vm9 = vmmov %vm10584_vm15  ;;  %v2594_v2 = vpop.permute.xlu2 %2593 }
 0x1bb   : > { %v2767_v44 = vunpack.c.l.b16 %v2732_v63  ;;  %v2768_v62 = vunpack.c.h.b16 %v2732_v63  ;;  %v2707_v50 = vsel %vm10582_vm5, %v2509_v23, %v2590_v54  ;;  %vm10587_vm5 = vmmov %vm10586_vm9  ;;  %v8474_v23 = vpop.f32.mrf.mxu1 }
 0x1bc   : > { %v2734_v30 = vsel %vm10583_vm10, %v2707_v50, %v2674_v35  ;;  %vm10591_vm10 = vcmp.lt.s32.totalorder %v7708_v21, 1  ;;  %vm10592_vm8 = vmmov %vm10587_vm5 }
 0x1bd   : > { %v2791_v0 = vpack.c.b16 %v2767_v44, %v2767_v44  ;;  %v2792_v51 = vpack.c.b16 %v2768_v62, %v2768_v62  ;;  %v2769_v13 = vunpack.c.l.b16 %v2734_v30  ;;  %v2770_v8 = vunpack.c.h.b16 %v2734_v30  ;;  %v6539_v30 = vld [vmem:[#allocation3 + $0x28] sm:$0xff] }
 0x1be   : > { %v2169_v9 = vsel %vm10591_vm10, %v2156_v16, %v2157_v56 }
 0x1bf   : > { %2840 = vst.msk [vmem:[#allocation3 + $0x38] sm:$0xf] %vm10584_vm15, %v2791_v0  ;;  %v2793_v22 = vpack.c.b16 %v2769_v13, %v2769_v13  ;;  %v2794_v61 = vpack.c.b16 %v2770_v8, %v2770_v8  ;;  %vm10593_vm15 = vmmov %vm10591_vm10  ;;  %v2254_v34 = vsel %vm8450_vm1, %v2169_v9, 0.0 }
 0x1c0   : > { %6301 = vmatmul.msk.bf16.gmra.mxu1 %vm10585_vm0, %v6549_v32  ;;  %2841 = vst.msk [vmem:[#allocation3 + $0x3c] sm:$0xf] %vm10586_vm9, %v2792_v51  ;;  %v2168_v1 = vsel %vm10593_vm15, %v2157_v56, %v2158_v41  ;;  %vm10594_vm9 = vmmov %vm10585_vm0  ;;  %v2399_v16 = vpack.c.bf16 %v2254_v34, %v2254_v34  ;;  %v6529_v32 = vld [vmem:[#allocation3 + $0x28] sm:$0xff] }
 0x1c1   : > { %2842 = vst.msk [vmem:[#allocation3 + $0x40] sm:$0xf] %vm10587_vm5, %v2793_v22  ;;  %v2400_v26 = vpack.c.bf16 %v2168_v1, %v2168_v1  ;;  %vm10595_vm5 = vmmov %vm10591_vm10 }
 0x1c2   : > { %2843 = vst.msk [vmem:[#allocation3 + $0x44] sm:$0xf] %vm10592_vm8, %v2794_v61  ;;  %vm959_vm8 = vcmp.ne.s32.totalorder %v807_v55, 0  ;;  %v2165_v27 = vsel %vm10595_vm5, %v2160_v57, %v2161_v14  ;;  %v2495_v52 = vunpack.c.l.b16 %v2399_v16  ;;  %vm10597_vm10 = vmmov %vm10595_vm5  ;;  %v2680_v22 = vpop.permute.xlu2 %2679  ;;  %v6530_v16 = vld [vmem:[#allocation3 + $0x30] sm:$0xff] }
 0x1c3   : > { %v2496_v41 = vunpack.c.l.b16 %v2400_v26  ;;  %v2164_v29 = vsel %vm10597_vm10, %v2161_v14, %v10596_v5  ;;  %v2258_v40 = vsel %vm959_vm8, %v2165_v27, 0.0  ;;  %vm10598_vm15 = vmmov %vm10585_vm0  ;;  %vm10603_vm10 = vcmask 93184   ;;  %v8489_v53 = vpop.f32.mrf.mxu1  ;;  %v6540_v26 = vld [vmem:[#allocation3 + $0x30] sm:$0xff] }
 0x1c4   : > { %v2403_v33 = vpack.c.bf16 %v2258_v40, %v2258_v40  ;;  %v2404_v63 = vpack.c.bf16 %v2164_v29, %v2164_v29  ;;  %v8505_v29 = vld [vmem:[%s10343_s9] ss:$0 sm:$0xff] }
 0x1c5   : > { %v2510_v17 = vpack.c.b16 %v2496_v41, %v2495_v52 }
 0x1c6   : > { %v2499_v44 = vunpack.c.l.b16 %v2403_v33  ;;  %v2500_v62 = vunpack.c.l.b16 %v2404_v63 }
 0x1c7   : > { %6245 = vmatmul.msk.bf16.gmra.mxu2 %vm10585_vm0, %v6538_v18  ;;  %vm10599_vm0 = vcmask 31744   ;;  %v6551_v55 = vld [vmem:[#allocation3 + $0x38] sm:$0xff] }
 0x1c8   : > { %6190 = vmatmul.msk.bf16.gmra.mxu0 %vm10594_vm9, %v6528_v58  ;;  %vm10600_vm9 = vcmask 64512   ;;  %vm10601_vm8 = vmmov %vm10599_vm0  ;;  %v2512_v24 = vpack.c.b16 %v2500_v62, %v2499_v44  ;;  %v6541_v52 = vld [vmem:[#allocation3 + $0x38] sm:$0xff] }
 0x1c9   : > { %v2713_v35 = vsel %vm10601_vm8, %v2511_v60, %v2594_v2  ;;  %vm10602_vm5 = vmmov %vm10600_vm9  ;;  %v6552_v41 = vld [vmem:[#allocation3 + $0x40] sm:$0xff] }
 0x1cb   : > { %v2592_v38 = vpop.permute.xlu0 %2591  ;;  %v1759_v14 = vpop.f32.mrf.mxu1 }
 0x1cc   : > { %v2710_v10 = vsel %vm10599_vm0, %v2510_v17, %v2592_v38  ;;  %vm10604_vm0 = vmmov %vm10598_vm15  ;;  %v6531_v38 = vld [vmem:[#allocation3 + $0x38] sm:$0xff] }
 0x1cf   : > { %v2676_v57 = vpop.permute.xlu1 %2675 }
 0x1d0   : > { %6302 = vmatmul.msk.bf16.gmra.mxu1 %vm10598_vm15, %v6550_v59  ;;  %v2736_v54 = vsel %vm10600_vm9, %v2710_v10, %v2676_v57  ;;  %vm10605_vm9 = vmmov %vm10603_vm10  ;;  %v8508_v59 = vadd.f32 %v8505_v29, %v1759_v14  ;;  %v6542_v10 = vld [vmem:[#allocation3 + $0x40] sm:$0xff] }
 0x1d1   : > { %v2771_v43 = vunpack.c.l.b16 %v2736_v54  ;;  %v2772_v39 = vunpack.c.h.b16 %v2736_v54  ;;  %v6532_v57 = vld [vmem:[#allocation3 + $0x40] sm:$0xff] }
 0x1d2   : > { %v6128_v2 = vmul.f32 -1.442695, %v8508_v59 }
 0x1d3   : > { %v2795_v50 = vpack.c.b16 %v2771_v43, %v2771_v43  ;;  %v2796_v0 = vpack.c.b16 %v2772_v39, %v2772_v39  ;;  %v2678_v51 = vpop.permute.xlu0 %2677  ;;  %v1761_v27 = vpop.f32.mrf.mxu1 }
 0x1d4   : > { %v2738_v13 = vsel %vm10602_vm5, %v2713_v35, %v2678_v51  ;;  %vm10606_vm5 = vmmov %vm10605_vm9  ;;  %v8513_v63 = vadd.f32 %v8505_v29, %v1761_v27  ;;  %6730 = vpow2.f32 %v6128_v2  ;;  %v8561_v2 = vadd.f32 %v8505_v29, %v8474_v23 }
 0x1d5   : > { %2844 = vst.msk [vmem:[#allocation3 + $0x48] sm:$0xf] %vm10603_vm10, %v2795_v50  ;;  %v2773_v8 = vunpack.c.l.b16 %v2738_v13  ;;  %v2774_v49 = vunpack.c.h.b16 %v2738_v13  ;;  %vm10607_vm10 = vcmask 64512   ;;  %vm10608_vm1 = vmmov %vm10606_vm5 }
 0x1d6   : > { %2845 = vst.msk [vmem:[#allocation3 + $0x4c] sm:$0xf] %vm10605_vm9, %v2796_v0  ;;  %vm10610_vm9 = vmmov %vm10608_vm1  ;;  %v6129_v54 = vmul.f32 -1.442695, %v8513_v63 }
 0x1d7   : > { %6246 = vmatmul.msk.bf16.gmra.mxu2 %vm10598_vm15, %v6539_v30  ;;  %v2797_v46 = vpack.c.b16 %v2773_v8, %v2773_v8  ;;  %v2798_v60 = vpack.c.b16 %v2774_v49, %v2774_v49  ;;  %v2596_v56 = vpop.permute.xlu1 %2595  ;;  %vm10609_vm15 = vmmov %vm10608_vm1  ;;  %v8527_v30 = vld [vmem:[%s10344_s10] ss:$0 sm:$0xff] }
 0x1d8   : > { %6191 = vmatmul.msk.bf16.gmra.mxu0 %vm10604_vm0, %v6529_v32  ;;  %v2716_v61 = vsel %vm10601_vm8, %v2512_v24, %v2596_v56  ;;  %vm10611_vm8 = vmmov %vm10604_vm0  ;;  %6732 = vpow2.f32 %v6129_v54 }
 0x1d9   : > { %2846 = vst.msk [vmem:[#allocation3 + $0x50] sm:$0xf] %vm10606_vm5, %v2797_v46  ;;  %v2740_v9 = vsel %vm10607_vm10, %v2716_v61, %v2680_v22  ;;  %vm10612_vm5 = vmmov %vm10604_vm0 }
 0x1da   : > { %2847 = vst.msk [vmem:[#allocation3 + $0x54] sm:$0xf] %vm10608_vm1, %v2798_v60  ;;  %v2775_v1 = vunpack.c.l.b16 %v2740_v9  ;;  %v2776_v18 = vunpack.c.h.b16 %v2740_v9  ;;  %vm10613_vm1 = vmmov %vm10604_vm0  ;;  %v6731_v44 = vpop.eup %6730 }
 0x1db   : > { %vm10614_vm10 = vmmov %vm10604_vm0  ;;  %v1764_v5 = vpop.f32.mrf.mxu1  ;;  %v8518_v35 = vadd.f32 1.0, %v6731_v44 }
 0x1dc   : > { %v2799_v58 = vpack.c.b16 %v2775_v1, %v2775_v1  ;;  %v2800_v34 = vpack.c.b16 %v2776_v18, %v2776_v18  ;;  %v8530_v8 = vadd.f32 %v8505_v29, %v1764_v5 }
 0x1dd   : > { %v6553_v40 = vld [vmem:[#allocation3 + $0x48] sm:$0xff]  ;;  %6734 = vrcp.f32 %v8518_v35 }
 0x1de   : > { %2848 = vst.msk [vmem:[#allocation3 + $0x58] sm:$0xf] %vm10609_vm15, %v2799_v58  ;;  %vm10615_vm15 = vmmov %vm10604_vm0  ;;  %v6733_v50 = vpop.eup %6732  ;;  %v6543_v32 = vld [vmem:[#allocation3 + $0x48] sm:$0xff]  ;;  %v6130_v60 = vmul.f32 -1.442695, %v8530_v8 }
 0x1df   : > { %2849 = vst.msk [vmem:[#allocation3 + $0x5c] sm:$0xf] %vm10610_vm9, %v2800_v34  ;;  %vm10616_vm9 = vmmov %vm10604_vm0  ;;  %v8522_v51 = vadd.f32 1.0, %v6733_v50  ;;  %v6533_v1 = vld [vmem:[#allocation3 + $0x48] sm:$0xff] }
 0x1e0   : > { %6303 = vmatmul.msk.bf16.gmra.mxu1 %vm10604_vm0, %v6551_v55 }
 0x1e1   : > { %v6554_v62 = vld [vmem:[#allocation3 + $0x50] sm:$0xff]  ;;  %6736 = vrcp.f32 %v8522_v51 }
 0x1e2   : > { %6738 = vpow2.f32 %v6130_v60 }
 0x1e3   : > { %v1766_v17 = vpop.f32.mrf.mxu1  ;;  %v8535_v24 = vpop.eup %6734 }
 0x1e4   : > { %v8539_v56 = vadd.f32 %v8505_v29, %v1766_v17  ;;  %v1889_v61 = vmul.f32 %v8535_v24, %v8518_v35 }
 0x1e6   : > { %v6555_v34 = vld [vmem:[#allocation3 + $0x58] sm:$0xff]  ;;  %v6131_v14 = vmul.f32 -1.442695, %v8539_v56 }
 0x1e7   : > { %6247 = vmatmul.msk.bf16.gmra.mxu2 %vm10611_vm8, %v6540_v26  ;;  %vm10617_vm8 = vmmov %vm10604_vm0  ;;  %v8547_v55 = vpop.eup %6736 }
 0x1e8   : > { %6192 = vmatmul.msk.bf16.gmra.mxu0 %vm10612_vm5, %v6530_v16  ;;  %vm10618_vm5 = vmmov %vm10604_vm0  ;;  %v1890_v16 = vsub.f32 1.0, %v1889_v61  ;;  %v6739_v5 = vpop.eup %6738 }
 0x1eb   : > { %v3354_v39 = vpop.f32.mrf.mxu1 }
 0x1f0   : > { %6304 = vmatmul.msk.bf16.gmra.mxu1 %vm10613_vm1, %v6552_v41  ;;  %vm10619_vm1 = vmmov %vm10604_vm0  ;;  %v1904_v41 = vmul.f32 %v8547_v55, %v8522_v51 }
 0x1f3   : > { %v3356_v13 = vpop.f32.mrf.mxu1 }
 0x1f7   : > { %6248 = vmatmul.msk.bf16.gmra.mxu2 %vm10614_vm10, %v6541_v52  ;;  %vm10620_vm10 = vmmov %vm10604_vm0 }
 0x1f8   : > { %6193 = vmatmul.msk.bf16.gmra.mxu0 %vm10615_vm15, %v6531_v38  ;;  %vm10621_vm15 = vmmov %vm10604_vm0 }
 0x200   : > { %6305 = vmatmul.msk.bf16.gmra.mxu1 %vm10604_vm0, %v6553_v40  ;;  %v1891_v40 = vmul.f32 %v8535_v24, %v1890_v16  ;;  %vm1893_vm0 = vweird.f32 %v8518_v35 }
 0x203   : > { %v2971_v33 = vpop.f32.mrf.mxu0 }
 0x204   : > { %v3024_v49 = vadd.f32 %v8527_v30, %v2971_v33  ;;  %v1905_v33 = vsub.f32 1.0, %v1904_v41 }
 0x207   : > { %6249 = vmatmul.msk.bf16.gmra.mxu2 %vm10616_vm9, %v6542_v10  ;;  %vm1894_vm9 = vweird.f32 %v8535_v24 }
 0x208   : > { %6194 = vmatmul.msk.bf16.gmra.mxu0 %vm10617_vm8, %v6532_v57  ;;  %v6544_v57 = vld [vmem:[#allocation3 + $0x50] sm:$0xff]  ;;  %vm10622_vm8 = vmmov %vm10619_vm1 }
 0x20b   : > { %v2973_v43 = vpop.f32.mrf.mxu0 }
 0x20c   : > { %v3025_v27 = vadd.f32 %v8527_v30, %v2973_v43 }
 0x210   : > { %6306 = vmatmul.msk.bf16.gmra.mxu1 %vm10618_vm5, %v6554_v62  ;;  %v8569_v62 = vadd.f32 1.0, %v6739_v5  ;;  %vm8578_vm5 = vmor %vm1893_vm0, %vm1894_vm9 }
 0x215   : > { %v2976_v0 = vpop.f32.mrf.mxu0 }
 0x217   : > { %6250 = vmatmul.msk.bf16.gmra.mxu2 %vm10619_vm1, %v6543_v32  ;;  %v1892_v32 = vadd.f32 %v8535_v24, %v1891_v40  ;;  %vm1908_vm1 = vweird.f32 %v8522_v51 }
 0x218   : > { %6195 = vmatmul.msk.bf16.gmra.mxu0 %vm10620_vm10, %v6533_v1  ;;  %vm1909_vm10 = vweird.f32 %v8547_v55 }
 0x219   : > { %vm8599_vm0 = vmor %vm1908_vm1, %vm1909_vm10 }
 0x21a   : > { %v3164_v46 = vpop.f32.mrf.mxu2 }
 0x21b   : > { %v3214_v22 = vadd.f32 %v3164_v46, %v3024_v49  ;;  %v3026_v49 = vadd.f32 %v8527_v30, %v2976_v0  ;;  %v6126_v46 = vmul.f32 -1.442695, %v8561_v2  ;;  %v1896_v0 = vsel %vm8578_vm5, %v8535_v24, %v1892_v32 }
 0x21d   : > { %v8543_v9 = vadd.f32 %v3354_v39, %v3214_v22  ;;  %v3359_v18 = vpop.f32.mrf.mxu1  ;;  %v8545_v58 = vpop.f32.mrf.mxu0  ;;  %v1899_v39 = vand.u32 2147483648, %v8518_v35  ;;  %v1906_v22 = vmul.f32 %v8547_v55, %v1905_v33 }
 0x21f   : > { %v6308_v26 = vmul.f32 -1.442695, %v8543_v9  ;;  %v1900_v1 = vor.u32 1.1754944e-38, %v1899_v39  ;;  %v1907_v16 = vadd.f32 %v8547_v55, %v1906_v22 }
 0x220   : > { %6307 = vmatmul.msk.bf16.gmra.mxu1 %vm10621_vm15, %v6555_v34 }
 0x221   : > { %6740 = vpow2.f32 %v6308_v26 }
 0x222   : > { %v3166_v52 = vpop.f32.mrf.mxu2  ;;  %6742 = vpow2.f32 %v6131_v14  ;;  %v1914_v14 = vand.u32 2147483648, %v8522_v51 }
 0x223   : > { %v3215_v38 = vadd.f32 %v3166_v52, %v3025_v27  ;;  %v1912_v27 = vand.u32 2147483647, %v8522_v51 }
 0x225   : > { %v8557_v17 = vadd.f32 %v3356_v13, %v3215_v38  ;;  %v3361_v10 = vpop.f32.mrf.mxu1  ;;  %v8563_v54 = vpop.f32.mrf.mxu0  ;;  %v1897_v13 = vand.u32 2147483647, %v8518_v35  ;;  %vm1913_vm9 = vcmp.eq.f32.partialorder %v1912_v27, 8.507059e+37 }
 0x227   : > { %v6741_v43 = vpop.eup %6740  ;;  %v6309_v44 = vmul.f32 -1.442695, %v8557_v17  ;;  %6251 = vmatmul.msk.bf16.gmra.mxu2 %vm10622_vm8, %v6544_v57  ;;  %vm1898_vm15 = vcmp.eq.f32.partialorder %v1897_v13, 8.507059e+37  ;;  %v1915_v57 = vor.u32 1.1754944e-38, %v1914_v14  ;;  %v1929_v14 = vand.u32 2147483648, %v8569_v62 }
 0x228   : > { %v8571_v50 = vadd.f32 1.0, %v6741_v43  ;;  %v6743_v23 = vpop.eup %6742  ;;  %v1901_v33 = vsel %vm1898_vm15, %v1900_v1, %v1896_v0  ;;  %v3027_v43 = vadd.f32 %v8527_v30, %v8545_v58 }
 0x229   : > { %6744 = vpow2.f32 %v6309_v44  ;;  %v8587_v35 = vadd.f32 1.0, %v6743_v23  ;;  %v1911_v44 = vsel %vm8599_vm0, %v8547_v55, %v1907_v16  ;;  %v2100_v23 = vmul.f32 %v1901_v33, %v8508_v59 }
 0x22a   : > { %6746 = vrcp.f32 %v8571_v50  ;;  %v3169_v61 = vpop.f32.mrf.mxu2  ;;  %v3028_v33 = vadd.f32 %v8527_v30, %v8563_v54  ;;  %vm3509_vm15 = vweird.f32 %v8571_v50 }
 0x22b   : > { %v3216_v34 = vadd.f32 %v3169_v61, %v3026_v49  ;;  %6748 = vrcp.f32 %v8569_v62  ;;  %v1916_v49 = vsel %vm1913_vm9, %v1915_v57, %v1911_v44  ;;  %v5319_v59 = vpack.c.bf16 %v2100_v23, %v2100_v23 }
 0x22c   : > { %6750 = vpow2.f32 %v6126_v46  ;;  %v1927_v57 = vand.u32 2147483647, %v8569_v62 }
 0x22d   : > { %v8593_v26 = vadd.f32 %v3359_v18, %v3216_v34  ;;  %v3364_v41 = vpop.f32.mrf.mxu1  ;;  %v8597_v52 = vpop.f32.mrf.mxu0  ;;  %v8608_v18 = vadd.f32 %v8505_v29, %v8489_v53  ;;  %6752 = vrcp.f32 %v8587_v35 }
 0x22e   : > { %vm8689_vm1 = vcmp.eq.f32.partialorder %v1927_v57, 8.507059e+37  ;;  %v3029_v48 = vadd.f32 %v8527_v30, %v8597_v52 }
 0x22f   : > { %v6745_v38 = vpop.eup %6744  ;;  %v6310_v24 = vmul.f32 -1.442695, %v8593_v26  ;;  %v6127_v58 = vmul.f32 -1.442695, %v8608_v18 }
 0x230   : > { %v8604_v40 = vpop.eup %6746  ;;  %v8611_v51 = vadd.f32 1.0, %v6745_v38 }
 0x231   : > { %6754 = vpow2.f32 %v6310_v24  ;;  %v8615_v39 = vpop.eup %6748  ;;  %v3505_v53 = vmul.f32 %v8604_v40, %v8571_v50  ;;  %vm3510_vm0 = vweird.f32 %v8604_v40 }
 0x232   : > { %6756 = vrcp.f32 %v8611_v51  ;;  %v3171_v29 = vpop.f32.mrf.mxu2  ;;  %v6751_v13 = vpop.eup %6750  ;;  %v1919_v46 = vmul.f32 %v8615_v39, %v8569_v62  ;;  %vm1924_vm5 = vweird.f32 %v8615_v39  ;;  %vm8695_vm10 = vmor %vm3509_vm15, %vm3510_vm0  ;;  %vm3524_vm8 = vweird.f32 %v8611_v51 }
 0x233   : > { %v3217_v32 = vadd.f32 %v3171_v29, %v3027_v43  ;;  %v8629_v55 = vpop.eup %6752  ;;  %v3506_v22 = vsub.f32 1.0, %v3505_v53  ;;  %v8635_v0 = vadd.f32 1.0, %v6751_v13  ;;  %6758 = vpow2.f32 %v6127_v58 }
 0x234   : > { %v1920_v5 = vsub.f32 1.0, %v1919_v46  ;;  %v1934_v43 = vmul.f32 %v8629_v55, %v8587_v35  ;;  %v8656_v53 = vunpack.c.l.b16 %v5319_v59  ;;  %v8658_v29 = vor.u32 1.1754944e-38, %v1929_v14 }
 0x235   : > { %v8627_v60 = vadd.f32 %v3361_v10, %v3217_v32  ;;  %v8631_v61 = vpop.f32.mrf.mxu1  ;;  %v8633_v1 = vpop.f32.mrf.mxu0  ;;  %v8642_v10 = vmul.f32 %v1916_v49, %v8513_v63  ;;  %v3507_v63 = vmul.f32 %v8604_v40, %v3506_v22  ;;  %vm10633_vm0 = vweird.f32 %v8569_v62 }
 0x236   : > { %v1921_v49 = vmul.f32 %v8615_v39, %v1920_v5  ;;  %v1935_v59 = vsub.f32 1.0, %v1934_v43  ;;  %vm8719_vm11 = vmor %vm10633_vm0, %vm1924_vm5  ;;  %vm10636_vm5 = vweird.f32 %v8629_v55 }
 0x237   : > { %v6755_v34 = vpop.eup %6754  ;;  %v6311_v16 = vmul.f32 -1.442695, %v8627_v60  ;;  %v5320_v54 = vpack.c.bf16 %v8642_v10, %v8642_v10  ;;  %v3508_v14 = vadd.f32 %v8604_v40, %v3507_v63  ;;  %v3513_v63 = vand.u32 2147483647, %v8571_v50 }
 0x238   : > { %v8639_v27 = vpop.eup %6756  ;;  %v8645_v38 = vadd.f32 1.0, %v6755_v34  ;;  %v1936_v57 = vmul.f32 %v8629_v55, %v1935_v59 }
 0x239   : > { %v3520_v24 = vmul.f32 %v8639_v27, %v8611_v51  ;;  %6760 = vpow2.f32 %v6311_v16  ;;  %v8671_v34 = vpop.eup %6758  ;;  %vm3525_vm9 = vweird.f32 %v8639_v27  ;;  %v8730_v3 = vunpack.c.l.b16 %v5320_v54 }
 0x23a   : > { %6762 = vrcp.f32 %v8645_v38  ;;  %v3174_v44 = vpop.f32.mrf.mxu2  ;;  %vm8710_vm15 = vmor %vm3524_vm8, %vm3525_vm9  ;;  %vm3514_vm8 = vcmp.eq.f32.partialorder %v3513_v63, 8.507059e+37  ;;  %v1937_v63 = vadd.f32 %v8629_v55, %v1936_v57  ;;  %v3030_v57 = vadd.f32 %v8527_v30, %v8633_v1 }
 0x23b   : > { %v3521_v23 = vsub.f32 1.0, %v3520_v24  ;;  %v3218_v32 = vadd.f32 %v3174_v44, %v3028_v33  ;;  %v3515_v24 = vand.u32 2147483648, %v8571_v50  ;;  %v3528_v44 = vand.u32 2147483647, %v8611_v51 }
 0x23c   : > { %v3512_v50 = vsel %vm8695_vm10, %v8604_v40, %v3508_v14 }
 0x23d   : > { %v3522_v46 = vmul.f32 %v8639_v27, %v3521_v23  ;;  %v8669_v22 = vadd.f32 %v3364_v41, %v3218_v32  ;;  %v8676_v16 = vpop.f32.mrf.mxu1  ;;  %v8678_v10 = vpop.f32.mrf.mxu0  ;;  %v3530_v23 = vand.u32 2147483648, %v8611_v51  ;;  %vm3529_vm10 = vcmp.eq.f32.partialorder %v3528_v44, 8.507059e+37 }
 0x23f   : > { %v6761_v5 = vpop.eup %6760  ;;  %v3523_v33 = vadd.f32 %v8639_v27, %v3522_v46  ;;  %v6312_v41 = vmul.f32 -1.442695, %v8669_v22  ;;  %v3545_v46 = vand.u32 2147483648, %v8645_v38 }
 0x240   : > { %v6763_v43 = vpop.eup %6762  ;;  %v8687_v32 = vadd.f32 1.0, %v6761_v5  ;;  %v1922_v5 = vadd.f32 %v8615_v39, %v1921_v49  ;;  %v3516_v49 = vor.u32 1.1754944e-38, %v3515_v24 }
 0x241   : > { %v3535_v13 = vmul.f32 %v6763_v43, %v8645_v38  ;;  %6764 = vpow2.f32 %v6312_v41  ;;  %v3527_v40 = vsel %vm8710_vm15, %v8639_v27, %v3523_v33  ;;  %v3531_v41 = vor.u32 1.1754944e-38, %v3530_v23 }
 0x242   : > { %6766 = vrcp.f32 %v8687_v32  ;;  %v3176_v51 = vpop.f32.mrf.mxu2  ;;  %v3517_v36 = vsel %vm3514_vm8, %v3516_v49, %v3512_v50  ;;  %vm3540_vm9 = vweird.f32 %v6763_v43  ;;  %v1926_v42 = vsel %vm8719_vm11, %v8615_v39, %v1922_v5 }
 0x243   : > { %v3536_v59 = vsub.f32 1.0, %v3535_v13  ;;  %v3219_v14 = vadd.f32 %v3176_v51, %v3029_v48  ;;  %v3532_v27 = vsel %vm3529_vm10, %v3531_v41, %v3527_v40  ;;  %v3543_v48 = vand.u32 2147483647, %v8645_v38 }
 0x244   : > { %vm10637_vm15 = vweird.f32 %v8587_v35  ;;  %vm3539_vm11 = vweird.f32 %v8645_v38  ;;  %v3804_v23 = vmul.f32 %v3517_v36, %v8543_v9  ;;  %v3546_v5 = vor.u32 1.1754944e-38, %v3545_v46 }
 0x245   : > { %v3537_v11 = vmul.f32 %v6763_v43, %v3536_v59  ;;  %v8728_v62 = vadd.f32 %v8631_v61, %v3219_v14  ;;  %v8736_v13 = vpop.f32.mrf.mxu1  ;;  %v8738_v24 = vpop.f32.mrf.mxu0  ;;  %vm8745_vm0 = vmor %vm10637_vm15, %vm10636_vm5  ;;  %v3805_v51 = vmul.f32 %v3532_v27, %v8557_v17  ;;  %v10640_v38 = vand.u32 2147483647, %v8587_v35 }
 0x246   : > { %vm3541_vm8 = vmor %vm3539_vm11, %vm3540_vm9  ;;  %v10641_v36 = vand.u32 2147483648, %v8587_v35  ;;  %vm3544_vm9 = vcmp.eq.f32.partialorder %v3543_v48, 8.507059e+37  ;;  %v1941_v1 = vsel %vm8745_vm0, %v8629_v55, %v1937_v63  ;;  %v1931_v59 = vsel %vm8689_vm1, %v8658_v29, %v1926_v42 }
 0x247   : > { %v6765_v33 = vpop.eup %6764  ;;  %v3538_v54 = vadd.f32 %v6763_v43, %v3537_v11  ;;  %v6313_v39 = vmul.f32 -1.442695, %v8728_v62  ;;  %vm1943_vm10 = vcmp.eq.f32.partialorder %v10640_v38, 8.507059e+37  ;;  %v8778_v35 = vsel %vm7346_vm12, %v3804_v23, 0.0 }
 0x248   : > { %v8751_v44 = vpop.eup %6766  ;;  %v8757_v50 = vadd.f32 1.0, %v6765_v33  ;;  %v1945_v9 = vor.u32 1.1754944e-38, %v10641_v36  ;;  %v8782_v41 = vsel %vm7346_vm12, %v3805_v51, 0.0  ;;  %v8792_v42 = vadd.f32 1.0, %v8671_v34 }
 0x249   : > { %v3542_v52 = vsel %vm3541_vm8, %v6763_v43, %v3538_v54  ;;  %v3550_v11 = vmul.f32 %v8751_v44, %v8687_v32  ;;  %6768 = vpow2.f32 %v6313_v39  ;;  %v2102_v48 = vmul.f32 %v1931_v59, %v8530_v8 }
 0x24a   : > { %6770 = vrcp.f32 %v8635_v0  ;;  %v3179_v49 = vpop.f32.mrf.mxu2  ;;  %v3547_v17 = vsel %vm3544_vm9, %v3546_v5, %v3542_v52  ;;  %v1946_v46 = vsel %vm1943_vm10, %v1945_v9, %v1941_v1  ;;  %vm3555_vm12 = vweird.f32 %v8751_v44 }
 0x24b   : > { %v3551_v43 = vsub.f32 1.0, %v3550_v11  ;;  %v3220_v40 = vadd.f32 %v3179_v49, %v3030_v57  ;;  %6772 = vrcp.f32 %v8757_v50  ;;  %v8786_v27 = vmul.f32 %v3547_v17, %v8593_v26 }
 0x24c   : > { %v4125_v34 = vpack.c.bf16 %v8778_v35, %v8778_v35  ;;  %v4126_v8 = vpack.c.bf16 %v8782_v41, %v8782_v41  ;;  %v2103_v54 = vmul.f32 %v1946_v46, %v8539_v56  ;;  %v3558_v39 = vand.u32 2147483647, %v8687_v32 }
 0x24d   : > { %v3552_v55 = vmul.f32 %v8751_v44, %v3551_v43  ;;  %v8789_v29 = vadd.f32 %v8676_v16, %v3220_v40  ;;  %v8797_v37 = vpop.f32.mrf.mxu1  ;;  %v8799_v63 = vpop.f32.mrf.mxu0  ;;  %v3560_v23 = vand.u32 2147483648, %v8687_v32  ;;  %v3031_v5 = vadd.f32 %v8527_v30, %v8678_v10 }
 0x24e   : > { %v4046_v51 = vrot.slane %v8782_v41, 1  ;;  %v10387_v52 = vrot.slane %v8786_v27, 1  ;;  %vm3554_vm1 = vweird.f32 %v8687_v32  ;;  %v5321_v38 = vpack.c.bf16 %v2102_v48, %v2102_v48  ;;  %v6583_v48 = vld [vmem:[%s10340_s6 + $0x10] sm:$0x30] }
 0x24f   : > { %v6769_v58 = vpop.eup %6768  ;;  %v3553_v33 = vadd.f32 %v8751_v44, %v3552_v55  ;;  %v6314_v16 = vmul.f32 -1.442695, %v8789_v29  ;;  %v10386_v36 = vrot.slane %v8778_v35, 1  ;;  %vm8826_vm5 = vmor %vm3554_vm1, %vm3555_vm12  ;;  %v4235_v9 = vunpack.c.l.b16 %v4125_v34 }
 0x250   : > { %v8801_v61 = vpop.eup %6770  ;;  %v8803_v26 = vadd.f32 1.0, %v6769_v58  ;;  %v4236_v49 = vunpack.c.l.b16 %v4126_v8  ;;  %v5322_v17 = vpack.c.bf16 %v2103_v54, %v2103_v54  ;;  %vm3559_vm15 = vcmp.eq.f32.partialorder %v3558_v39, 8.507059e+37  ;;  %v6454_v58 = vld [vmem:[%s10340_s6 + $0x10] sm:$0xf] }
 0x251   : > { %v8815_v57 = vpop.eup %6772  ;;  %v1859_v56 = vmul.f32 %v8801_v61, %v8635_v0  ;;  %v3557_v32 = vsel %vm8826_vm5, %v8751_v44, %v3553_v33  ;;  %v3561_v43 = vor.u32 1.1754944e-38, %v3560_v23  ;;  %vm10644_vm0 = vcmp.lt.s32.totalorder %v7708_v21, 7 }
 0x252   : > { %6774 = vrcp.f32 %v8803_v26  ;;  %v3181_v11 = vpop.f32.mrf.mxu2  ;;  %v3565_v40 = vmul.f32 %v8815_v57, %v8757_v50  ;;  %v4255_v59 = vpack.c.b16 %v4236_v49, %v4235_v9  ;;  %v4082_v46 = vsel %vm10644_vm0, %v4046_v51, %v10387_v52  ;;  %vm10645_vm11 = vmmov %vm10644_vm0 }
 0x253   : > { %6776 = vpow2.f32 %v6314_v16  ;;  %v3221_v1 = vadd.f32 %v3181_v11, %v3031_v5  ;;  %v4083_v44 = vsel %vm10645_vm11, %v10386_v36, %v4046_v51  ;;  %v4086_v16 = vsel %vm7753_vm6, %v4082_v46, 0.0 }
 0x254   : > { %v4145_v34 = vpack.c.bf16 %v4083_v44, %v4083_v44  ;;  %v6455_v54 = vor.u32 %v6583_v48, %v6454_v58  ;;  %v1860_v23 = vsub.f32 1.0, %v1859_v56  ;;  %v8860_v5 = vunpack.c.l.b16 %v5321_v38  ;;  %4265 = vrot.lane.b32.xlu0 %v4255_v59, %s7066_s20 }
 0x255   : > { %v8836_v55 = vadd.f32 %v8736_v13, %v3221_v1  ;;  %v3562_v13 = vsel %vm3559_vm15, %v3561_v43, %v3557_v32  ;;  %v8852_v33 = vpop.f32.mrf.mxu1  ;;  %v8856_v8 = vpop.f32.mrf.mxu0  ;;  %v4146_v11 = vpack.c.bf16 %v4086_v16, %v4086_v16  ;;  %v8864_v32 = vunpack.c.l.b16 %v5322_v17 }
 0x256   : > { %v3566_v9 = vsub.f32 1.0, %v3565_v40  ;;  %v3032_v49 = vadd.f32 %v8527_v30, %v8738_v24  ;;  %v8871_v1 = vmul.f32 %v3562_v13, %v8627_v60  ;;  %v4305_v46 = vunpack.c.l.b16 %v4145_v34 }
 0x257   : > { %v6315_v51 = vmul.f32 -1.442695, %v8836_v55  ;;  %v4306_v38 = vunpack.c.l.b16 %v4146_v11  ;;  %vm10646_vm6 = vcmask 1045504   ;;  %vm1863_vm8 = vweird.f32 %v8635_v0 }
 0x258   : > { %v8858_v39 = vpop.eup %6774  ;;  %v4898_v17 = vsel %vm10646_vm6, %v6455_v54, 0  ;;  %v1867_v40 = vand.u32 2147483647, %v8635_v0  ;;  %v1869_v58 = vand.u32 2147483648, %v8635_v0  ;;  %v1861_v60 = vmul.f32 %v8801_v61, %v1860_v23  ;;  %v6408_v54 = vld [vmem:[%s10340_s6 + $0x8] sm:$0xf]  ;;  %vm10647_vm12 = vmmov %vm10646_vm6 }
 0x259   : > { %v6777_v10 = vpop.eup %6776  ;;  %v3580_v7 = vmul.f32 %v8858_v39, %v8803_v26  ;;  %6778 = vpow2.f32 %v6315_v51  ;;  %4907 = vmatpush.bf16.msra.mxu2 %v4898_v17  ;;  %v3567_v24 = vmul.f32 %v8815_v57, %v3566_v9  ;;  %v4325_v48 = vpack.c.b16 %v4306_v38, %v4305_v46  ;;  %v6574_v23 = vld [vmem:[%s10340_s6 + $0x8] sm:$0x30] }
 0x25a   : > { %v8873_v56 = vadd.f32 1.0, %v6777_v10  ;;  %v3184_v43 = vpop.f32.mrf.mxu2  ;;  %vm3569_vm10 = vweird.f32 %v8757_v50  ;;  %v3573_v13 = vand.u32 2147483647, %v8757_v50  ;;  %v6409_v11 = vor.u32 %v6574_v23, %v6408_v54 }
 0x25b   : > { %v3581_v59 = vsub.f32 1.0, %v3580_v7  ;;  %v3222_v44 = vadd.f32 %v3184_v43, %v3032_v49  ;;  %4335 = vrot.lane.b32.xlu1 %v4325_v48, %s7067_s21  ;;  %v4127_v10 = vpack.c.bf16 %v8786_v27, %v8786_v27  ;;  %vm3570_vm9 = vweird.f32 %v8815_v57 }
 0x25c   : > { %6780 = vrcp.f32 %v8873_v56  ;;  %v3575_v38 = vand.u32 2147483648, %v8757_v50  ;;  %v3033_v43 = vadd.f32 %v8527_v30, %v8799_v63  ;;  %v3568_v46 = vadd.f32 %v8815_v57, %v3567_v24  ;;  %vm8936_vm0 = vmor %vm3569_vm10, %vm3570_vm9 }
 0x25d   : > { %6782 = vrcp.f32 %v8792_v42  ;;  %v3582_v16 = vmul.f32 %v8858_v39, %v3581_v59  ;;  %v8887_v34 = vadd.f32 %v8797_v37, %v3222_v44  ;;  %v8896_v51 = vpop.f32.mrf.mxu1  ;;  %v4128_v37 = vpack.c.bf16 %v8871_v1, %v8871_v1  ;;  %v8902_v9 = vpop.f32.mrf.mxu0 }
 0x25e   : > { %v4742_v44 = vsel %vm10647_vm12, %v6409_v11, 0  ;;  %vm3585_vm1 = vweird.f32 %v8858_v39  ;;  %v3588_v7 = vand.u32 2147483647, %v8803_v26  ;;  %v3590_v24 = vand.u32 2147483648, %v8803_v26 }
 0x25f   : > { %v6779_v49 = vpop.eup %6778  ;;  %v6316_v59 = vmul.f32 -1.442695, %v8887_v34  ;;  %v4238_v48 = vunpack.c.l.b16 %v4128_v37  ;;  %v3583_v23 = vadd.f32 %v8858_v39, %v3582_v16  ;;  %4751 = vmatpush.bf16.msra.mxu0 %v4742_v44  ;;  %v4237_v11 = vunpack.c.l.b16 %v4127_v10 }
 0x260   : > { %v8912_v17 = vadd.f32 1.0, %v6779_v49  ;;  %v1862_v37 = vadd.f32 %v8801_v61, %v1861_v60  ;;  %vm1864_vm5 = vweird.f32 %v8801_v61  ;;  %vm8928_vm15 = vcmp.eq.f32.partialorder %v1867_v40, 8.507059e+37 }
 0x261   : > { %6784 = vpow2.f32 %v6316_v59  ;;  %vm3584_vm11 = vweird.f32 %v8803_v26  ;;  %v3572_v60 = vsel %vm8936_vm0, %v8815_v57, %v3568_v46  ;;  %v4256_v44 = vpack.c.b16 %v4238_v48, %v4237_v11  ;;  %vm8955_vm9 = vmor %vm1863_vm8, %vm1864_vm5 }
 0x262   : > { %v8915_v54 = vpop.eup %6780  ;;  %v3186_v63 = vpop.f32.mrf.mxu2  ;;  %6786 = vrcp.f32 %v8912_v17  ;;  %vm8946_vm6 = vmor %vm3584_vm11, %vm3585_vm1  ;;  %vm3574_vm12 = vcmp.eq.f32.partialorder %v3573_v13, 8.507059e+37  ;;  %v3576_v50 = vor.u32 1.1754944e-38, %v3575_v38  ;;  %vm3589_vm10 = vcmp.eq.f32.partialorder %v3588_v7, 8.507059e+37 }
 0x263   : > { %v8920_v14 = vpop.eup %6782  ;;  %v3595_v49 = vmul.f32 %v8915_v54, %v8873_v56  ;;  %v3223_v36 = vadd.f32 %v3186_v63, %v3033_v43  ;;  %v3587_v52 = vsel %vm8946_vm6, %v8858_v39, %v3583_v23  ;;  %v3591_v57 = vor.u32 1.1754944e-38, %v3590_v24  ;;  %4267 = vrot.lane.b32.xlu1 %v4256_v44, %s7066_s20 }
 0x264   : > { %vm3600_vm1 = vweird.f32 %v8915_v54  ;;  %v3577_v43 = vsel %vm3574_vm12, %v3576_v50, %v3572_v60  ;;  %vm3599_vm0 = vweird.f32 %v8873_v56  ;;  %v3603_v39 = vand.u32 2147483647, %v8873_v56 }
 0x265   : > { %v3596_v10 = vsub.f32 1.0, %v3595_v49  ;;  %v8963_v13 = vadd.f32 %v8852_v33, %v3223_v36  ;;  %v3605_v7 = vand.u32 2147483648, %v8873_v56  ;;  %v8968_v48 = vpop.f32.mrf.mxu1  ;;  %v8970_v23 = vpop.f32.mrf.mxu0  ;;  %v3592_v24 = vsel %vm3589_vm10, %v3591_v57, %v3587_v52  ;;  %vm3601_vm8 = vmor %vm3599_vm0, %vm3600_vm1 }
 0x266   : > { %v1866_v33 = vsel %vm8955_vm9, %v8801_v61, %v1862_v37  ;;  %v1870_v56 = vor.u32 1.1754944e-38, %v1869_v58  ;;  %v8985_v59 = vmul.f32 %v8920_v14, %v8792_v42  ;;  %v8992_v40 = vmul.f32 %v3577_v43, %v8669_v22 }
 0x267   : > { %v3597_v46 = vmul.f32 %v8915_v54, %v3596_v10  ;;  %v6785_v38 = vpop.eup %6784  ;;  %v6317_v36 = vmul.f32 -1.442695, %v8963_v13  ;;  %v3034_v0 = vadd.f32 %v8527_v30, %v8856_v8  ;;  %v8999_v61 = vmul.f32 %v3592_v24, %v8728_v62 }
 0x268   : > { %v8972_v63 = vpop.eup %6786  ;;  %v8975_v11 = vadd.f32 1.0, %v6785_v38  ;;  %v3606_v58 = vor.u32 1.1754944e-38, %v3605_v7  ;;  %vm3604_vm5 = vcmp.eq.f32.partialorder %v3603_v39, 8.507059e+37  ;;  %v9003_v50 = vsel %vm8928_vm15, %v1870_v56, %v1866_v33 }
 0x269   : > { %v3598_v49 = vadd.f32 %v8915_v54, %v3597_v46  ;;  %v3610_v52 = vmul.f32 %v8972_v63, %v8912_v17  ;;  %v4129_v62 = vpack.c.bf16 %v8992_v40, %v8992_v40  ;;  %v4048_v57 = vrot.slane %v8871_v1, 1 }
 0x26a   : > { %v3189_v60 = vpop.f32.mrf.mxu2  ;;  %6788 = vrcp.f32 %v8975_v11  ;;  %v4049_v46 = vrot.slane %v8992_v40, 1  ;;  %v3035_v16 = vadd.f32 %v8527_v30, %v8902_v9  ;;  %v4130_v38 = vpack.c.bf16 %v8999_v61, %v8999_v61 }
 0x26b   : > { %v3602_v10 = vsel %vm3601_vm8, %v8915_v54, %v3598_v49  ;;  %v3611_v37 = vsub.f32 1.0, %v3610_v52  ;;  %6790 = vpow2.f32 %v6317_v36  ;;  %v3224_v44 = vadd.f32 %v3189_v60, %v3034_v0 }
 0x26c   : > { %v3607_v22 = vsel %vm3604_vm5, %v3606_v58, %v3602_v10  ;;  %v1875_v54 = vsub.f32 1.0, %v8985_v59  ;;  %v3618_v24 = vand.u32 2147483647, %v8912_v17  ;;  %v3620_v49 = vand.u32 2147483648, %v8912_v17 }
 0x26d   : > { %v3612_v26 = vmul.f32 %v8972_v63, %v3611_v37  ;;  %v9008_v8 = vadd.f32 %v8896_v51, %v3224_v44  ;;  %v9018_v43 = vpop.f32.mrf.mxu1  ;;  %v9020_v39 = vpop.f32.mrf.mxu0  ;;  %v9025_v51 = vmul.f32 %v3607_v22, %v8789_v29  ;;  %vm3615_vm15 = vweird.f32 %v8972_v63 }
 0x26e   : > { %v4239_v56 = vunpack.c.l.b16 %v4129_v62  ;;  %v4240_v59 = vunpack.c.l.b16 %v4130_v38  ;;  %v4050_v0 = vrot.slane %v8999_v61, 1  ;;  %vm3614_vm11 = vweird.f32 %v8912_v17 }
 0x26f   : > { %v6318_v36 = vmul.f32 -1.442695, %v9008_v8  ;;  %v3613_v60 = vadd.f32 %v8972_v63, %v3612_v26  ;;  %v4051_v44 = vrot.slane %v9025_v51, 1  ;;  %vm9039_vm6 = vcmp.eq.f32.partialorder %v3618_v24, 8.507059e+37  ;;  %vm9046_vm12 = vmor %vm3614_vm11, %vm3615_vm15 }
 0x270   : > { %v9022_v7 = vpop.eup %6788  ;;  %v4257_v37 = vpack.c.b16 %v4240_v59, %v4239_v56  ;;  %v3621_v62 = vor.u32 1.1754944e-38, %v3620_v49  ;;  %vm3629_vm10 = vweird.f32 %v8975_v11  ;;  %v3635_v17 = vand.u32 2147483648, %v8975_v11 }
 0x271   : > { %v6791_v33 = vpop.eup %6790  ;;  %v3625_v9 = vmul.f32 %v9022_v7, %v8975_v11  ;;  %6792 = vpow2.f32 %v6318_v36  ;;  %v3617_v24 = vsel %vm9046_vm12, %v8972_v63, %v3613_v60  ;;  %vm3630_vm9 = vweird.f32 %v9022_v7 }
 0x272   : > { %v3191_v52 = vpop.f32.mrf.mxu2  ;;  %v9034_v10 = vadd.f32 1.0, %v6791_v33  ;;  %4269 = vrot.lane.b32.xlu2 %v4257_v37, %s7066_s20  ;;  %vm10660_vm1 = vcmp.lt.s32.totalorder %v7708_v21, 7  ;;  %v10661_v36 = vrot.slane %v8786_v27, 1  ;;  %v3633_v63 = vand.u32 2147483647, %v8975_v11 }
 0x273   : > { %v3225_v29 = vadd.f32 %v3191_v52, %v3035_v16  ;;  %v3626_v58 = vsub.f32 1.0, %v3625_v9  ;;  %v4080_v49 = vsel %vm10660_vm1, %v4048_v57, %v4049_v46  ;;  %vm10662_vm0 = vmmov %vm10660_vm1  ;;  %v1876_v37 = vmul.f32 %v8920_v14, %v1875_v54 }
 0x274   : > { %6794 = vrcp.f32 %v9034_v10  ;;  %v4081_v33 = vsel %vm10662_vm0, %v10661_v36, %v4048_v57  ;;  %vm10663_vm8 = vmmov %vm10662_vm0  ;;  %v3622_v6 = vsel %vm9039_vm6, %v3621_v62, %v3617_v24  ;;  %v3636_v62 = vor.u32 1.1754944e-38, %v3635_v17 }
 0x275   : > { %v3627_v16 = vmul.f32 %v9022_v7, %v3626_v58  ;;  %v9055_v38 = vadd.f32 %v8968_v48, %v3225_v29  ;;  %v4088_v48 = vsel %vm7858_vm13, %v4080_v49, 0.0  ;;  %v4147_v59 = vpack.c.bf16 %v4081_v33, %v4081_v33  ;;  %v9072_v29 = vpop.f32.mrf.mxu1  ;;  %vm10664_vm5 = vmmov %vm10662_vm0  ;;  %v9093_v49 = vpop.f32.mrf.mxu0 }
 0x276   : > { %v4148_v60 = vpack.c.bf16 %v4088_v48, %v4088_v48  ;;  %v4078_v58 = vsel %vm10663_vm8, %v4050_v0, %v4051_v44  ;;  %v4079_v57 = vsel %vm10664_vm5, %v4049_v46, %v4050_v0  ;;  %vm9087_vm13 = vmor %vm3629_vm10, %vm3630_vm9  ;;  %vm3634_vm15 = vcmp.eq.f32.partialorder %v3633_v63, 8.507059e+37 }
 0x277   : > { %v3628_v9 = vadd.f32 %v9022_v7, %v3627_v16  ;;  %v6319_v56 = vmul.f32 -1.442695, %v9055_v38  ;;  %v6793_v52 = vpop.eup %6792  ;;  %v4307_v0 = vunpack.c.l.b16 %v4147_v59  ;;  %v4090_v11 = vsel %vm7749_vm7, %v4078_v58, 0.0 }
 0x278   : > { %v9091_v16 = vadd.f32 1.0, %v6793_v52  ;;  %v4308_v22 = vunpack.c.l.b16 %v4148_v60  ;;  %v4149_v33 = vpack.c.bf16 %v4079_v57, %v4079_v57  ;;  %v3036_v48 = vadd.f32 %v8527_v30, %v8970_v23 }
 0x279   : > { %6796 = vpow2.f32 %v6319_v56  ;;  %v3632_v54 = vsel %vm9087_vm13, %v9022_v7, %v3628_v9  ;;  %v9109_v7 = vmul.f32 %v3622_v6, %v8836_v55  ;;  %v4150_v59 = vpack.c.bf16 %v4090_v11, %v4090_v11  ;;  %vm10673_vm13 = vmmov %vm10664_vm5 }
 0x27a   : > { %v3194_v36 = vpop.f32.mrf.mxu2  ;;  %v9095_v46 = vpop.eup %6794  ;;  %6798 = vrcp.f32 %v9091_v16  ;;  %v4326_v52 = vpack.c.b16 %v4308_v22, %v4307_v0  ;;  %v3637_v9 = vsel %vm3634_vm15, %v3636_v62, %v3632_v54  ;;  %v9113_v17 = vmul.f32 %v9003_v50, %v8561_v2 }
 0x27b   : > { %v3640_v24 = vmul.f32 %v9095_v46, %v9034_v10  ;;  %v9116_v60 = vadd.f32 %v8920_v14, %v1876_v37  ;;  %v3226_v63 = vadd.f32 %v3194_v36, %v3036_v48  ;;  %v4309_v6 = vunpack.c.l.b16 %v4149_v33 }
 0x27c   : > { %4337 = vrot.lane.b32.xlu2 %v4326_v52, %s7067_s21  ;;  %v4310_v26 = vunpack.c.l.b16 %v4150_v59  ;;  %v9123_v54 = vmul.f32 %v3637_v9, %v8887_v34  ;;  %v3648_v2 = vand.u32 2147483647, %v9034_v10  ;;  %vm3645_vm7 = vweird.f32 %v9095_v46 }
 0x27d   : > { %v3641_v28 = vsub.f32 1.0, %v3640_v24  ;;  %v9129_v37 = vadd.f32 %v9018_v43, %v3226_v63  ;;  %v4132_v11 = vpack.c.bf16 %v9109_v7, %v9109_v7  ;;  %v3650_v34 = vand.u32 2147483648, %v9034_v10  ;;  %v3389_v52 = vpop.f32.mrf.mxu1 }
 0x27e   : > { %v4327_v22 = vpack.c.b16 %v4310_v26, %v4309_v6  ;;  %vm1878_vm11 = vweird.f32 %v8792_v42  ;;  %vm1879_vm6 = vweird.f32 %v8920_v14  ;;  %vm3644_vm12 = vweird.f32 %v9034_v10 }
 0x27f   : > { %v6797_v23 = vpop.eup %6796  ;;  %v3642_v55 = vmul.f32 %v9095_v46, %v3641_v28  ;;  %v3037_v43 = vadd.f32 %v8527_v30, %v9020_v39  ;;  %v6320_v48 = vmul.f32 -1.442695, %v9129_v37  ;;  %v4131_v9 = vpack.c.bf16 %v9025_v51, %v9025_v51  ;;  %v9148_v28 = vpop.f32.mrf.mxu0  ;;  %vm9153_vm10 = vmor %vm3644_vm12, %vm3645_vm7 }
 0x280   : > { %v9126_v50 = vadd.f32 1.0, %v6797_v23  ;;  %v6799_v0 = vpop.eup %6798  ;;  %4339 = vrot.lane.b32.xlu0 %v4327_v22, %s7067_s21  ;;  %v4052_v59 = vrot.slane %v9109_v7, 1  ;;  %vm9157_vm9 = vcmp.eq.f32.partialorder %v3648_v2, 8.507059e+37  ;;  %v3665_v23 = vand.u32 2147483648, %v9091_v16  ;;  %vm9225_vm12 = vmor %vm1878_vm11, %vm1879_vm6 }
 0x281   : > { %v3643_v36 = vadd.f32 %v9095_v46, %v3642_v55  ;;  %v3655_v24 = vmul.f32 %v6799_v0, %v9091_v16  ;;  %v4053_v55 = vrot.slane %v9123_v54, 1  ;;  %v4242_v26 = vunpack.c.l.b16 %v4132_v11 }
 0x282   : > { %6800 = vrcp.f32 %v9126_v50  ;;  %v3196_v33 = vpop.f32.mrf.mxu2  ;;  %v3651_v22 = vor.u32 1.1754944e-38, %v3650_v34  ;;  %vm3660_vm1 = vweird.f32 %v6799_v0  ;;  %vm3659_vm0 = vweird.f32 %v9091_v16 }
 0x283   : > { %v3656_v10 = vsub.f32 1.0, %v3655_v24  ;;  %v3647_v6 = vsel %vm9153_vm10, %v9095_v46, %v3643_v36  ;;  %6802 = vpow2.f32 %v6320_v48  ;;  %v3227_v57 = vadd.f32 %v3196_v33, %v3037_v43  ;;  %vm9177_vm8 = vmor %vm3659_vm0, %vm3660_vm1 }
 0x284   : > { %v3663_v2 = vand.u32 2147483647, %v9091_v16  ;;  %v3038_v24 = vadd.f32 %v8527_v30, %v9093_v49  ;;  %v4241_v62 = vunpack.c.l.b16 %v4131_v9  ;;  %v3652_v63 = vsel %vm9157_vm9, %v3651_v22, %v3647_v6  ;;  %vm10687_vm0 = vmmov %vm10664_vm5 }
 0x285   : > { %v3657_v58 = vmul.f32 %v6799_v0, %v3656_v10  ;;  %v3666_v36 = vor.u32 1.1754944e-38, %v3665_v23  ;;  %v9175_v11 = vadd.f32 %v9072_v29, %v3227_v57  ;;  %v4076_v30 = vsel %vm10664_vm5, %v4052_v59, %v4053_v55  ;;  %v3391_v45 = vpop.f32.mrf.mxu1 }
 0x286   : > { %v4258_v33 = vpack.c.b16 %v4242_v26, %v4241_v62  ;;  %v4077_v49 = vsel %vm10673_vm13, %v4051_v44, %v4052_v59  ;;  %v10674_v29 = vand.u32 2147483647, %v8792_v42  ;;  %v4092_v43 = vsel %vm7831_vm14, %v4076_v30, 0.0 }
 0x287   : > { %v3658_v46 = vadd.f32 %v6799_v0, %v3657_v58  ;;  %v6321_v62 = vmul.f32 -1.442695, %v9175_v11  ;;  %v4151_v48 = vpack.c.bf16 %v4077_v49, %v4077_v49  ;;  %v9203_v10 = vmul.f32 %v3652_v63, %v8963_v13 }
 0x288   : > { %v9170_v56 = vpop.eup %6800  ;;  %vm9193_vm15 = vcmp.eq.f32.partialorder %v10674_v29, 8.507059e+37  ;;  %vm3664_vm7 = vcmp.eq.f32.partialorder %v3663_v2, 8.507059e+37  ;;  %4271 = vrot.lane.b32.xlu0 %v4258_v33, %s7066_s20  ;;  %v4152_v59 = vpack.c.bf16 %v4092_v43, %v4092_v43  ;;  %v10677_v13 = vrot.slane %v8782_v41, 7 }
 0x289   : > { %v3670_v16 = vmul.f32 %v9170_v56, %v9126_v50  ;;  %v3662_v57 = vsel %vm9177_vm8, %v6799_v0, %v3658_v46  ;;  %v6803_v39 = vpop.eup %6802  ;;  %6804 = vpow2.f32 %v6321_v62  ;;  %v4311_v0 = vunpack.c.l.b16 %v4151_v48  ;;  %v9209_v46 = vpop.f32.mrf.mxu0  ;;  %vm10688_vm8 = vmmov %vm10687_vm0 }
 0x28a   : > { %v3199_v9 = vpop.f32.mrf.mxu2  ;;  %v3667_v23 = vsel %vm3664_vm7, %v3666_v36, %v3662_v57  ;;  %v9206_v6 = vadd.f32 1.0, %v6803_v39  ;;  %v4312_v22 = vunpack.c.l.b16 %v4152_v59  ;;  %v10678_v2 = vrot.slane %v8778_v35, 7 }
 0x28b   : > { %v3671_v44 = vsub.f32 1.0, %v3670_v16  ;;  %v3228_v34 = vadd.f32 %v3199_v9, %v3038_v24  ;;  %vm10679_vm14 = vcmp.lt.s32.totalorder %v7708_v21, 1  ;;  %v10682_v24 = vand.u32 2147483648, %v8792_v42 }
 0x28c   : > { %v9217_v63 = vsel %vm10679_vm14, %v10678_v2, %v10677_v13  ;;  %v3987_v30 = vrot.slane %v8786_v27, 7  ;;  %6806 = vrcp.f32 %v9206_v6  ;;  %v9234_v49 = vmul.f32 %v3667_v23, %v9008_v8  ;;  %vm10686_vm9 = vmmov %vm10679_vm14 }
 0x28d   : > { %v3672_v26 = vmul.f32 %v9170_v56, %v3671_v44  ;;  %v1885_v33 = vor.u32 1.1754944e-38, %v10682_v24  ;;  %vm3675_vm10 = vweird.f32 %v9170_v56  ;;  %v4328_v57 = vpack.c.b16 %v4312_v22, %v4311_v0  ;;  %vm10691_vm7 = vmmov %vm10686_vm9 }
 0x28e   : > { %v3680_v62 = vand.u32 2147483648, %v9126_v50  ;;  %v9239_v43 = vadd.f32 %v3389_v52, %v3228_v34  ;;  %v4133_v42 = vpack.c.bf16 %v9123_v54, %v9123_v54  ;;  %v4134_v48 = vpack.c.bf16 %v9203_v10, %v9203_v10  ;;  %v9254_v52 = vld [vmem:[%s10344_s10] ss:$0 sm:$0xff] }
 0x28f   : > { %v3673_v29 = vadd.f32 %v9170_v56, %v3672_v26  ;;  %v1881_v8 = vsel %vm9225_vm12, %v8920_v14, %v9116_v60  ;;  %vm3674_vm11 = vweird.f32 %v9126_v50  ;;  %v3678_v9 = vand.u32 2147483647, %v9126_v50  ;;  %4341 = vrot.lane.b32.xlu1 %v4328_v57, %s7067_s21  ;;  %v6805_v44 = vpop.eup %6804 }
 0x290   : > { %v3039_v39 = vadd.f32 %v9254_v52, %v9148_v28  ;;  %v4054_v59 = vrot.slane %v9203_v10, 1  ;;  %vm9260_vm6 = vmor %vm3674_vm11, %vm3675_vm10  ;;  %v6322_v14 = vmul.f32 -1.442695, %v9239_v43  ;;  %v4243_v60 = vunpack.c.l.b16 %v4133_v42 }
 0x291   : > { %v4244_v50 = vunpack.c.l.b16 %v4134_v48  ;;  %v4055_v26 = vrot.slane %v9234_v49, 1  ;;  %v3677_v28 = vsel %vm9260_vm6, %v9170_v56, %v3673_v29  ;;  %v9269_v22 = vadd.f32 1.0, %v6805_v44  ;;  %v3394_v44 = vpop.f32.mrf.mxu1  ;;  %v3013_v23 = vpop.f32.mrf.mxu0 }
 0x292   : > { %v3201_v0 = vpop.f32.mrf.mxu2  ;;  %v6807_v13 = vpop.eup %6806  ;;  %v3681_v2 = vor.u32 1.1754944e-38, %v3680_v62  ;;  %6808 = vpow2.f32 %v6322_v14  ;;  %v10685_v24 = vrot.slane %v8782_v41, 7  ;;  %v9281_v42 = vsel %vm9193_vm15, %v1885_v33, %v1881_v8 }
 0x293   : > { %v3229_v34 = vadd.f32 %v3201_v0, %v3039_v39  ;;  %v4259_v16 = vpack.c.b16 %v4244_v50, %v4243_v60  ;;  %v3988_v56 = vrot.slane %v8871_v1, 7  ;;  %vm3679_vm1 = vcmp.eq.f32.partialorder %v3678_v9, 8.507059e+37 }
 0x294   : > { %v9277_v57 = vsel %vm10686_vm9, %v10685_v24, %v3987_v30  ;;  %v3685_v29 = vmul.f32 %v6807_v13, %v9206_v6  ;;  %v3989_v62 = vrot.slane %v8992_v40, 7  ;;  %v3682_v48 = vsel %vm3679_vm1, %v3681_v2, %v3677_v28  ;;  %vm10696_vm1 = vmmov %vm10687_vm0 }
 0x295   : > { %v3693_v39 = vand.u32 2147483647, %v9206_v6  ;;  %6810 = vrcp.f32 %v9269_v22  ;;  %4273 = vrot.lane.b32.xlu2 %v4259_v16, %s7066_s20  ;;  %v9289_v58 = vadd.f32 %v3391_v45, %v3229_v34  ;;  %v4074_v33 = vsel %vm10687_vm0, %v4054_v59, %v4055_v26 }
 0x296   : > { %v3686_v41 = vsub.f32 1.0, %v3685_v29  ;;  %v4075_v8 = vsel %vm10688_vm8, %v4053_v55, %v4054_v59  ;;  %vm3690_vm5 = vweird.f32 %v6807_v13  ;;  %v3695_v14 = vand.u32 2147483648, %v9206_v6 }
 0x297   : > { %v4094_v60 = vsel %vm7928_vm3, %v4074_v33, 0.0  ;;  %v6323_v50 = vmul.f32 -1.442695, %v9289_v58  ;;  %v4153_v0 = vpack.c.bf16 %v4075_v8, %v4075_v8  ;;  %v9305_v2 = vmul.f32 %v3682_v48, %v9055_v38 }
 0x298   : > { %v3687_v45 = vmul.f32 %v6807_v13, %v3686_v41  ;;  %v4154_v28 = vpack.c.bf16 %v4094_v60, %v4094_v60  ;;  %v6809_v34 = vpop.eup %6808  ;;  %vm3689_vm13 = vweird.f32 %v9206_v6  ;;  %vm9308_vm15 = vcmp.eq.f32.partialorder %v3693_v39, 8.507059e+37 }
 0x299   : > { %v3040_v59 = vadd.f32 %v9254_v52, %v9209_v46  ;;  %v9314_v24 = vadd.f32 1.0, %v6809_v34  ;;  %6812 = vpow2.f32 %v6323_v50  ;;  %vm3691_vm3 = vmor %vm3689_vm13, %vm3690_vm5  ;;  %v3696_v38 = vor.u32 1.1754944e-38, %v3695_v14 }
 0x29a   : > { %v3204_v15 = vpop.f32.mrf.mxu2  ;;  %v3688_v16 = vadd.f32 %v6807_v13, %v3687_v45  ;;  %v4314_v29 = vunpack.c.l.b16 %v4154_v28  ;;  %v3708_v48 = vand.u32 2147483647, %v9269_v22  ;;  %v9324_v46 = vsel %vm10691_vm7, %v3987_v30, %v3988_v56 }
 0x29b   : > { %v6811_v41 = vpop.eup %6810  ;;  %v3230_v6 = vadd.f32 %v3204_v15, %v3040_v59  ;;  %6814 = vrcp.f32 %v9314_v24  ;;  %v4313_v8 = vunpack.c.l.b16 %v4153_v0  ;;  %v3041_v50 = vadd.f32 %v9254_v52, %v3013_v23 }
 0x29c   : > { %v3692_v39 = vsel %vm3691_vm3, %v6807_v13, %v3688_v16  ;;  %v3700_v33 = vmul.f32 %v6811_v41, %v9269_v22  ;;  %v4056_v27 = vrot.slane %v9305_v2, 1  ;;  %v3710_v30 = vand.u32 2147483648, %v9269_v22  ;;  %v3396_v16 = vpop.f32.mrf.mxu1 }
 0x29d   : > { %v3697_v45 = vsel %vm9308_vm15, %v3696_v38, %v3692_v39  ;;  %v4329_v13 = vpack.c.b16 %v4314_v29, %v4313_v8  ;;  %vm3704_vm14 = vweird.f32 %v9269_v22  ;;  %vm9339_vm12 = vcmp.eq.f32.partialorder %v3708_v48, 8.507059e+37  ;;  %v3016_v29 = vpop.f32.mrf.mxu0 }
 0x29e   : > { %v3701_v28 = vsub.f32 1.0, %v3700_v33  ;;  %v9336_v34 = vmul.f32 %v3697_v45, %v9129_v37  ;;  %v9343_v59 = vadd.f32 %v3394_v44, %v3230_v6  ;;  %vm3705_vm10 = vweird.f32 %v6811_v41 }
 0x29f   : > { %v6813_v55 = vpop.eup %6812  ;;  %v3723_v23 = vand.u32 2147483647, %v9314_v24  ;;  %4343 = vrot.lane.b32.xlu0 %v4329_v13, %s7067_s21  ;;  %v9350_v37 = vsel %vm8289_vm4, %v9277_v57, 0.0  ;;  %v4135_v44 = vpack.c.bf16 %v9234_v49, %v9234_v49  ;;  %v4136_v6 = vpack.c.bf16 %v9305_v2, %v9305_v2  ;;  %vm3706_vm4 = vmor %vm3704_vm14, %vm3705_vm10 }
 0x2a0   : > { %v3702_v15 = vmul.f32 %v6811_v41, %v3701_v28  ;;  %v9352_v38 = vadd.f32 1.0, %v6813_v55  ;;  %v6324_v48 = vmul.f32 -1.442695, %v9343_v59  ;;  %v3711_v45 = vor.u32 1.1754944e-38, %v3710_v30 }
 0x2a1   : > { %v6815_v33 = vpop.eup %6814  ;;  %v3725_v28 = vand.u32 2147483648, %v9314_v24  ;;  %v4057_v19 = vrot.slane %v9336_v34, 1  ;;  %v4107_v55 = vpack.c.bf16 %v9350_v37, %v9350_v37  ;;  %vm3719_vm11 = vweird.f32 %v9314_v24 }
 0x2a2   : > { %v3206_v39 = vpop.f32.mrf.mxu2  ;;  %v3703_v8 = vadd.f32 %v6811_v41, %v3702_v15  ;;  %v3715_v57 = vmul.f32 %v6815_v33, %v9314_v24  ;;  %6816 = vrcp.f32 %v9352_v38  ;;  %v3042_v30 = vadd.f32 %v9254_v52, %v3016_v29 }
 0x2a3   : > { %v3231_v13 = vadd.f32 %v3206_v39, %v3041_v50  ;;  %6818 = vpow2.f32 %v6324_v48  ;;  %vm9370_vm6 = vcmp.eq.f32.partialorder %v3723_v23, 8.507059e+37  ;;  %v4245_v22 = vunpack.c.l.b16 %v4135_v44  ;;  %v6565_v23 = vld [vmem:[%s10340_s6] sm:$0x30] }
 0x2a4   : > { %v3707_v36 = vsel %vm3706_vm4, %v6811_v41, %v3703_v8  ;;  %v3716_v50 = vsub.f32 1.0, %v3715_v57  ;;  %v4246_v39 = vunpack.c.l.b16 %v4136_v6  ;;  %vm3720_vm9 = vweird.f32 %v6815_v33  ;;  %v6362_v41 = vld [vmem:[%s10340_s6] sm:$0xf] }
 0x2a5   : > { %v3712_v14 = vsel %vm9339_vm12, %v3711_v45, %v3707_v36  ;;  %v3726_v60 = vor.u32 1.1754944e-38, %v3725_v28  ;;  %v9376_v9 = vadd.f32 %v3396_v16, %v3231_v13  ;;  %v6363_v8 = vor.u32 %v6565_v23, %v6362_v41  ;;  %vm3721_vm5 = vmor %vm3719_vm11, %vm3720_vm9  ;;  %v3018_v23 = vpop.f32.mrf.mxu0 }
 0x2a6   : > { %v3717_v29 = vmul.f32 %v6815_v33, %v3716_v50  ;;  %v4260_v48 = vpack.c.b16 %v4246_v39, %v4245_v22  ;;  %v4072_v36 = vsel %vm10696_vm1, %v4056_v27, %v4057_v19  ;;  %v3738_v0 = vand.u32 2147483647, %v9352_v38  ;;  %vm10705_vm11 = vmmov %vm10687_vm0 }
 0x2a7   : > { %v3740_v16 = vand.u32 2147483648, %v9352_v38  ;;  %v6325_v44 = vmul.f32 -1.442695, %v9376_v9  ;;  %v4073_v6 = vsel %vm10687_vm0, %v4055_v26, %v4056_v27  ;;  %vm10697_vm8 = vcmask 1045504   ;;  %v3399_v27 = vpop.f32.mrf.mxu1 }
 0x2a8   : > { %v6817_v45 = vpop.eup %6816  ;;  %v3718_v28 = vadd.f32 %v6815_v33, %v3717_v29  ;;  %4275 = vrot.lane.b32.xlu1 %v4260_v48, %s7066_s20  ;;  %v4583_v13 = vsel %vm10697_vm8, %v6363_v8, 0  ;;  %v4096_v57 = vsel %vm7976_vm2, %v4072_v36, 0.0  ;;  %v4155_v50 = vpack.c.bf16 %v4073_v6, %v4073_v6  ;;  %vm10698_vm2 = vmmov %vm10691_vm7 }
 0x2a9   : > { %v6819_v39 = vpop.eup %6818  ;;  %v9400_v41 = vmul.f32 %v3712_v14, %v9175_v11  ;;  %v3730_v26 = vmul.f32 %v6817_v45, %v9352_v38  ;;  %6820 = vpow2.f32 %v6325_v44  ;;  %4592 = vmatpush.bf16.msrb.mxu3 %v4583_v13  ;;  %v4156_v29 = vpack.c.bf16 %v4096_v57, %v4096_v57  ;;  %vm10702_vm14 = vmmov %vm10698_vm2 }
 0x2aa   : > { %v3209_v22 = vpop.f32.mrf.mxu2  ;;  %v3722_v48 = vsel %vm3721_vm5, %v6815_v33, %v3718_v28  ;;  %v9406_v31 = vadd.f32 1.0, %v6819_v39  ;;  %v4315_v8 = vunpack.c.l.b16 %v4155_v50  ;;  %v4020_v24 = vsel %vm10698_vm2, %v3988_v56, %v3989_v62 }
 0x2ab   : > { %v3232_v36 = vadd.f32 %v3209_v22, %v3042_v30  ;;  %v3727_v11 = vsel %vm9370_vm6, %v3726_v60, %v3722_v48  ;;  %v3731_v14 = vsub.f32 1.0, %v3730_v26  ;;  %v4316_v6 = vunpack.c.l.b16 %v4156_v29  ;;  %vm10706_vm6 = vmmov %vm10687_vm0 }
 0x2ac   : > { %vm3734_vm13 = vweird.f32 %v9352_v38  ;;  %6822 = vrcp.f32 %v9406_v31  ;;  %v3043_v33 = vadd.f32 %v9254_v52, %v3018_v23  ;;  %v4108_v30 = vpack.c.bf16 %v9324_v46, %v9324_v46 }
 0x2ad   : > { %v3732_v15 = vmul.f32 %v6817_v45, %v3731_v14  ;;  %vm3735_vm15 = vweird.f32 %v6817_v45  ;;  %v4330_v60 = vpack.c.b16 %v4316_v6, %v4315_v8  ;;  %v9421_v44 = vadd.f32 %v3399_v27, %v3232_v36 }
 0x2ae   : > { %v9424_v28 = vmul.f32 %v3727_v11, %v9239_v43  ;;  %vm9426_vm3 = vcmp.eq.f32.partialorder %v3738_v0, 8.507059e+37  ;;  %v3741_v56 = vor.u32 1.1754944e-38, %v3740_v16  ;;  %v4137_v13 = vpack.c.bf16 %v9336_v34, %v9336_v34  ;;  %vm3736_vm7 = vmor %vm3734_vm13, %vm3735_vm15 }
 0x2af   : > { %v6821_v52 = vpop.eup %6820  ;;  %v4058_v57 = vrot.slane %v9400_v41, 1  ;;  %v3733_v46 = vadd.f32 %v6817_v45, %v3732_v15  ;;  %4345 = vrot.lane.b32.xlu2 %v4330_v60, %s7067_s21  ;;  %v6326_v50 = vmul.f32 -1.442695, %v9421_v44  ;;  %v4138_v43 = vpack.c.bf16 %v9400_v41, %v9400_v41  ;;  %vm10713_vm13 = vmmov %vm10702_vm14 }
 0x2b0   : > { %v3753_v0 = vand.u32 2147483647, %v9406_v31  ;;  %v3755_v16 = vand.u32 2147483648, %v9406_v31  ;;  %v9441_v22 = vadd.f32 1.0, %v6821_v52  ;;  %v10701_v26 = vrot.slane %v8999_v61, 7  ;;  %vm10716_vm15 = vmmov %vm10713_vm13 }
 0x2b1   : > { %v3737_v23 = vsel %vm3736_vm7, %v6817_v45, %v3733_v46  ;;  %6824 = vpow2.f32 %v6326_v50  ;;  %v4248_v29 = vunpack.c.l.b16 %v4138_v43  ;;  %v4059_v8 = vrot.slane %v9424_v28, 1  ;;  %vm10717_vm7 = vmmov %vm10706_vm6 }
 0x2b2   : > { %v3211_v39 = vpop.f32.mrf.mxu2  ;;  %v9449_v27 = vsel %vm10702_vm14, %v3989_v62, %v10701_v26  ;;  %v6823_v48 = vpop.eup %6822  ;;  %v3742_v36 = vsel %vm9426_vm3, %v3741_v56, %v3737_v23  ;;  %6826 = vrcp.f32 %v9441_v22  ;;  %v4247_v11 = vunpack.c.l.b16 %v4137_v13  ;;  %vm10718_vm14 = vmmov %vm10706_vm6 }
 0x2b3   : > { %v3233_v38 = vadd.f32 %v3211_v39, %v3043_v33  ;;  %v9456_v14 = vmul.f32 %v3742_v36, %v9289_v58  ;;  %v3745_v40 = vmul.f32 %v6823_v48, %v9406_v31  ;;  %v3401_v62 = vpop.f32.mrf.mxu1  ;;  %v9462_v45 = vunpack.c.l.b16 %v4107_v55 }
 0x2b4   : > { %v9464_v6 = vunpack.c.l.b16 %v4108_v30  ;;  %vm3749_vm12 = vweird.f32 %v9406_v31  ;;  %vm9467_vm10 = vcmp.eq.f32.partialorder %v3753_v0, 8.507059e+37  ;;  %v4261_v15 = vpack.c.b16 %v4248_v29, %v4247_v11 }
 0x2b5   : > { %v9471_v60 = vadd.f32 %v3401_v62, %v3233_v38  ;;  %v3746_v58 = vsub.f32 1.0, %v3745_v40  ;;  %vm3750_vm4 = vweird.f32 %v6823_v48  ;;  %v3756_v1 = vor.u32 1.1754944e-38, %v3755_v16 }
 0x2b6   : > { %v3768_v56 = vand.u32 2147483647, %v9441_v22  ;;  %4277 = vrot.lane.b32.xlu0 %v4261_v15, %s7066_s20  ;;  %v4070_v55 = vsel %vm10705_vm11, %v4058_v57, %v4059_v8  ;;  %v4071_v30 = vsel %vm10706_vm6, %v4057_v19, %v4058_v57  ;;  %v4139_v13 = vpack.c.bf16 %v9424_v28, %v9424_v28  ;;  %vm3751_vm8 = vmor %vm3749_vm12, %vm3750_vm4 }
 0x2b7   : > { %v6327_v37 = vmul.f32 -1.442695, %v9471_v60  ;;  %v6825_v52 = vpop.eup %6824  ;;  %v3747_v46 = vmul.f32 %v6823_v48, %v3746_v58  ;;  %vm10707_vm9 = vnez %v10485_v12  ;;  %v4157_v43 = vpack.c.bf16 %v4071_v30, %v4071_v30  ;;  %vm10723_vm6 = vmmov %vm10713_vm13 }
 0x2b8   : > { %v4098_v50 = vsel %vm10707_vm9, %v4070_v55, 0.0  ;;  %v4140_v0 = vpack.c.bf16 %v9456_v14, %v9456_v14  ;;  %v6827_v16 = vpop.eup %6826  ;;  %v9490_v39 = vadd.f32 1.0, %v6825_v52  ;;  %vm10708_vm1 = vnez %v10503_v4 }
 0x2b9   : > { %6828 = vpow2.f32 %v6327_v37  ;;  %v4158_v26 = vpack.c.bf16 %v4098_v50, %v4098_v50  ;;  %v4029_v19 = vsel %vm10708_vm1, %v4020_v24, 0.0  ;;  %v3748_v57 = vadd.f32 %v6823_v48, %v3747_v46 }
 0x2ba   : > { %v3760_v23 = vmul.f32 %v6827_v16, %v9441_v22  ;;  %vm3764_vm0 = vweird.f32 %v9441_v22  ;;  %v3770_v12 = vand.u32 2147483648, %v9441_v22  ;;  %vm9500_vm5 = vcmp.eq.f32.partialorder %v3768_v56, 8.507059e+37 }
 0x2bb   : > { %6830 = vrcp.f32 %v9490_v39  ;;  %v4317_v38 = vunpack.c.l.b16 %v4157_v43  ;;  %v4249_v4 = vunpack.c.l.b16 %v4139_v13  ;;  %v3752_v24 = vsel %vm3751_vm8, %v6823_v48, %v3748_v57  ;;  %vm10726_vm8 = vmmov %vm10723_vm6 }
 0x2bc   : > { %v3761_v36 = vsub.f32 1.0, %v3760_v23  ;;  %v4318_v11 = vunpack.c.l.b16 %v4158_v26  ;;  %v4250_v40 = vunpack.c.l.b16 %v4140_v0  ;;  %v4060_v62 = vrot.slane %v9456_v14, 1 }
 0x2bd   : > { %v3757_v15 = vsel %vm9467_vm10, %v3756_v1, %v3752_v24  ;;  %vm3765_vm2 = vweird.f32 %v6827_v16  ;;  %v4109_v31 = vpack.c.bf16 %v4029_v19, %v4029_v19  ;;  %v4110_v48 = vpack.c.bf16 %v9449_v27, %v9449_v27 }
 0x2be   : > { %v9509_v58 = vmul.f32 %v3757_v15, %v9343_v59  ;;  %v3762_v56 = vmul.f32 %v6827_v16, %v3761_v36  ;;  %v4331_v37 = vpack.c.b16 %v4318_v11, %v4317_v38  ;;  %v4262_v55 = vpack.c.b16 %v4250_v40, %v4249_v4  ;;  %vm3766_vm3 = vmor %vm3764_vm0, %vm3765_vm2 }
 0x2bf   : > { %v6829_v30 = vpop.eup %6828  ;;  %v4206_v13 = vpack.c.b16 %v9464_v6, %v9462_v45  ;;  %v10711_v52 = vrot.slane %v9025_v51, 7  ;;  %v10712_v33 = vrot.slane %v8999_v61, 7  ;;  %v10714_v59 = vrot.slane %v9109_v7, 7  ;;  %vm10727_vm2 = vmmov %vm10717_vm7 }
 0x2c0   : > { %v4061_v27 = vrot.slane %v9509_v58, 1  ;;  %v3763_v43 = vadd.f32 %v6827_v16, %v3762_v56  ;;  %v3771_v0 = vor.u32 1.1754944e-38, %v3770_v12  ;;  %v9530_v26 = vadd.f32 1.0, %v6829_v30  ;;  %4347 = vrot.lane.b32.xlu1 %v4331_v37, %s7067_s21  ;;  %4279 = vrot.lane.b32.xlu2 %v4262_v55, %s7066_s20 }
 0x2c1   : > { %v4018_v1 = vsel %vm10713_vm13, %v10712_v33, %v10711_v52  ;;  %v10715_v46 = vmov %v10711_v52  ;;  %v6831_v61 = vpop.eup %6830  ;;  %v3783_v51 = vand.u32 2147483647, %v9490_v39  ;;  %v3785_v19 = vand.u32 2147483648, %v9490_v39 }
 0x2c2   : > { %v9527_v50 = vsel %vm10716_vm15, %v10715_v46, %v10714_v59  ;;  %v9539_v57 = vunpack.c.l.b16 %v4109_v31  ;;  %v9541_v23 = vunpack.c.l.b16 %v4110_v48  ;;  %v3767_v12 = vsel %vm3766_vm3, %v6827_v16, %v3763_v43 }
 0x2c3   : > { %v3775_v38 = vmul.f32 %v6831_v61, %v9490_v39  ;;  %6832 = vrcp.f32 %v9530_v26  ;;  %v4069_v4 = vsel %vm10717_vm7, %v4059_v8, %v4060_v62  ;;  %v9551_v22 = vmul.f32 %v9281_v42, %v8608_v18 }
 0x2c4   : > { %v3993_v24 = vrot.slane %v9123_v54, 7  ;;  %v3994_v36 = vrot.slane %v9203_v10, 7  ;;  %v3772_v16 = vsel %vm9500_vm5, %v3771_v0, %v3767_v12  ;;  %v4207_v15 = vpack.c.b16 %v9541_v23, %v9539_v57 }
 0x2c5   : > { %v9558_v11 = vmul.f32 %v3772_v16, %v9376_v9  ;;  %v3776_v40 = vsub.f32 1.0, %v3775_v38  ;;  %v4068_v18 = vsel %vm10718_vm14, %v4060_v62, %v4061_v27  ;;  %vm3779_vm12 = vweird.f32 %v9490_v39  ;;  %vm10730_vm14 = vmmov %vm10727_vm2 }
 0x2c6   : > { %vm9567_vm10 = vcmp.eq.f32.partialorder %v3783_v51, 8.507059e+37  ;;  %vm10721_vm4 = vnez %v10491_v20  ;;  %v4159_v9 = vpack.c.bf16 %v4069_v4, %v4069_v4  ;;  %vm3780_vm11 = vweird.f32 %v6831_v61 }
 0x2c7   : > { %v4100_v42 = vsel %vm10721_vm4, %v4068_v18, 0.0  ;;  %v3777_v8 = vmul.f32 %v6831_v61, %v3776_v40  ;;  %v3786_v29 = vor.u32 1.1754944e-38, %v3785_v19  ;;  %v4141_v56 = vpack.c.bf16 %v9509_v58, %v9509_v58  ;;  %vm3781_vm0 = vmor %vm3779_vm12, %vm3780_vm11 }
 0x2c8   : > { %v4160_v31 = vpack.c.bf16 %v4100_v42, %v4100_v42  ;;  %v4142_v62 = vpack.c.bf16 %v9558_v11, %v9558_v11  ;;  %v10722_v37 = vmov %v10714_v59  ;;  %vm10724_vm9 = vnez %v10526_v47 }
 0x2c9   : > { %v4016_v55 = vsel %vm10723_vm6, %v10722_v37, %v3993_v24  ;;  %v4031_v20 = vsel %vm10724_vm9, %v4018_v1, 0.0  ;;  %v6833_v30 = vpop.eup %6832  ;;  %v3778_v48 = vadd.f32 %v6831_v61, %v3777_v8  ;;  %v4319_v52 = vunpack.c.l.b16 %v4159_v9 }
 0x2ca   : > { %v4320_v33 = vunpack.c.l.b16 %v4160_v31  ;;  %vm10725_vm1 = vnez %v10534_v25  ;;  %v4062_v46 = vrot.slane %v9558_v11, 1  ;;  %v3790_v7 = vmul.f32 %v6833_v30, %v9530_v26 }
 0x2cb   : > { %v4033_v59 = vsel %vm10725_vm1, %v4016_v55, 0.0  ;;  %v4251_v43 = vunpack.c.l.b16 %v4141_v56  ;;  %v4252_v0 = vunpack.c.l.b16 %v4142_v62  ;;  %v3782_v51 = vsel %vm3781_vm0, %v6831_v61, %v3778_v48  ;;  %vm10740_vm1 = vmmov %vm10727_vm2 }
 0x2cc   : > { %v4332_v19 = vpack.c.b16 %v4320_v33, %v4319_v52  ;;  %v4113_v47 = vpack.c.bf16 %v4033_v59, %v4033_v59  ;;  %v4112_v1 = vpack.c.bf16 %v9527_v50, %v9527_v50  ;;  %v3787_v12 = vsel %vm9567_vm10, %v3786_v29, %v3782_v51  ;;  %v9610_v42 = vpop.permute.xlu2 %4269  ;;  %vm10733_vm10 = vmmov %vm10723_vm6 }
 0x2cd   : > { %v3791_v25 = vsub.f32 1.0, %v3790_v7  ;;  %v4263_v38 = vpack.c.b16 %v4252_v0, %v4251_v43  ;;  %v4015_v39 = vsel %vm10726_vm8, %v3993_v24, %v3994_v36  ;;  %v3822_v4 = vmul.f32 %v3787_v12, %v9421_v44  ;;  %v10728_v24 = vld [vmem:[#allocation8_spill] sm:$0xff]  ;;  %v10731_v7 = vld [vmem:[#allocation10_spill] sm:$0xff] }
 0x2ce   : > { %v3798_v16 = vand.u32 2147483647, %v9530_v26  ;;  %v3800_v61 = vand.u32 2147483648, %v9530_v26  ;;  %4349 = vrot.lane.b32.xlu0 %v4332_v19, %s7067_s21  ;;  %v4114_v40 = vpack.c.bf16 %v4015_v39, %v4015_v39  ;;  %vm3795_vm5 = vweird.f32 %v6833_v30 }
 0x2cf   : > { %v3792_v50 = vmul.f32 %v6833_v30, %v3791_v25  ;;  %4281 = vrot.lane.b32.xlu1 %v4263_v38, %s7066_s20  ;;  %v4067_v18 = vsel %vm10727_vm2, %v4061_v27, %v4062_v46  ;;  %v4111_v54 = vpack.c.bf16 %v4031_v20, %v4031_v20  ;;  %vm10729_vm13 = vcmp.eq.s32.totalorder %v10728_v24, 1  ;;  %v9621_v27 = vpop.permute.xlu1 %4335 }
 0x2d0   : > { %v9608_v44 = vsel %vm10729_vm13, %v3822_v4, 0.0  ;;  %v9612_v9 = vunpack.c.l.b16 %v4113_v47  ;;  %v9614_v8 = vunpack.c.l.b16 %v4114_v40  ;;  %v9616_v29 = vunpack.c.l.b16 %v4112_v1  ;;  %vm10735_vm4 = vmmov %vm10729_vm13 }
 0x2d1   : > { %v3995_v31 = vrot.slane %v9234_v49, 7  ;;  %v4063_v56 = vrot.slane %v9608_v44, 1  ;;  %v3793_v62 = vadd.f32 %v6833_v30, %v3792_v50  ;;  %vm3794_vm15 = vweird.f32 %v9530_v26  ;;  %vm10748_vm13 = vmmov %vm10723_vm6 }
 0x2d2   : > { %v5318_v37 = vpack.c.bf16 %v9551_v22, %v9551_v22  ;;  %vm3796_vm3 = vmor %vm3794_vm15, %vm3795_vm5  ;;  %v3801_v55 = vor.u32 1.1754944e-38, %v3800_v61  ;;  %v4209_v20 = vpack.c.b16 %v9614_v8, %v9612_v9  ;;  %v9628_v48 = vunpack.c.l.b16 %v4111_v54  ;;  %v10736_v61 = vld [vmem:[#allocation12_spill] sm:$0xff] }
 0x2d3   : > { %v3797_v52 = vsel %vm3796_vm3, %v6833_v30, %v3793_v62  ;;  %vm3799_vm7 = vcmp.eq.f32.partialorder %v3798_v16, 8.507059e+37  ;;  %v4066_v49 = vsel %vm10730_vm14, %v4062_v46, %v4063_v56  ;;  %v4161_v33 = vpack.c.bf16 %v4067_v18, %v4067_v18  ;;  %vm10745_vm5 = vmmov %vm10740_vm1 }
 0x2d4   : > { %v3802_v26 = vsel %vm3799_vm7, %v3801_v55, %v3797_v52  ;;  %v4106_v59 = vpack.c.bf16 %v9217_v63, %v9217_v63  ;;  %vm10732_vm12 = vnez %v10731_v7  ;;  %v4208_v43 = vpack.c.b16 %v9616_v29, %v9628_v48  ;;  %v10746_v7 = vld [vmem:[#allocation11_spill] sm:$0xff] }
 0x2d5   : > { %v4102_v22 = vsel %vm10732_vm12, %v4066_v49, 0.0  ;;  %v3823_v0 = vmul.f32 %v3802_v26, %v9471_v60  ;;  %v4143_v30 = vpack.c.bf16 %v9608_v44, %v9608_v44  ;;  %v4014_v46 = vsel %vm10733_vm10, %v3994_v36, %v3995_v31  ;;  %vm10753_vm12 = vmmov %vm10723_vm6 }
 0x2d6   : > { %v4162_v51 = vpack.c.bf16 %v4102_v22, %v4102_v22  ;;  %v10734_v63 = vpack.c.bf16 %v9113_v17, %v9113_v17  ;;  %v5390_v47 = vunpack.c.l.b16 %v5318_v37  ;;  %v4321_v12 = vunpack.c.l.b16 %v4161_v33  ;;  %v4338_v54 = vpop.permute.xlu2 %4337  ;;  %v10741_v37 = vld [vmem:[#allocation9_spill] sm:$0xff] }
 0x2d7   : > { %v9650_v1 = vsel %vm10735_vm4, %v3823_v0, 0.0  ;;  %v4186_v39 = vunpack.c.l.b16 %v4106_v59  ;;  %v3996_v36 = vrot.slane %v9305_v2, 7  ;;  %v4268_v4 = vpop.permute.xlu1 %4267  ;;  %v4253_v16 = vunpack.c.l.b16 %v4143_v30 }
 0x2d8   : > { %v5389_v19 = vunpack.c.l.b16 %v10734_v63  ;;  %v4322_v60 = vunpack.c.l.b16 %v4162_v51  ;;  %v4004_v25 = vrot.slane %v9650_v1, 7  ;;  %v4064_v38 = vrot.slane %v9650_v1, 1 }
 0x2d9   : > { %v4144_v10 = vpack.c.bf16 %v9650_v1, %v9650_v1  ;;  %vm10737_vm11 = vnez %v10736_v61  ;;  %v10738_v50 = vrot.slane %v8778_v35, 7  ;;  %vm10739_vm9 = vcmask 31744  }
 0x2da   : > { %v4333_v17 = vpack.c.b16 %v4322_v60, %v4321_v12  ;;  %v4035_v40 = vsel %vm10737_vm11, %v4014_v46, 0.0  ;;  %v4360_v24 = vsel %vm10739_vm9, %v4206_v13, %v4268_v4  ;;  %v4065_v62 = vsel %vm10740_vm1, %v4063_v56, %v4064_v38  ;;  %v4266_v4 = vpop.permute.xlu0 %4265  ;;  %vm10751_vm7 = vmmov %vm10739_vm9 }
 0x2db   : > { %v4024_v18 = vsel %vm10723_vm6, %v4004_v25, %v10738_v50  ;;  %v4254_v2 = vunpack.c.l.b16 %v4144_v10  ;;  %vm10742_vm0 = vnez %v10741_v37  ;;  %vm10743_vm8 = vcmask 64512   ;;  %vm10761_vm9 = vmmov %vm10753_vm12 }
 0x2dc   : > { %v4025_v55 = vsel %vm10742_vm0, %v4024_v18, 0.0  ;;  %v4388_v52 = vsel %vm10743_vm8, %v4360_v24, %v4338_v54  ;;  %4351 = vrot.lane.b32.xlu2 %v4333_v17, %s7067_s21  ;;  %v10744_v49 = vrot.slane %v8778_v35, 1  ;;  %v4163_v26 = vpack.c.bf16 %v4065_v62, %v4065_v62  ;;  %vm10752_vm14 = vmmov %vm10743_vm8  ;;  %v10757_v62 = vld [vmem:[#allocation13_spill] sm:$0xff] }
 0x2dd   : > { %v4105_v45 = vpack.c.bf16 %v4025_v55, %v4025_v55  ;;  %v4417_v6 = vunpack.c.l.b16 %v4388_v52  ;;  %v4418_v13 = vunpack.c.h.b16 %v4388_v52  ;;  %v4264_v59 = vpack.c.b16 %v4254_v2, %v4253_v16  ;;  %v1769_v55 = vpop.f32.mrf.mxu3  ;;  %vm10763_vm0 = vmmov %vm10761_vm9 }
 0x2de   : > { %v4084_v33 = vsel %vm10745_vm5, %v4064_v38, %v10744_v49  ;;  %vm10747_vm2 = vnez %v10746_v7  ;;  %v4323_v22 = vunpack.c.l.b16 %v4163_v26  ;;  %v4115_v0 = vpack.c.bf16 %v4035_v40, %v4035_v40  ;;  %vm10764_vm8 = vmmov %vm10751_vm7 }
 0x2df   : > { %v4104_v56 = vsel %vm10747_vm2, %v4084_v33, 0.0  ;;  %v4013_v51 = vsel %vm10748_vm13, %v3995_v31, %v3996_v36  ;;  %v4185_v30 = vunpack.c.l.b16 %v4105_v45  ;;  %v4437_v46 = vpack.c.b16 %v4417_v6, %v4417_v6  ;;  %4283 = vrot.lane.b32.xlu0 %v4264_v59, %s7066_s20  ;;  %vm10765_vm5 = vmmov %vm10752_vm14 }
 0x2e0   : > { %v4438_v63 = vpack.c.b16 %v4418_v13, %v4418_v13  ;;  %v4164_v35 = vpack.c.bf16 %v4104_v56, %v4104_v56  ;;  %v4116_v12 = vpack.c.bf16 %v4013_v51, %v4013_v51  ;;  %vm10749_vm15 = vcmask 93184  }
 0x2e1   : > { %v4205_v60 = vpack.c.b16 %v4186_v39, %v4185_v30  ;;  %4477 = vst.msk [vmem:[#allocation3 + $0x8] sm:$0xf] %vm10749_vm15, %v4437_v46  ;;  %v3997_v10 = vrot.slane %v9336_v34, 7  ;;  %vm10750_vm3 = vmmov %vm10749_vm15  ;;  %v5405_v17 = vpack.c.b16 %v5390_v47, %v5389_v19  ;;  %v9687_v16 = vunpack.c.l.b16 %v4115_v0  ;;  %v10766_v46 = vld [vmem:[#allocation14_spill] sm:$0xff] }
 0x2e2   : > { %v4324_v38 = vunpack.c.l.b16 %v4164_v35  ;;  %4478 = vst.msk [vmem:[#allocation3 + $0xc] sm:$0xf] %vm10750_vm3, %v4438_v63  ;;  %v9689_v31 = vunpack.c.l.b16 %v4116_v12  ;;  %v10754_v24 = vpack.c.b16 %v8730_v3, %v8656_v53  ;;  %vm10755_vm10 = vmmov %vm10750_vm3  ;;  %v3998_v2 = vrot.slane %v9400_v41, 7  ;;  %v9717_v53 = vld [vmem:[%s10343_s9] ss:$0 sm:$0xff] }
 0x2e3   : > { %v4357_v61 = vsel %vm10751_vm7, %v4205_v60, %v4266_v4  ;;  %v4012_v19 = vsel %vm10753_vm12, %v3996_v36, %v3997_v10  ;;  %vm10756_vm4 = vmmov %vm10750_vm3  ;;  %vm10758_vm11 = vnez %v10757_v62  ;;  %vm10759_vm6 = vcmask 97280  }
 0x2e4   : > { %v4334_v40 = vpack.c.b16 %v4324_v38, %v4323_v22  ;;  %v4386_v50 = vsel %vm10752_vm14, %v4357_v61, %v9621_v27  ;;  %5413 = vrot.lane.b32.xlu2 %v5405_v17, %s7066_s20  ;;  %v4210_v39 = vpack.c.b16 %v9689_v31, %v9687_v16  ;;  %v4037_v37 = vsel %vm10758_vm11, %v4012_v19, 0.0  ;;  %vm10762_vm1 = vmmov %vm10759_vm6 }
 0x2e5   : > { %v4415_v34 = vunpack.c.l.b16 %v4386_v50  ;;  %v4416_v18 = vunpack.c.h.b16 %v4386_v50  ;;  %v10760_v36 = vpack.c.b16 %v8864_v32, %v8860_v5  ;;  %v4117_v3 = vpack.c.bf16 %v4037_v37, %v4037_v37  ;;  %v1771_v60 = vpop.f32.mrf.mxu3  ;;  %vm10768_vm13 = vmmov %vm10750_vm3 }
 0x2e6   : > { %4353 = vrot.lane.b32.xlu1 %v4334_v40, %s7067_s21  ;;  %v9720_v41 = vadd.f32 %v9717_v53, %v1769_v55  ;;  %v4011_v52 = vsel %vm10761_vm9, %v3997_v10, %v3998_v2  ;;  %v3999_v32 = vrot.slane %v9424_v28, 7  ;;  %v4363_v59 = vsel %vm10764_vm8, %v4207_v15, %v9610_v42  ;;  %vm10769_vm15 = vmmov %vm10750_vm3 }
 0x2e7   : > { %v4435_v47 = vpack.c.b16 %v4415_v34, %v4415_v34  ;;  %v4436_v54 = vpack.c.b16 %v4416_v18, %v4416_v18  ;;  %5415 = vrot.lane.b32.xlu0 %v10754_v24, %s7066_s20  ;;  %v4118_v49 = vpack.c.bf16 %v4011_v52, %v4011_v52  ;;  %v9725_v45 = vunpack.c.l.b16 %v4117_v3  ;;  %vm10770_vm3 = vmmov %vm10763_vm0 }
 0x2e8   : > { %v6132_v33 = vmul.f32 -1.442695, %v9720_v41  ;;  %v4010_v13 = vsel %vm10763_vm0, %v3998_v2, %v3999_v32  ;;  %v4000_v30 = vrot.slane %v9456_v14, 7  ;;  %vm10767_vm2 = vnez %v10766_v46  ;;  %vm10771_vm7 = vmmov %vm10762_vm1 }
 0x2e9   : > { %4475 = vst.msk [vmem:[#allocation3] sm:$0xf] %vm10755_vm10, %v4435_v47  ;;  %v6566_v27 = vld [vmem:[#allocation3 + $0x8] sm:$0xff]  ;;  %v9727_v5 = vunpack.c.l.b16 %v4118_v49  ;;  %v4039_v63 = vsel %vm10767_vm2, %v4010_v13, 0.0  ;;  %v9746_v57 = vadd.f32 %v9717_v53, %v1771_v60  ;;  %v4001_v61 = vrot.slane %v9509_v58, 7  ;;  %vm10772_vm14 = vmmov %vm10764_vm8 }
 0x2ea   : > { %4476 = vst.msk [vmem:[#allocation3 + $0x4] sm:$0xf] %vm10756_vm4, %v4436_v54  ;;  %6410 = vmatmul.msk.bf16.vlgmr.msra.gmra.mxu0 %vm10759_vm6, %v6566_v27  ;;  %6834 = vpow2.f32 %v6132_v33  ;;  %v4119_v23 = vpack.c.bf16 %v4039_v63, %v4039_v63  ;;  %v4009_v15 = vsel %vm10770_vm3, %v3999_v32, %v4000_v30  ;;  %v6558_v10 = vld [vmem:[#allocation3 + $0x8] sm:$0xff]  ;;  %vm10773_vm12 = vmmov %vm10765_vm5  ;;  %v4002_v49 = vrot.slane %v9558_v11, 7 }
 0x2eb   : > { %v4211_v6 = vpack.c.b16 %v9727_v5, %v9725_v45  ;;  %v6133_v14 = vmul.f32 -1.442695, %v9746_v57  ;;  %v4120_v42 = vpack.c.bf16 %v4009_v15, %v4009_v15  ;;  %vm10774_vm10 = vmmov %vm10763_vm0 }
 0x2ec   : > { %v9752_v4 = vunpack.c.l.b16 %v4119_v23  ;;  %v4008_v58 = vsel %vm10774_vm10, %v4000_v30, %v4001_v61  ;;  %vm10775_vm4 = vmmov %vm10762_vm1 }
 0x2ed   : > { %v9754_v17 = vunpack.c.l.b16 %v4120_v42  ;;  %v1774_v2 = vpop.f32.mrf.mxu3  ;;  %vm10776_vm11 = vmmov %vm10762_vm1 }
 0x2ee   : > { %5417 = vrot.lane.b32.xlu1 %v10760_v36, %s7066_s20  ;;  %v9770_v29 = vadd.f32 %v9717_v53, %v1774_v2  ;;  %vm10779_vm0 = vmmov %vm10768_vm13 }
 0x2ef   : > { %v4212_v34 = vpack.c.b16 %v9754_v17, %v9752_v4  ;;  %vm10780_vm8 = vmmov %vm10779_vm0 }
 0x2f0   : > { %v6835_v56 = vpop.eup %6834  ;;  %v6134_v52 = vmul.f32 -1.442695, %v9770_v29  ;;  %vm10783_vm2 = vmmov %vm10770_vm3 }
 0x2f1   : > { %v6557_v26 = vld [vmem:[#allocation3] sm:$0xff]  ;;  %v1848_v51 = vadd.f32 1.0, %v6835_v56 }
 0x2f2   : > { %6364 = vmatmul.msk.bf16.vlgmr.msrb.gmra.mxu3 %vm10762_vm1, %v6557_v26  ;;  %v4340_v7 = vpop.permute.xlu0 %4339  ;;  %v10777_v26 = vld [vmem:[#allocation15_spill] sm:$0xff] }
 0x2f3   : > { %v4390_v22 = vsel %vm10765_vm5, %v4363_v59, %v4340_v7  ;;  %6836 = vrcp.f32 %v1848_v51  ;;  %vm1953_vm6 = vweird.f32 %v1848_v51  ;;  %v1959_v33 = vand.u32 2147483648, %v1848_v51 }
 0x2f4   : > { %v4419_v28 = vunpack.c.l.b16 %v4390_v22  ;;  %v4420_v0 = vunpack.c.h.b16 %v4390_v22  ;;  %6838 = vpow2.f32 %v6133_v14  ;;  %vm10778_vm1 = vnez %v10777_v26  ;;  %v4274_v14 = vpop.permute.xlu2 %4273 }
 0x2f5   : > { %v4041_v32 = vsel %vm10778_vm1, %v4008_v58, 0.0  ;;  %v1957_v59 = vand.u32 2147483647, %v1848_v51  ;;  %v1960_v22 = vor.u32 1.1754944e-38, %v1959_v33  ;;  %v1776_v11 = vpop.f32.mrf.mxu3  ;;  %vm10792_vm1 = vmmov %vm10779_vm0 }
 0x2f6   : > { %v4439_v35 = vpack.c.b16 %v4419_v28, %v4419_v28  ;;  %v4440_v12 = vpack.c.b16 %v4420_v0, %v4420_v0  ;;  %v4121_v56 = vpack.c.bf16 %v4041_v32, %v4041_v32  ;;  %v4007_v28 = vsel %vm10783_vm2, %v4001_v61, %v4002_v49 }
 0x2f7   : > { %v9788_v30 = vadd.f32 %v9717_v53, %v1776_v11  ;;  %v4122_v46 = vpack.c.bf16 %v4007_v28, %v4007_v28 }
 0x2f8   : > { %4479 = vst.msk [vmem:[#allocation3 + $0x10] sm:$0xf] %vm10768_vm13, %v4439_v35  ;;  %vm1958_vm13 = vcmp.eq.f32.partialorder %v1957_v59, 8.507059e+37  ;;  %v9791_v23 = vunpack.c.l.b16 %v4121_v56 }
 0x2f9   : > { %4480 = vst.msk [vmem:[#allocation3 + $0x14] sm:$0xf] %vm10769_vm15, %v4440_v12  ;;  %v6837_v38 = vpop.eup %6836  ;;  %v6135_v60 = vmul.f32 -1.442695, %v9788_v30  ;;  %v9793_v15 = vunpack.c.l.b16 %v4122_v46 }
 0x2fa   : > { %v4272_v40 = vpop.permute.xlu0 %4271  ;;  %v1949_v50 = vmul.f32 %v6837_v38, %v1848_v51  ;;  %v6839_v62 = vpop.eup %6838  ;;  %vm1954_vm9 = vweird.f32 %v6837_v38 }
 0x2fb   : > { %v4366_v19 = vsel %vm10772_vm14, %v4208_v43, %v4272_v40  ;;  %v1849_v48 = vadd.f32 1.0, %v6839_v62  ;;  %vm9779_vm5 = vmor %vm1953_vm6, %vm1954_vm9 }
 0x2fc   : > { %v1950_v18 = vsub.f32 1.0, %v1949_v50  ;;  %vm10791_vm9 = vmmov %vm10783_vm2 }
 0x2fd   : > { %6840 = vrcp.f32 %v1849_v48  ;;  %vm1968_vm15 = vweird.f32 %v1849_v48 }
 0x2fe   : > { %v1951_v55 = vmul.f32 %v6837_v38, %v1950_v18  ;;  %6842 = vpow2.f32 %v6134_v52 }
 0x2ff   : > { %6844 = vpow2.f32 %v6135_v60 }
 0x300   : > { %v6567_v47 = vld [vmem:[#allocation3 + $0x10] sm:$0xff]  ;;  %v1952_v13 = vadd.f32 %v6837_v38, %v1951_v55 }
 0x301   : > { %v6575_v54 = vld [vmem:[#allocation3 + $0x10] sm:$0xff]  ;;  %v4342_v24 = vpop.permute.xlu1 %4341  ;;  %6411 = vmatmul.msk.bf16.gmra.mxu0 %vm10775_vm4, %v6567_v47  ;;  %v4003_v47 = vrot.slane %v9608_v44, 7 }
 0x302   : > { %6365 = vmatmul.msk.bf16.gmra.mxu3 %vm10771_vm7, %v6558_v10  ;;  %v4392_v27 = vsel %vm10773_vm12, %v4366_v19, %v4342_v24  ;;  %6456 = vmatmul.msk.bf16.vlgmr.msra.gmra.mxu2 %vm10776_vm11, %v6575_v54  ;;  %v1956_v0 = vsel %vm9779_vm5, %v6837_v38, %v1952_v13  ;;  %v6559_v12 = vld [vmem:[#allocation3 + $0x10] sm:$0xff]  ;;  %v1972_v10 = vand.u32 2147483647, %v1849_v48  ;;  %v1974_v38 = vand.u32 2147483648, %v1849_v48  ;;  %vm10784_vm7 = vmmov %vm10775_vm4 }
 0x303   : > { %v4421_v37 = vunpack.c.l.b16 %v4392_v27  ;;  %v4422_v36 = vunpack.c.h.b16 %v4392_v27  ;;  %v6841_v63 = vpop.eup %6840  ;;  %v1961_v42 = vsel %vm1958_vm13, %v1960_v22, %v1956_v0  ;;  %v4213_v19 = vpack.c.b16 %v9793_v15, %v9791_v23  ;;  %vm10789_vm11 = vmmov %vm10784_vm7 }
 0x304   : > { %v6843_v51 = vpop.eup %6842  ;;  %v1964_v35 = vmul.f32 %v6841_v63, %v1849_v48  ;;  %vm1969_vm3 = vweird.f32 %v6841_v63  ;;  %v4369_v54 = vsel %vm10772_vm14, %v4209_v20, %v4274_v14  ;;  %v2104_v2 = vmul.f32 %v1961_v42, %v9720_v41  ;;  %vm10790_vm6 = vmmov %vm10784_vm7 }
 0x305   : > { %v4441_v43 = vpack.c.b16 %v4421_v37, %v4421_v37  ;;  %v4442_v3 = vpack.c.b16 %v4422_v36, %v4422_v36  ;;  %v1850_v61 = vadd.f32 1.0, %v6843_v51  ;;  %vm9806_vm10 = vmor %vm1968_vm15, %vm1969_vm3  ;;  %vm9810_vm4 = vcmp.eq.f32.partialorder %v1972_v10, 8.507059e+37  ;;  %v1779_v36 = vpop.f32.mrf.mxu3  ;;  %v6845_v48 = vpop.eup %6844 }
 0x306   : > { %v1965_v18 = vsub.f32 1.0, %v1964_v35  ;;  %v1975_v44 = vor.u32 1.1754944e-38, %v1974_v38  ;;  %v9817_v41 = vadd.f32 %v9717_v53, %v1779_v36  ;;  %v4006_v55 = vsel %vm10791_vm9, %v4002_v49, %v4003_v47  ;;  %vm10795_vm13 = vmmov %vm10772_vm14 }
 0x307   : > { %4481 = vst.msk [vmem:[#allocation3 + $0x18] sm:$0xf] %vm10779_vm0, %v4441_v43  ;;  %6846 = vrcp.f32 %v1850_v61  ;;  %v9826_v13 = vadd.f32 1.0, %v6845_v48  ;;  %v5323_v59 = vpack.c.bf16 %v2104_v2, %v2104_v2  ;;  %v1987_v56 = vand.u32 2147483647, %v1850_v61  ;;  %vm10796_vm15 = vmmov %vm10773_vm12 }
 0x308   : > { %4482 = vst.msk [vmem:[#allocation3 + $0x1c] sm:$0xf] %vm10780_vm8, %v4442_v3  ;;  %v1966_v27 = vmul.f32 %v6841_v63, %v1965_v18  ;;  %v6136_v33 = vmul.f32 -1.442695, %v9817_v41  ;;  %v1989_v22 = vand.u32 2147483648, %v1850_v61  ;;  %vm1983_vm8 = vweird.f32 %v1850_v61  ;;  %vm10801_vm14 = vmmov %vm10791_vm9 }
 0x309   : > { %v4346_v35 = vpop.permute.xlu2 %4345  ;;  %v4005_v16 = vsel %vm10801_vm14, %v4003_v47, %v4004_v25  ;;  %vm10805_vm9 = vcmask 1043456   ;;  %vm10811_vm14 = vcmask 31744  }
 0x30a   : > { %v1967_v20 = vadd.f32 %v6841_v63, %v1966_v27  ;;  %6848 = vpow2.f32 %v6136_v33  ;;  %v4124_v62 = vpack.c.bf16 %v4005_v16, %v4005_v16 }
 0x30b   : > { %6850 = vrcp.f32 %v9826_v13 }
 0x30c   : > { %v1971_v52 = vsel %vm9806_vm10, %v6841_v63, %v1967_v20  ;;  %v10793_v63 = vld [vmem:[#allocation16_spill] sm:$0xff]  ;;  %vm1998_vm10 = vweird.f32 %v9826_v13  ;;  %v9875_v33 = vunpack.c.l.b16 %v4124_v62 }
 0x30d   : > { %v6847_v26 = vpop.eup %6846  ;;  %v1976_v32 = vsel %vm9810_vm4, %v1975_v44, %v1971_v52  ;;  %v1781_v46 = vpop.f32.mrf.mxu3  ;;  %vm10794_vm2 = vnez %v10793_v63  ;;  %vm10803_vm4 = vmmov %vm10779_vm0 }
 0x30e   : > { %v2105_v7 = vmul.f32 %v1976_v32, %v9746_v57  ;;  %v1979_v49 = vmul.f32 %v6847_v26, %v1850_v61  ;;  %vm1984_vm5 = vweird.f32 %v6847_v26  ;;  %v4043_v51 = vsel %vm10794_vm2, %v4006_v55, 0.0 }
 0x30f   : > { %v6568_v40 = vld [vmem:[#allocation3 + $0x18] sm:$0xff]  ;;  %v9839_v14 = vadd.f32 %v9717_v53, %v1781_v46  ;;  %vm9842_vm3 = vmor %vm1983_vm8, %vm1984_vm5  ;;  %v1990_v61 = vor.u32 1.1754944e-38, %v1989_v22  ;;  %v2002_v55 = vand.u32 2147483647, %v9826_v13 }
 0x310   : > { %v6576_v50 = vld [vmem:[#allocation3 + $0x18] sm:$0xff]  ;;  %v1980_v11 = vsub.f32 1.0, %v1979_v49  ;;  %v5324_v28 = vpack.c.bf16 %v2105_v7, %v2105_v7  ;;  %v6849_v31 = vpop.eup %6848 }
 0x311   : > { %v4344_v24 = vpop.permute.xlu0 %4343  ;;  %6412 = vmatmul.msk.bf16.gmra.mxu0 %vm10789_vm11, %v6568_v40  ;;  %v6560_v18 = vld [vmem:[#allocation3 + $0x18] sm:$0xff]  ;;  %v9854_v2 = vadd.f32 1.0, %v6849_v31  ;;  %vm2003_vm5 = vcmp.eq.f32.partialorder %v2002_v55, 8.507059e+37 }
 0x312   : > { %6366 = vmatmul.msk.bf16.gmra.mxu3 %vm10784_vm7, %v6559_v12  ;;  %v4394_v58 = vsel %vm10773_vm12, %v4369_v54, %v4344_v24  ;;  %6457 = vmatmul.msk.bf16.gmra.mxu2 %vm10790_vm6, %v6576_v50  ;;  %v5395_v12 = vunpack.c.l.b16 %v5323_v59  ;;  %v1981_v60 = vmul.f32 %v6847_v26, %v1980_v11  ;;  %vm9846_vm7 = vcmp.eq.f32.partialorder %v1987_v56, 8.507059e+37  ;;  %v6851_v24 = vpop.eup %6850  ;;  %vm10802_vm12 = vmmov %vm10790_vm6 }
 0x313   : > { %v4423_v9 = vunpack.c.l.b16 %v4394_v58  ;;  %v4424_v8 = vunpack.c.h.b16 %v4394_v58  ;;  %v4123_v54 = vpack.c.bf16 %v4043_v51, %v4043_v51  ;;  %v5396_v27 = vunpack.c.l.b16 %v5324_v28  ;;  %vm10804_vm6 = vmmov %vm10779_vm0 }
 0x314   : > { %v1982_v50 = vadd.f32 %v6847_v26, %v1981_v60  ;;  %v6137_v58 = vmul.f32 -1.442695, %v9839_v14  ;;  %v1994_v47 = vmul.f32 %v6851_v24, %v9826_v13  ;;  %6852 = vrcp.f32 %v9854_v2 }
 0x315   : > { %v4443_v43 = vpack.c.b16 %v4423_v9, %v4423_v9  ;;  %v4444_v3 = vpack.c.b16 %v4424_v8, %v4424_v8  ;;  %v2004_v9 = vand.u32 2147483648, %v9826_v13  ;;  %v5453_v8 = vld [vmem:[%s10341_s7] sm:$0xf]  ;;  %vm1999_vm11 = vweird.f32 %v6851_v24  ;;  %v1784_v52 = vpop.f32.mrf.mxu3 }
 0x316   : > { %v1986_v1 = vsel %vm9842_vm3, %v6847_v26, %v1982_v50  ;;  %v1995_v20 = vsub.f32 1.0, %v1994_v47  ;;  %v9871_v48 = vunpack.c.l.b16 %v4123_v54  ;;  %6854 = vpow2.f32 %v6137_v58  ;;  %vm2000_vm8 = vmor %vm1998_vm10, %vm1999_vm11 }
 0x317   : > { %4483 = vst.msk [vmem:[#allocation3 + $0x20] sm:$0xf] %vm10792_vm1, %v4443_v43  ;;  %v1991_v36 = vsel %vm9846_vm7, %v1990_v61, %v1986_v1  ;;  %v5475_v43 = vsel %vm10805_vm9, %v5453_v8, 0  ;;  %vm10806_vm1 = vmmov %vm10802_vm12  ;;  %v2005_v59 = vor.u32 1.1754944e-38, %v2004_v9  ;;  %v9884_v7 = vadd.f32 %v9717_v53, %v1784_v52 }
 0x318   : > { %4484 = vst.msk [vmem:[#allocation3 + $0x24] sm:$0xf] %vm10779_vm0, %v4444_v3  ;;  %v5408_v3 = vpack.c.b16 %v5396_v27, %v5395_v12  ;;  %v2106_v26 = vmul.f32 %v1991_v36, %v9770_v29  ;;  %vm10807_vm0 = vmmov %vm10806_vm1  ;;  %v1996_v32 = vmul.f32 %v6851_v24, %v1995_v20  ;;  %5484 = vmatpush.bf16.msra.mxu3 %v5475_v43  ;;  %vm2013_vm2 = vweird.f32 %v9854_v2 }
 0x319   : > { %v4214_v49 = vpack.c.b16 %v9875_v33, %v9871_v48  ;;  %v6138_v22 = vmul.f32 -1.442695, %v9884_v7  ;;  %v2017_v12 = vand.u32 2147483647, %v9854_v2  ;;  %vm10810_vm7 = vmmov %vm10807_vm0  ;;  %vm10815_vm9 = vcmask 93184  }
 0x31a   : > { %v4276_v0 = vpop.permute.xlu1 %4275  ;;  %5419 = vrot.lane.b32.xlu2 %v5408_v3, %s7066_s20  ;;  %v1997_v56 = vadd.f32 %v6851_v24, %v1996_v32  ;;  %v6853_v29 = vpop.eup %6852  ;;  %v5325_v11 = vpack.c.bf16 %v2106_v26, %v2106_v26  ;;  %vm10813_vm10 = vmmov %vm10807_vm0 }
 0x31b   : > { %v4372_v57 = vsel %vm10795_vm13, %v4210_v39, %v4276_v0  ;;  %v2009_v13 = vmul.f32 %v6853_v29, %v9854_v2  ;;  %6856 = vpow2.f32 %v6138_v22  ;;  %vm2014_vm13 = vweird.f32 %v6853_v29 }
 0x31c   : > { %v4396_v42 = vsel %vm10796_vm15, %v4372_v57, %v4346_v35  ;;  %v2001_v28 = vsel %vm2000_vm8, %v6851_v24, %v1997_v56  ;;  %v6855_v0 = vpop.eup %6854  ;;  %v2019_v57 = vand.u32 2147483648, %v9854_v2  ;;  %vm9894_vm15 = vmor %vm2013_vm2, %vm2014_vm13  ;;  %vm2018_vm3 = vcmp.eq.f32.partialorder %v2017_v12, 8.507059e+37 }
 0x31d   : > { %v4425_v39 = vunpack.c.l.b16 %v4396_v42  ;;  %v4426_v40 = vunpack.c.h.b16 %v4396_v42  ;;  %v2006_v46 = vsel %vm2003_vm5, %v2005_v59, %v2001_v28  ;;  %v2010_v51 = vsub.f32 1.0, %v2009_v13  ;;  %v1786_v60 = vpop.f32.mrf.mxu3  ;;  %vm10820_vm8 = vmmov %vm10815_vm9 }
 0x31e   : > { %v2107_v63 = vmul.f32 %v2006_v46, %v9788_v30  ;;  %v1853_v35 = vadd.f32 1.0, %v6855_v0  ;;  %v5397_v42 = vunpack.c.l.b16 %v5325_v11  ;;  %v9899_v16 = vadd.f32 %v9717_v53, %v1786_v60  ;;  %vm10821_vm13 = vmmov %vm10811_vm14 }
 0x31f   : > { %v4445_v37 = vpack.c.b16 %v4425_v39, %v4425_v39  ;;  %v4446_v44 = vpack.c.b16 %v4426_v40, %v4426_v40  ;;  %v6569_v21 = vld [vmem:[#allocation3 + $0x20] sm:$0xff]  ;;  %v2011_v38 = vmul.f32 %v6853_v29, %v2010_v51 }
 0x320   : > { %v6577_v25 = vld [vmem:[#allocation3 + $0x20] sm:$0xff]  ;;  %v5326_v10 = vpack.c.bf16 %v2107_v63, %v2107_v63  ;;  %6858 = vrcp.f32 %v1853_v35  ;;  %v6139_v54 = vmul.f32 -1.442695, %v9899_v16  ;;  %v2032_v45 = vand.u32 2147483647, %v1853_v35 }
 0x321   : > { %4485 = vst.msk [vmem:[#allocation3 + $0x28] sm:$0xf] %vm10803_vm4, %v4445_v37  ;;  %6413 = vmatmul.msk.bf16.gmra.mxu0 %vm10806_vm1, %v6569_v21  ;;  %v2012_v31 = vadd.f32 %v6853_v29, %v2011_v38  ;;  %v6561_v39 = vld [vmem:[#allocation3 + $0x20] sm:$0xff]  ;;  %v6857_v40 = vpop.eup %6856  ;;  %vm10814_vm4 = vmmov %vm10807_vm0  ;;  %v2034_v5 = vand.u32 2147483648, %v1853_v35  ;;  %vm2028_vm11 = vweird.f32 %v1853_v35 }
 0x322   : > { %6367 = vmatmul.msk.bf16.gmra.mxu3 %vm10802_vm12, %v6560_v18  ;;  %4486 = vst.msk [vmem:[#allocation3 + $0x2c] sm:$0xf] %vm10804_vm6, %v4446_v44  ;;  %6458 = vmatmul.msk.bf16.gmra.mxu2 %vm10807_vm0, %v6577_v25  ;;  %v5398_v30 = vunpack.c.l.b16 %v5326_v10  ;;  %v2020_v18 = vor.u32 1.1754944e-38, %v2019_v57  ;;  %v1854_v27 = vadd.f32 1.0, %v6857_v40  ;;  %6860 = vpow2.f32 %v6139_v54 }
 0x323   : > { %v2016_v24 = vsel %vm9894_vm15, %v6853_v29, %v2012_v31  ;;  %vm10812_vm12 = vcmask 64512   ;;  %vm9923_vm0 = vcmp.eq.f32.partialorder %v2032_v45, 8.507059e+37  ;;  %v2035_v22 = vor.u32 1.1754944e-38, %v2034_v5 }
 0x324   : > { %v5409_v2 = vpack.c.b16 %v5398_v30, %v5397_v42  ;;  %6862 = vrcp.f32 %v1854_v27  ;;  %v2021_v21 = vsel %vm2018_vm3, %v2020_v18, %v2016_v24  ;;  %v2047_v0 = vand.u32 2147483647, %v1854_v27 }
 0x325   : > { %v1789_v36 = vpop.f32.mrf.mxu3  ;;  %v2108_v55 = vmul.f32 %v2021_v21, %v9817_v41  ;;  %v4280_v41 = vpop.permute.xlu2 %4279  ;;  %v2049_v63 = vand.u32 2147483648, %v1854_v27  ;;  %vm2043_vm5 = vweird.f32 %v1854_v27 }
 0x326   : > { %v6859_v58 = vpop.eup %6858  ;;  %5421 = vrot.lane.b32.xlu0 %v5409_v2, %s7066_s20  ;;  %v9914_v20 = vadd.f32 %v9717_v53, %v1789_v36  ;;  %v4378_v57 = vsel %vm10821_vm13, %v4212_v34, %v4280_v41  ;;  %vm9940_vm15 = vcmp.eq.f32.partialorder %v2047_v0, 8.507059e+37 }
 0x327   : > { %v2024_v47 = vmul.f32 %v6859_v58, %v1853_v35  ;;  %vm2029_vm6 = vweird.f32 %v6859_v58  ;;  %v5327_v46 = vpack.c.bf16 %v2108_v55, %v2108_v55  ;;  %v2050_v4 = vor.u32 1.1754944e-38, %v2049_v63 }
 0x328   : > { %v4278_v50 = vpop.permute.xlu0 %4277  ;;  %v6861_v52 = vpop.eup %6860  ;;  %v6140_v32 = vmul.f32 -1.442695, %v9914_v20  ;;  %vm9919_vm1 = vmor %vm2028_vm11, %vm2029_vm6 }
 0x329   : > { %v4375_v62 = vsel %vm10811_vm14, %v4211_v6, %v4278_v50  ;;  %v6570_v37 = vld [vmem:[#allocation3 + $0x28] sm:$0xff]  ;;  %v2025_v6 = vsub.f32 1.0, %v2024_v47  ;;  %v9927_v11 = vadd.f32 1.0, %v6861_v52  ;;  %v5399_v30 = vunpack.c.l.b16 %v5327_v46  ;;  %vm10826_vm14 = vmmov %vm10812_vm12 }
 0x32a   : > { %v6578_v44 = vld [vmem:[#allocation3 + $0x28] sm:$0xff]  ;;  %v6863_v59 = vpop.eup %6862  ;;  %6864 = vpow2.f32 %v6140_v32 }
 0x32b   : > { %v2026_v26 = vmul.f32 %v6859_v58, %v2025_v6  ;;  %v2039_v13 = vmul.f32 %v6863_v59, %v1854_v27  ;;  %6866 = vrcp.f32 %v9927_v11  ;;  %vm2044_vm2 = vweird.f32 %v6863_v59 }
 0x32c   : > { %vm9947_vm3 = vmor %vm2043_vm5, %vm2044_vm2  ;;  %v2062_v34 = vand.u32 2147483647, %v9927_v11 }
 0x32d   : > { %v2027_v28 = vadd.f32 %v6859_v58, %v2026_v26  ;;  %v2040_v35 = vsub.f32 1.0, %v2039_v13  ;;  %v1791_v12 = vpop.f32.mrf.mxu3 }
 0x32e   : > { %v9945_v61 = vadd.f32 %v9717_v53, %v1791_v12  ;;  %v2064_v53 = vand.u32 2147483648, %v9927_v11  ;;  %vm2063_vm5 = vcmp.eq.f32.partialorder %v2062_v34, 8.507059e+37 }
 0x32f   : > { %v2031_v51 = vsel %vm9919_vm1, %v6859_v58, %v2027_v28  ;;  %v2041_v10 = vmul.f32 %v6863_v59, %v2040_v35  ;;  %vm10832_vm1 = vmmov %vm10820_vm8 }
 0x330   : > { %v2036_v60 = vsel %vm9923_vm0, %v2035_v22, %v2031_v51  ;;  %v6141_v36 = vmul.f32 -1.442695, %v9945_v61  ;;  %vm10833_vm0 = vmmov %vm10832_vm1  ;;  %v2065_v52 = vor.u32 1.1754944e-38, %v2064_v53 }
 0x331   : > { %6414 = vmatmul.msk.bf16.gmra.mxu0 %vm10813_vm10, %v6570_v37  ;;  %v2109_v42 = vmul.f32 %v2036_v60, %v9839_v14  ;;  %v6562_v14 = vld [vmem:[#allocation3 + $0x28] sm:$0xff]  ;;  %v2042_v50 = vadd.f32 %v6863_v59, %v2041_v10  ;;  %vm10828_vm10 = vmmov %vm10814_vm4 }
 0x332   : > { %6368 = vmatmul.msk.bf16.gmra.mxu3 %vm10810_vm7, %v6561_v39  ;;  %v4348_v1 = vpop.permute.xlu1 %4347  ;;  %6459 = vmatmul.msk.bf16.gmra.mxu2 %vm10814_vm4, %v6578_v44  ;;  %vm2058_vm7 = vweird.f32 %v9927_v11  ;;  %v6865_v39 = vpop.eup %6864  ;;  %vm10829_vm4 = vmmov %vm10826_vm14 }
 0x333   : > { %v4398_v25 = vsel %vm10812_vm12, %v4375_v62, %v4348_v1  ;;  %v5328_v40 = vpack.c.bf16 %v2109_v42, %v2109_v42  ;;  %v6867_v24 = vpop.eup %6866  ;;  %vm10827_vm12 = vmmov %vm10821_vm13  ;;  %v1856_v44 = vadd.f32 1.0, %v6865_v39 }
 0x334   : > { %v4427_v9 = vunpack.c.l.b16 %v4398_v25  ;;  %v4428_v8 = vunpack.c.h.b16 %v4398_v25  ;;  %v2046_v25 = vsel %vm9947_vm3, %v6863_v59, %v2042_v50  ;;  %v2054_v47 = vmul.f32 %v6867_v24, %v9927_v11  ;;  %vm10830_vm6 = vmmov %vm10828_vm10 }
 0x335   : > { %v5400_v1 = vunpack.c.l.b16 %v5328_v40  ;;  %vm2059_vm11 = vweird.f32 %v6867_v24  ;;  %6868 = vrcp.f32 %v1856_v44  ;;  %vm10834_vm2 = vmmov %vm10833_vm0  ;;  %v2079_v12 = vand.u32 2147483648, %v1856_v44 }
 0x336   : > { %v4447_v43 = vpack.c.b16 %v4427_v9, %v4427_v9  ;;  %v4448_v3 = vpack.c.b16 %v4428_v8, %v4428_v8  ;;  %v4352_v21 = vpop.permute.xlu2 %4351  ;;  %v2051_v9 = vsel %vm9940_vm15, %v2050_v4, %v2046_v25  ;;  %v2055_v15 = vsub.f32 1.0, %v2054_v47  ;;  %vm10835_vm13 = vmmov %vm10833_vm0 }
 0x337   : > { %v2110_v6 = vmul.f32 %v2051_v9, %v9884_v7  ;;  %6870 = vpow2.f32 %v6141_v36  ;;  %v5410_v26 = vpack.c.b16 %v5400_v1, %v5399_v30  ;;  %vm2073_vm15 = vweird.f32 %v1856_v44 }
 0x338   : > { %4487 = vst.msk [vmem:[#allocation3 + $0x30] sm:$0xf] %vm10815_vm9, %v4447_v43  ;;  %vm10831_vm9 = vmmov %vm10830_vm6  ;;  %v2056_v55 = vmul.f32 %v6867_v24, %v2055_v15  ;;  %v2080_v31 = vor.u32 1.1754944e-38, %v2079_v12 }
 0x339   : > { %4488 = vst.msk [vmem:[#allocation3 + $0x34] sm:$0xf] %vm10820_vm8, %v4448_v3  ;;  %vm2060_vm8 = vmor %vm2058_vm7, %vm2059_vm11  ;;  %5423 = vrot.lane.b32.xlu1 %v5410_v26, %s7066_s20  ;;  %v5329_v7 = vpack.c.bf16 %v2110_v6, %v2110_v6  ;;  %vm10841_vm11 = vcmask 31744  }
 0x33a   : > { %v2057_v32 = vadd.f32 %v6867_v24, %v2056_v55  ;;  %vm10836_vm7 = vmmov %vm10830_vm6 }
 0x33b   : > { %v6869_v56 = vpop.eup %6868  ;;  %v5401_v28 = vunpack.c.l.b16 %v5329_v7 }
 0x33c   : > { %v2061_v59 = vsel %vm2060_vm8, %v6867_v24, %v2057_v32  ;;  %v2069_v41 = vmul.f32 %v6869_v56, %v1856_v44  ;;  %vm2074_vm3 = vweird.f32 %v6869_v56 }
 0x33d   : > { %v2066_v29 = vsel %vm2063_vm5, %v2065_v52, %v2061_v59  ;;  %v6871_v11 = vpop.eup %6870  ;;  %vm10843_vm5 = vmmov %vm10833_vm0 }
 0x33e   : > { %v2111_v22 = vmul.f32 %v2066_v29, %v9899_v16  ;;  %v2070_v0 = vsub.f32 1.0, %v2069_v41  ;;  %v1857_v46 = vadd.f32 1.0, %v6871_v11 }
 0x340   : > { %v4350_v17 = vpop.permute.xlu0 %4349  ;;  %v6571_v27 = vld [vmem:[#allocation3 + $0x30] sm:$0xff]  ;;  %v5330_v13 = vpack.c.bf16 %v2111_v22, %v2111_v22  ;;  %v2071_v35 = vmul.f32 %v6869_v56, %v2070_v0  ;;  %6872 = vrcp.f32 %v1857_v46  ;;  %v2094_v24 = vand.u32 2147483648, %v1857_v46 }
 0x341   : > { %v4400_v18 = vsel %vm10826_vm14, %v4378_v57, %v4350_v17  ;;  %v4282_v54 = vpop.permute.xlu1 %4281  ;;  %v6579_v2 = vld [vmem:[#allocation3 + $0x30] sm:$0xff]  ;;  %6415 = vmatmul.msk.bf16.gmra.mxu0 %vm10830_vm6, %v6571_v27  ;;  %v2077_v57 = vand.u32 2147483647, %v1856_v44  ;;  %vm9979_vm14 = vmor %vm2073_vm15, %vm2074_vm3 }
 0x342   : > { %v4429_v58 = vunpack.c.l.b16 %v4400_v18  ;;  %v4430_v62 = vunpack.c.h.b16 %v4400_v18  ;;  %v4381_v37 = vsel %vm10827_vm12, %v4213_v19, %v4282_v54  ;;  %6369 = vmatmul.msk.bf16.gmra.mxu3 %vm10828_vm10, %v6562_v14  ;;  %6460 = vmatmul.msk.bf16.gmra.mxu2 %vm10831_vm9, %v6579_v2  ;;  %v6563_v63 = vld [vmem:[#allocation3 + $0x30] sm:$0xff]  ;;  %v5402_v51 = vunpack.c.l.b16 %v5330_v13  ;;  %vm10839_vm10 = vmmov %vm10830_vm6 }
 0x343   : > { %v4402_v23 = vsel %vm10829_vm4, %v4381_v37, %v4352_v21  ;;  %v2072_v10 = vadd.f32 %v6869_v56, %v2071_v35  ;;  %vm2078_vm12 = vcmp.eq.f32.partialorder %v2077_v57, 8.507059e+37  ;;  %vm10840_vm4 = vmmov %vm10830_vm6  ;;  %vm10842_vm6 = vcmask 64512  }
 0x344   : > { %v4449_v8 = vpack.c.b16 %v4429_v58, %v4429_v58  ;;  %v4450_v45 = vpack.c.b16 %v4430_v62, %v4430_v62  ;;  %v4431_v19 = vunpack.c.l.b16 %v4402_v23  ;;  %v4432_v5 = vunpack.c.h.b16 %v4402_v23  ;;  %vm10845_vm15 = vmmov %vm10840_vm4 }
 0x345   : > { %v5411_v30 = vpack.c.b16 %v5402_v51, %v5401_v28  ;;  %v2076_v4 = vsel %vm9979_vm14, %v6869_v56, %v2072_v10  ;;  %vm2088_vm9 = vweird.f32 %v1857_v46  ;;  %v2092_v54 = vand.u32 2147483647, %v1857_v46  ;;  %vm10846_vm3 = vmmov %vm10840_vm4 }
 0x346   : > { %4489 = vst.msk [vmem:[#allocation3 + $0x38] sm:$0xf] %vm10832_vm1, %v4449_v8  ;;  %v4451_v43 = vpack.c.b16 %v4431_v19, %v4431_v19  ;;  %v4452_v3 = vpack.c.b16 %v4432_v5, %v4432_v5  ;;  %v6873_v14 = vpop.eup %6872  ;;  %v2081_v53 = vsel %vm2078_vm12, %v2080_v31, %v2076_v4  ;;  %v2095_v33 = vor.u32 1.1754944e-38, %v2094_v24  ;;  %v10005_v5 = vld [vmem:[%s10345_s11] ss:$0 sm:$0xff] }
 0x347   : > { %4490 = vst.msk [vmem:[#allocation3 + $0x3c] sm:$0xf] %vm10833_vm0, %v4450_v45  ;;  %5425 = vrot.lane.b32.xlu2 %v5411_v30, %s7066_s20  ;;  %v2084_v40 = vmul.f32 %v6873_v14, %v1857_v46  ;;  %vm2089_vm1 = vweird.f32 %v6873_v14  ;;  %v2112_v62 = vmul.f32 %v2081_v53, %v9914_v20 }
 0x348   : > { %4491 = vst.msk [vmem:[#allocation3 + $0x40] sm:$0xf] %vm10834_vm2, %v4451_v43  ;;  %vm2090_vm8 = vmor %vm2088_vm9, %vm2089_vm1  ;;  %vm2093_vm2 = vcmp.eq.f32.partialorder %v2092_v54, 8.507059e+37 }
 0x349   : > { %4492 = vst.msk [vmem:[#allocation3 + $0x44] sm:$0xf] %vm10835_vm13, %v4452_v3  ;;  %v2085_v27 = vsub.f32 1.0, %v2084_v40  ;;  %v5331_v37 = vpack.c.bf16 %v2112_v62, %v2112_v62  ;;  %vm10844_vm13 = vmmov %vm10840_vm4 }
 0x34b   : > { %v2086_v48 = vmul.f32 %v6873_v14, %v2085_v27  ;;  %v5403_v47 = vunpack.c.l.b16 %v5331_v37 }
 0x34e   : > { %v6572_v60 = vld [vmem:[#allocation3 + $0x38] sm:$0xff] }
 0x34f   : > { %v6580_v42 = vld [vmem:[#allocation3 + $0x38] sm:$0xff] }
 0x350   : > { %v6564_v1 = vld [vmem:[#allocation3 + $0x38] sm:$0xff]  ;;  %v6573_v20 = vld [vmem:[#allocation3 + $0x40] sm:$0xff] }
 0x351   : > { %v4284_v38 = vpop.permute.xlu0 %4283  ;;  %6416 = vmatmul.msk.bf16.gmra.mxu0 %vm10839_vm10, %v6572_v60  ;;  %v6581_v9 = vld [vmem:[#allocation3 + $0x40] sm:$0xff] }
 0x352   : > { %6370 = vmatmul.msk.bf16.gmra.mxu3 %vm10836_vm7, %v6563_v63  ;;  %6461 = vmatmul.msk.bf16.gmra.mxu2 %vm10840_vm4, %v6580_v42  ;;  %v4384_v17 = vsel %vm10841_vm11, %v4214_v49, %v4284_v38  ;;  %v2087_v49 = vadd.f32 %v6873_v14, %v2086_v48  ;;  %vm10847_vm7 = vmmov %vm10846_vm3 }
 0x354   : > { %v2091_v44 = vsel %vm2090_vm8, %v6873_v14, %v2087_v49 }
 0x355   : > { %v2096_v21 = vsel %vm2093_vm2, %v2095_v33, %v2091_v44 }
 0x356   : > { %v2113_v25 = vmul.f32 %v2096_v21, %v9945_v61 }
 0x358   : > { %v4354_v34 = vpop.permute.xlu1 %4353  ;;  %v5332_v36 = vpack.c.bf16 %v2113_v25, %v2113_v25 }
 0x359   : > { %v4404_v39 = vsel %vm10842_vm6, %v4384_v17, %v4354_v34 }
 0x35a   : > { %v4433_v50 = vunpack.c.l.b16 %v4404_v39  ;;  %v4434_v18 = vunpack.c.h.b16 %v4404_v39  ;;  %v5404_v8 = vunpack.c.l.b16 %v5332_v36 }
 0x35c   : > { %v4453_v2 = vpack.c.b16 %v4433_v50, %v4433_v50  ;;  %v4454_v58 = vpack.c.b16 %v4434_v18, %v4434_v18  ;;  %v5412_v45 = vpack.c.b16 %v5404_v8, %v5403_v47 }
 0x35e   : > { %4493 = vst.msk [vmem:[#allocation3 + $0x48] sm:$0xf] %vm10833_vm0, %v4453_v2  ;;  %5427 = vrot.lane.b32.xlu0 %v5412_v45, %s7066_s20 }
 0x35f   : > { %4494 = vst.msk [vmem:[#allocation3 + $0x4c] sm:$0xf] %vm10843_vm5, %v4454_v58 }
 0x361   : > { %6417 = vmatmul.msk.bf16.gmra.mxu0 %vm10845_vm15, %v6573_v20 }
 0x362   : > { %6371 = vmatmul.msk.bf16.gmra.mxu3 %vm10844_vm13, %v6564_v1  ;;  %6462 = vmatmul.msk.bf16.gmra.mxu2 %vm10846_vm3, %v6581_v9 }
 0x366   : > { %v6582_v15 = vld [vmem:[#allocation3 + $0x48] sm:$0xff] }
 0x367   : > { %v4753_v23 = vpop.f32.mrf.mxu0 }
 0x36f   : > { %v4755_v61 = vpop.f32.mrf.mxu0 }
 0x372   : > { %6463 = vmatmul.msk.bf16.gmra.mxu2 %vm10847_vm7, %v6582_v15 }
 0x375   : > { %v4594_v19 = vpop.f32.mrf.mxu3 }
 0x376   : > { %v4637_v6 = vadd.f32 %v10005_v5, %v4594_v19 }
 0x378   : > { %v4793_v3 = vadd.f32 %v4753_v23, %v4637_v6 }
 0x37d   : > { %v4596_v55 = vpop.f32.mrf.mxu3 }
 0x37e   : > { %v4758_v43 = vpop.f32.mrf.mxu0  ;;  %v4638_v32 = vadd.f32 %v10005_v5, %v4596_v55 }
 0x380   : > { %v4794_v29 = vadd.f32 %v4755_v61, %v4638_v32 }
 0x385   : > { %v4909_v52 = vpop.f32.mrf.mxu2  ;;  %v4599_v59 = vpop.f32.mrf.mxu3 }
 0x386   : > { %v10008_v26 = vadd.f32 %v4909_v52, %v4793_v3  ;;  %v4760_v56 = vpop.f32.mrf.mxu0  ;;  %v4639_v28 = vadd.f32 %v10005_v5, %v4599_v59 }
 0x388   : > { %v6464_v7 = vmul.f32 -1.442695, %v10008_v26  ;;  %v4795_v63 = vadd.f32 %v4758_v43, %v4639_v28 }
 0x38a   : > { %6874 = vpow2.f32 %v6464_v7 }
 0x38d   : > { %v4911_v22 = vpop.f32.mrf.mxu2  ;;  %v4601_v46 = vpop.f32.mrf.mxu3 }
 0x38e   : > { %v10012_v41 = vadd.f32 %v4911_v22, %v4794_v29  ;;  %v4763_v51 = vpop.f32.mrf.mxu0  ;;  %v4640_v60 = vadd.f32 %v10005_v5, %v4601_v46  ;;  %v7010_v22 = vld [vmem:[#allocation2 + $0x28] sm:$0xff] }
 0x390   : > { %v6875_v11 = vpop.eup %6874  ;;  %v6465_v13 = vmul.f32 -1.442695, %v10012_v41  ;;  %v4796_v4 = vadd.f32 %v4760_v56, %v4640_v60 }
 0x391   : > { %v5013_v0 = vadd.f32 1.0, %v6875_v11 }
 0x392   : > { %6876 = vpow2.f32 %v6465_v13 }
 0x393   : > { %6878 = vrcp.f32 %v5013_v0  ;;  %v5040_v2 = vand.u32 2147483648, %v5013_v0  ;;  %vm5034_vm12 = vweird.f32 %v5013_v0  ;;  %v5038_v58 = vand.u32 2147483647, %v5013_v0 }
 0x395   : > { %v4914_v35 = vpop.f32.mrf.mxu2  ;;  %v4604_v31 = vpop.f32.mrf.mxu3  ;;  %v5041_v36 = vor.u32 1.1754944e-38, %v5040_v2  ;;  %vm5039_vm11 = vcmp.eq.f32.partialorder %v5038_v58, 8.507059e+37 }
 0x396   : > { %v10016_v12 = vadd.f32 %v4914_v35, %v4795_v63  ;;  %v4765_v39 = vpop.f32.mrf.mxu0  ;;  %v4641_v50 = vadd.f32 %v10005_v5, %v4604_v31 }
 0x398   : > { %v6877_v57 = vpop.eup %6876  ;;  %v6466_v42 = vmul.f32 -1.442695, %v10016_v12  ;;  %v4797_v33 = vadd.f32 %v4763_v51, %v4641_v50 }
 0x399   : > { %v6879_v10 = vpop.eup %6878  ;;  %v5014_v16 = vadd.f32 1.0, %v6877_v57 }
 0x39a   : > { %v5030_v38 = vmul.f32 %v6879_v10, %v5013_v0  ;;  %6880 = vpow2.f32 %v6466_v42  ;;  %vm5035_vm14 = vweird.f32 %v6879_v10  ;;  %v7011_v0 = vld [vmem:[#allocation2 + $0x20] sm:$0xff] }
 0x39b   : > { %6882 = vrcp.f32 %v5014_v16  ;;  %vm10027_vm10 = vmor %vm5034_vm12, %vm5035_vm14  ;;  %v5053_v37 = vand.u32 2147483647, %v5014_v16  ;;  %v5055_v44 = vand.u32 2147483648, %v5014_v16  ;;  %vm5049_vm6 = vweird.f32 %v5014_v16 }
 0x39c   : > { %v5031_v30 = vsub.f32 1.0, %v5030_v38  ;;  %vm10852_vm14 = vcmask 31744   ;;  %vm10853_vm12 = vcmask 64512  }
 0x39d   : > { %v4916_v17 = vpop.f32.mrf.mxu2  ;;  %v4606_v48 = vpop.f32.mrf.mxu3  ;;  %v5056_v15 = vor.u32 1.1754944e-38, %v5055_v44  ;;  %vm5054_vm1 = vcmp.eq.f32.partialorder %v5053_v37, 8.507059e+37 }
 0x39e   : > { %v5032_v34 = vmul.f32 %v6879_v10, %v5031_v30  ;;  %v10020_v14 = vadd.f32 %v4916_v17, %v4796_v4  ;;  %v4768_v61 = vpop.f32.mrf.mxu0  ;;  %v4642_v6 = vadd.f32 %v10005_v5, %v4606_v48 }
 0x3a0   : > { %v6881_v40 = vpop.eup %6880  ;;  %v6467_v18 = vmul.f32 -1.442695, %v10020_v14  ;;  %v5033_v24 = vadd.f32 %v6879_v10, %v5032_v34  ;;  %v4798_v56 = vadd.f32 %v4765_v39, %v4642_v6 }
 0x3a1   : > { %v6883_v53 = vpop.eup %6882  ;;  %v10024_v54 = vadd.f32 1.0, %v6881_v40 }
 0x3a2   : > { %v5045_v27 = vmul.f32 %v6883_v53, %v5014_v16  ;;  %6884 = vpow2.f32 %v6467_v18  ;;  %v5037_v21 = vsel %vm10027_vm10, %v6879_v10, %v5033_v24  ;;  %vm5050_vm4 = vweird.f32 %v6883_v53 }
 0x3a3   : > { %6886 = vrcp.f32 %v10024_v54  ;;  %v5042_v23 = vsel %vm5039_vm11, %v5041_v36, %v5037_v21  ;;  %vm5051_vm9 = vmor %vm5049_vm6, %vm5050_vm4  ;;  %v5068_v42 = vand.u32 2147483647, %v10024_v54  ;;  %v5070_v10 = vand.u32 2147483648, %v10024_v54 }
 0x3a4   : > { %v5046_v62 = vsub.f32 1.0, %v5045_v27  ;;  %v5269_v52 = vmul.f32 %v5042_v23, %v10008_v26  ;;  %vm5064_vm8 = vweird.f32 %v10024_v54 }
 0x3a5   : > { %v4919_v1 = vpop.f32.mrf.mxu2  ;;  %v4609_v59 = vpop.f32.mrf.mxu3  ;;  %vm5069_vm13 = vcmp.eq.f32.partialorder %v5068_v42, 8.507059e+37 }
 0x3a6   : > { %v5047_v25 = vmul.f32 %v6883_v53, %v5046_v62  ;;  %v10033_v47 = vadd.f32 %v4919_v1, %v4797_v33  ;;  %v5285_v46 = vadd.f32 %v7011_v0, %v5269_v52  ;;  %v4643_v60 = vadd.f32 %v10005_v5, %v4609_v59  ;;  %v4770_v38 = vpop.f32.mrf.mxu0 }
 0x3a8   : > { %v6885_v20 = vpop.eup %6884  ;;  %v5048_v9 = vadd.f32 %v6883_v53, %v5047_v25  ;;  %v6468_v8 = vmul.f32 -1.442695, %v10033_v47  ;;  %v5301_v30 = vpack.c.bf16 %v5285_v46, %v5285_v46 }
 0x3a9   : > { %v6887_v45 = vpop.eup %6886  ;;  %v5016_v19 = vadd.f32 1.0, %v6885_v20 }
 0x3aa   : > { %v5052_v55 = vsel %vm5051_vm9, %v6883_v53, %v5048_v9  ;;  %v5060_v43 = vmul.f32 %v6887_v45, %v10024_v54  ;;  %vm5065_vm0 = vweird.f32 %v6887_v45  ;;  %v4799_v53 = vadd.f32 %v4768_v61, %v4643_v60 }
 0x3ab   : > { %v5057_v3 = vsel %vm5054_vm1, %v5056_v15, %v5052_v55  ;;  %6888 = vrcp.f32 %v5016_v19  ;;  %vm10049_vm5 = vmor %vm5064_vm8, %vm5065_vm0  ;;  %v5083_v34 = vand.u32 2147483647, %v5016_v19  ;;  %v5085_v39 = vand.u32 2147483648, %v5016_v19  ;;  %v7012_v55 = vld [vmem:[#allocation2 + $0x38] sm:$0xff] }
 0x3ac   : > { %v5270_v32 = vmul.f32 %v5057_v3, %v10012_v41  ;;  %v5061_v7 = vsub.f32 1.0, %v5060_v43  ;;  %6890 = vpow2.f32 %v6468_v8  ;;  %v5071_v54 = vor.u32 1.1754944e-38, %v5070_v10 }
 0x3ad   : > { %v4921_v29 = vpop.f32.mrf.mxu2  ;;  %v4611_v40 = vpop.f32.mrf.mxu3  ;;  %v5349_v27 = vunpack.c.l.b16 %v5301_v30  ;;  %vm5079_vm15 = vweird.f32 %v5016_v19  ;;  %vm5084_vm7 = vcmp.eq.f32.partialorder %v5083_v34, 8.507059e+37  ;;  %v5086_v33 = vor.u32 1.1754944e-38, %v5085_v39 }
 0x3ae   : > { %v5286_v11 = vadd.f32 %v7010_v22, %v5270_v32  ;;  %v5062_v28 = vmul.f32 %v6887_v45, %v5061_v7  ;;  %v10040_v13 = vadd.f32 %v4921_v29, %v4798_v56  ;;  %v4644_v36 = vadd.f32 %v10005_v5, %v4611_v40  ;;  %v4773_v23 = vpop.f32.mrf.mxu0 }
 0x3b0   : > { %v5302_v51 = vpack.c.bf16 %v5286_v11, %v5286_v11  ;;  %v6469_v35 = vmul.f32 -1.442695, %v10040_v13  ;;  %v5063_v26 = vadd.f32 %v6887_v45, %v5062_v28  ;;  %v4800_v3 = vadd.f32 %v4770_v38, %v4644_v36 }
 0x3b1   : > { %v6889_v63 = vpop.eup %6888 }
 0x3b2   : > { %v6891_v57 = vpop.eup %6890  ;;  %v5075_v41 = vmul.f32 %v6889_v63, %v5016_v19  ;;  %6892 = vpow2.f32 %v6469_v35  ;;  %v5350_v4 = vunpack.c.l.b16 %v5302_v51  ;;  %v5067_v50 = vsel %vm10049_vm5, %v6887_v45, %v5063_v26  ;;  %v5414_v45 = vpop.permute.xlu2 %5413  ;;  %vm10856_vm5 = vmmov %vm10852_vm14 }
 0x3b3   : > { %v10046_v16 = vadd.f32 1.0, %v6891_v57  ;;  %vm5080_vm2 = vweird.f32 %v6889_v63  ;;  %v5072_v48 = vsel %vm5069_vm13, %v5071_v54, %v5067_v50 }
 0x3b4   : > { %v5076_v31 = vsub.f32 1.0, %v5075_v41  ;;  %vm5081_vm3 = vmor %vm5079_vm15, %vm5080_vm2  ;;  %v5365_v49 = vpack.c.b16 %v5350_v4, %v5349_v27  ;;  %v5271_v20 = vmul.f32 %v5072_v48, %v10016_v12  ;;  %v7013_v12 = vld [vmem:[#allocation2 + $0x30] sm:$0xff] }
 0x3b5   : > { %6894 = vrcp.f32 %v10046_v16  ;;  %v4924_v24 = vpop.f32.mrf.mxu2  ;;  %v4614_v61 = vpop.f32.mrf.mxu3  ;;  %vm5094_vm10 = vweird.f32 %v10046_v16  ;;  %v5098_v0 = vand.u32 2147483647, %v10046_v16  ;;  %v5100_v35 = vand.u32 2147483648, %v10046_v16  ;;  %vm10857_vm2 = vmmov %vm10853_vm12 }
 0x3b6   : > { %v5077_v18 = vmul.f32 %v6889_v63, %v5076_v31  ;;  %v10056_v58 = vadd.f32 %v4924_v24, %v4799_v53  ;;  %v5431_v19 = vsel %vm10852_vm14, %v5365_v49, %v5414_v45  ;;  %v5287_v52 = vadd.f32 %v7013_v12, %v5271_v20  ;;  %v4775_v42 = vpop.f32.mrf.mxu0 }
 0x3b7   : > { %6480 = vmatmul.msk.bf16.vlgmr.msra.gmra.mxu3 %vm10853_vm12, %v5431_v19  ;;  %v4645_v22 = vadd.f32 %v10005_v5, %v4614_v61  ;;  %vm5099_vm1 = vcmp.eq.f32.partialorder %v5098_v0, 8.507059e+37  ;;  %v5101_v40 = vor.u32 1.1754944e-38, %v5100_v35  ;;  %v7015_v19 = vld [vmem:[#allocation2 + $0x40] sm:$0xff] }
 0x3b8   : > { %v5078_v2 = vadd.f32 %v6889_v63, %v5077_v18  ;;  %v6893_v62 = vpop.eup %6892  ;;  %v6470_v1 = vmul.f32 -1.442695, %v10056_v58  ;;  %v5303_v28 = vpack.c.bf16 %v5287_v52, %v5287_v52 }
 0x3b9   : > { %v5018_v44 = vadd.f32 1.0, %v6893_v62  ;;  %v4801_v10 = vadd.f32 %v4773_v23, %v4645_v22 }
 0x3ba   : > { %v5082_v37 = vsel %vm5081_vm3, %v6889_v63, %v5078_v2  ;;  %v5351_v38 = vunpack.c.l.b16 %v5303_v28 }
 0x3bb   : > { %v10059_v21 = vpop.eup %6894  ;;  %v5087_v25 = vsel %vm5084_vm7, %v5086_v33, %v5082_v37  ;;  %6896 = vrcp.f32 %v5018_v44  ;;  %v5113_v57 = vand.u32 2147483647, %v5018_v44  ;;  %v5115_v26 = vand.u32 2147483648, %v5018_v44  ;;  %v5416_v37 = vpop.permute.xlu0 %5415 }
 0x3bc   : > { %v5272_v9 = vmul.f32 %v5087_v25, %v10020_v14  ;;  %v5090_v8 = vmul.f32 %v10059_v21, %v10046_v16  ;;  %6898 = vpow2.f32 %v6470_v1  ;;  %vm5095_vm4 = vweird.f32 %v10059_v21 }
 0x3bd   : > { %v4926_v6 = vpop.f32.mrf.mxu2  ;;  %vm10083_vm6 = vmor %vm5094_vm10, %vm5095_vm4  ;;  %v4616_v31 = vpop.f32.mrf.mxu3  ;;  %vm5109_vm9 = vweird.f32 %v5018_v44  ;;  %vm5114_vm8 = vcmp.eq.f32.partialorder %v5113_v57, 8.507059e+37  ;;  %v5116_v50 = vor.u32 1.1754944e-38, %v5115_v26 }
 0x3be   : > { %v5091_v15 = vsub.f32 1.0, %v5090_v8  ;;  %v5288_v43 = vadd.f32 %v7012_v55, %v5272_v9  ;;  %v10069_v32 = vadd.f32 %v4926_v6, %v4800_v3  ;;  %v4646_v24 = vadd.f32 %v10005_v5, %v4616_v31  ;;  %v7014_v9 = vld [vmem:[#allocation2 + $0x48] sm:$0xff]  ;;  %v4778_v45 = vpop.f32.mrf.mxu0 }
 0x3c0   : > { %v5092_v14 = vmul.f32 %v10059_v21, %v5091_v15  ;;  %v5304_v56 = vpack.c.bf16 %v5288_v43, %v5288_v43  ;;  %v6471_v11 = vmul.f32 -1.442695, %v10069_v32  ;;  %v4802_v25 = vadd.f32 %v4775_v42, %v4646_v24 }
 0x3c1   : > { %v6897_v7 = vpop.eup %6896 }
 0x3c2   : > { %v6899_v59 = vpop.eup %6898  ;;  %v5105_v29 = vmul.f32 %v6897_v7, %v5018_v44  ;;  %v5093_v63 = vadd.f32 %v10059_v21, %v5092_v14  ;;  %6900 = vpow2.f32 %v6471_v11  ;;  %v5352_v41 = vunpack.c.l.b16 %v5304_v56 }
 0x3c3   : > { %v10075_v46 = vadd.f32 1.0, %v6899_v59  ;;  %vm5110_vm11 = vweird.f32 %v6897_v7 }
 0x3c4   : > { %v5106_v51 = vsub.f32 1.0, %v5105_v29  ;;  %v5097_v17 = vsel %vm10083_vm6, %v10059_v21, %v5093_v63  ;;  %vm5111_vm0 = vmor %vm5109_vm9, %vm5110_vm11  ;;  %v5366_v18 = vpack.c.b16 %v5352_v41, %v5351_v38 }
 0x3c5   : > { %6902 = vrcp.f32 %v10075_v46  ;;  %v4929_v4 = vpop.f32.mrf.mxu2  ;;  %v5102_v2 = vsel %vm5099_vm1, %v5101_v40, %v5097_v17  ;;  %v4619_v36 = vpop.f32.mrf.mxu3  ;;  %v5130_v14 = vand.u32 2147483648, %v10075_v46  ;;  %vm5124_vm15 = vweird.f32 %v10075_v46  ;;  %vm10860_vm11 = vmmov %vm10856_vm5 }
 0x3c6   : > { %v5107_v60 = vmul.f32 %v6897_v7, %v5106_v51  ;;  %v10090_v39 = vadd.f32 %v4929_v4, %v4801_v10  ;;  %v5273_v44 = vmul.f32 %v5102_v2, %v10033_v47  ;;  %v5434_v21 = vsel %vm10856_vm5, %v5366_v18, %v5416_v37  ;;  %vm10861_vm6 = vmmov %vm10857_vm2 }
 0x3c7   : > { %6481 = vmatmul.msk.bf16.gmra.mxu3 %vm10857_vm2, %v5434_v21  ;;  %v4647_v12 = vadd.f32 %v10005_v5, %v4619_v36  ;;  %v5128_v56 = vand.u32 2147483647, %v10075_v46  ;;  %v5131_v35 = vor.u32 1.1754944e-38, %v5130_v14 }
 0x3c8   : > { %v5108_v34 = vadd.f32 %v6897_v7, %v5107_v60  ;;  %v6901_v16 = vpop.eup %6900  ;;  %v6472_v54 = vmul.f32 -1.442695, %v10090_v39  ;;  %v5289_v61 = vadd.f32 %v7015_v19, %v5273_v44 }
 0x3c9   : > { %v5020_v48 = vadd.f32 1.0, %v6901_v16  ;;  %v4803_v63 = vadd.f32 %v4778_v45, %v4647_v12  ;;  %vm5129_vm12 = vcmp.eq.f32.partialorder %v5128_v56, 8.507059e+37 }
 0x3ca   : > { %v5112_v53 = vsel %vm5111_vm0, %v6897_v7, %v5108_v34  ;;  %6904 = vpow2.f32 %v6472_v54  ;;  %v5305_v7 = vpack.c.bf16 %v5289_v61, %v5289_v61  ;;  %v5418_v54 = vpop.permute.xlu1 %5417 }
 0x3cb   : > { %v10094_v27 = vpop.eup %6902  ;;  %v5117_v62 = vsel %vm5114_vm8, %v5116_v50, %v5112_v53  ;;  %6906 = vrcp.f32 %v5020_v48  ;;  %v5143_v29 = vand.u32 2147483647, %v5020_v48  ;;  %v5145_v22 = vand.u32 2147483648, %v5020_v48 }
 0x3cc   : > { %v5274_v33 = vmul.f32 %v5117_v62, %v10040_v13  ;;  %v5120_v49 = vmul.f32 %v10094_v27, %v10075_v46  ;;  %vm5125_vm13 = vweird.f32 %v10094_v27  ;;  %v5353_v41 = vunpack.c.l.b16 %v5305_v7  ;;  %v4780_v46 = vpop.f32.mrf.mxu0  ;;  %v7016_v62 = vld [vmem:[#allocation2 + $0x58] sm:$0xff] }
 0x3cd   : > { %v4931_v20 = vpop.f32.mrf.mxu2  ;;  %vm10115_vm3 = vmor %vm5124_vm15, %vm5125_vm13  ;;  %v4621_v57 = vpop.f32.mrf.mxu3  ;;  %vm5139_vm14 = vweird.f32 %v5020_v48  ;;  %vm5144_vm4 = vcmp.eq.f32.partialorder %v5143_v29, 8.507059e+37  ;;  %v5146_v38 = vor.u32 1.1754944e-38, %v5145_v22 }
 0x3ce   : > { %v5121_v1 = vsub.f32 1.0, %v5120_v49  ;;  %v5290_v8 = vadd.f32 %v7014_v9, %v5274_v33  ;;  %v10102_v13 = vadd.f32 %v4931_v20, %v4802_v25  ;;  %v4648_v16 = vadd.f32 %v10005_v5, %v4621_v57 }
 0x3d0   : > { %v5122_v23 = vmul.f32 %v10094_v27, %v5121_v1  ;;  %v6905_v15 = vpop.eup %6904  ;;  %v6473_v47 = vmul.f32 -1.442695, %v10102_v13  ;;  %v5306_v43 = vpack.c.bf16 %v5290_v8, %v5290_v8  ;;  %v4804_v49 = vadd.f32 %v4780_v46, %v4648_v16 }
 0x3d1   : > { %v6907_v6 = vpop.eup %6906  ;;  %v10106_v55 = vadd.f32 1.0, %v6905_v15 }
 0x3d2   : > { %v5135_v3 = vmul.f32 %v6907_v6, %v5020_v48  ;;  %v5123_v52 = vadd.f32 %v10094_v27, %v5122_v23  ;;  %v5354_v11 = vunpack.c.l.b16 %v5306_v43  ;;  %vm5140_vm7 = vweird.f32 %v6907_v6 }
 0x3d3   : > { %6908 = vrcp.f32 %v10106_v55  ;;  %vm5141_vm10 = vmor %vm5139_vm14, %vm5140_vm7  ;;  %v5158_v15 = vand.u32 2147483647, %v10106_v55  ;;  %v5160_v19 = vand.u32 2147483648, %v10106_v55  ;;  %vm5154_vm1 = vweird.f32 %v10106_v55 }
 0x3d4   : > { %v5136_v59 = vsub.f32 1.0, %v5135_v3  ;;  %6910 = vpow2.f32 %v6473_v47  ;;  %v5127_v51 = vsel %vm10115_vm3, %v10094_v27, %v5123_v52  ;;  %v5367_v31 = vpack.c.b16 %v5354_v11, %v5353_v41  ;;  %v4783_v25 = vpop.f32.mrf.mxu0  ;;  %vm10864_vm3 = vmmov %vm10860_vm11 }
 0x3d5   : > { %v4934_v26 = vpop.f32.mrf.mxu2  ;;  %v5132_v4 = vsel %vm5129_vm12, %v5131_v35, %v5127_v51  ;;  %v4624_v33 = vpop.f32.mrf.mxu3  ;;  %vm5159_vm5 = vcmp.eq.f32.partialorder %v5158_v15, 8.507059e+37  ;;  %vm10865_vm7 = vmmov %vm10861_vm6 }
 0x3d6   : > { %v5137_v0 = vmul.f32 %v6907_v6, %v5136_v59  ;;  %v10122_v42 = vadd.f32 %v4934_v26, %v4803_v63  ;;  %v5275_v27 = vmul.f32 %v5132_v4, %v10056_v58  ;;  %v5437_v2 = vsel %vm10860_vm11, %v5367_v31, %v5418_v54  ;;  %v7019_v54 = vld [vmem:[#allocation2 + $0x60] sm:$0xff] }
 0x3d7   : > { %6482 = vmatmul.msk.bf16.gmra.mxu3 %vm10861_vm6, %v5437_v2  ;;  %v4649_v23 = vadd.f32 %v10005_v5, %v4624_v33 }
 0x3d8   : > { %v5138_v60 = vadd.f32 %v6907_v6, %v5137_v0  ;;  %v6474_v18 = vmul.f32 -1.442695, %v10122_v42 }
 0x3d9   : > { %v10124_v10 = vpop.eup %6908  ;;  %v4805_v56 = vadd.f32 %v4783_v25, %v4649_v23 }
 0x3da   : > { %v6911_v30 = vpop.eup %6910  ;;  %v5142_v17 = vsel %vm5141_vm10, %v6907_v6, %v5138_v60  ;;  %v5150_v34 = vmul.f32 %v10124_v10, %v10106_v55  ;;  %vm5155_vm9 = vweird.f32 %v10124_v10  ;;  %v5161_v55 = vor.u32 1.1754944e-38, %v5160_v19 }
 0x3db   : > { %v5147_v40 = vsel %vm5144_vm4, %v5146_v38, %v5142_v17  ;;  %v5022_v50 = vadd.f32 1.0, %v6911_v30  ;;  %vm10146_vm0 = vmor %vm5154_vm1, %vm5155_vm9  ;;  %v5420_v17 = vpop.permute.xlu2 %5419 }
 0x3dc   : > { %v5276_v53 = vmul.f32 %v5147_v40, %v10069_v32  ;;  %v5151_v24 = vsub.f32 1.0, %v5150_v34  ;;  %v7017_v32 = vld [vmem:[#allocation2 + $0x50] sm:$0xff]  ;;  %v4785_v26 = vpop.f32.mrf.mxu0  ;;  %v7018_v34 = vld [vmem:[#allocation2 + $0x68] sm:$0xff] }
 0x3dd   : > { %6912 = vrcp.f32 %v5022_v50  ;;  %v4936_v37 = vpop.f32.mrf.mxu2  ;;  %v5291_v21 = vadd.f32 %v7017_v32, %v5275_v27  ;;  %v5173_v12 = vand.u32 2147483647, %v5022_v50  ;;  %v5175_v52 = vand.u32 2147483648, %v5022_v50  ;;  %v4626_v14 = vpop.f32.mrf.mxu3 }
 0x3de   : > { %6914 = vpow2.f32 %v6474_v18  ;;  %v5292_v48 = vadd.f32 %v7016_v62, %v5276_v53  ;;  %v5152_v44 = vmul.f32 %v10124_v10, %v5151_v24  ;;  %v10135_v1 = vadd.f32 %v4936_v37, %v4804_v49 }
 0x3df   : > { %v5307_v47 = vpack.c.bf16 %v5291_v21, %v5291_v21  ;;  %vm5169_vm2 = vweird.f32 %v5022_v50  ;;  %vm5174_vm15 = vcmp.eq.f32.partialorder %v5173_v12, 8.507059e+37  ;;  %v5176_v51 = vor.u32 1.1754944e-38, %v5175_v52 }
 0x3e0   : > { %v5308_v20 = vpack.c.bf16 %v5292_v48, %v5292_v48  ;;  %v6475_v58 = vmul.f32 -1.442695, %v10135_v1  ;;  %v5153_v8 = vadd.f32 %v10124_v10, %v5152_v44  ;;  %v4650_v38 = vadd.f32 %v10005_v5, %v4626_v14 }
 0x3e1   : > { %v5355_v22 = vunpack.c.l.b16 %v5307_v47 }
 0x3e2   : > { %6916 = vpow2.f32 %v6475_v58  ;;  %v5356_v43 = vunpack.c.l.b16 %v5308_v20  ;;  %v5157_v7 = vsel %vm10146_vm0, %v10124_v10, %v5153_v8  ;;  %v4806_v24 = vadd.f32 %v4785_v26, %v4650_v38  ;;  %v5422_v26 = vpop.permute.xlu0 %5421  ;;  %vm10868_vm0 = vmmov %vm10864_vm3 }
 0x3e3   : > { %v6913_v36 = vpop.eup %6912  ;;  %v5162_v63 = vsel %vm5159_vm5, %v5161_v55, %v5157_v7 }
 0x3e4   : > { %v6915_v9 = vpop.eup %6914  ;;  %v5165_v45 = vmul.f32 %v6913_v36, %v5022_v50  ;;  %vm5170_vm8 = vweird.f32 %v6913_v36  ;;  %v5368_v35 = vpack.c.b16 %v5356_v43, %v5355_v22  ;;  %v5277_v30 = vmul.f32 %v5162_v63, %v10090_v39  ;;  %v4788_v58 = vpop.f32.mrf.mxu0 }
 0x3e5   : > { %v10143_v61 = vadd.f32 1.0, %v6915_v9  ;;  %v4939_v29 = vpop.f32.mrf.mxu2  ;;  %vm5171_vm13 = vmor %vm5169_vm2, %vm5170_vm8  ;;  %v4629_v18 = vpop.f32.mrf.mxu3 }
 0x3e6   : > { %v5166_v6 = vsub.f32 1.0, %v5165_v45  ;;  %v10154_v28 = vadd.f32 %v4939_v29, %v4805_v56  ;;  %v5440_v16 = vsel %vm10864_vm3, %v5368_v35, %v5420_v17  ;;  %v5293_v27 = vadd.f32 %v7019_v54, %v5277_v30  ;;  %vm10869_vm8 = vmmov %vm10865_vm7 }
 0x3e7   : > { %6918 = vrcp.f32 %v10143_v61  ;;  %6483 = vmatmul.msk.bf16.gmra.mxu3 %vm10865_vm7, %v5440_v16  ;;  %v5190_v2 = vand.u32 2147483648, %v10143_v61  ;;  %vm5184_vm12 = vweird.f32 %v10143_v61  ;;  %v4651_v21 = vadd.f32 %v10005_v5, %v4629_v18 }
 0x3e8   : > { %v5167_v59 = vmul.f32 %v6913_v36, %v5166_v6  ;;  %v6917_v0 = vpop.eup %6916  ;;  %v6476_v60 = vmul.f32 -1.442695, %v10154_v28 }
 0x3e9   : > { %v5024_v41 = vadd.f32 1.0, %v6917_v0  ;;  %v5191_v8 = vor.u32 1.1754944e-38, %v5190_v2  ;;  %v4807_v6 = vadd.f32 %v4788_v58, %v4651_v21  ;;  %v5424_v58 = vpop.permute.xlu1 %5423 }
 0x3ea   : > { %v5168_v11 = vadd.f32 %v6913_v36, %v5167_v59 }
 0x3eb   : > { %6920 = vrcp.f32 %v5024_v41  ;;  %v5203_v15 = vand.u32 2147483647, %v5024_v41  ;;  %v5205_v19 = vand.u32 2147483648, %v5024_v41  ;;  %vm5199_vm6 = vweird.f32 %v5024_v41 }
 0x3ec   : > { %v5172_v57 = vsel %vm5171_vm13, %v6913_v36, %v5168_v11  ;;  %6922 = vpow2.f32 %v6476_v60  ;;  %v5309_v36 = vpack.c.bf16 %v5293_v27, %v5293_v27  ;;  %v4790_v60 = vpop.f32.mrf.mxu0 }
 0x3ed   : > { %v6919_v46 = vpop.eup %6918  ;;  %v5177_v10 = vsel %vm5174_vm15, %v5176_v51, %v5172_v57  ;;  %v4941_v53 = vpop.f32.mrf.mxu2  ;;  %vm5204_vm1 = vcmp.eq.f32.partialorder %v5203_v15, 8.507059e+37  ;;  %v5206_v59 = vor.u32 1.1754944e-38, %v5205_v19 }
 0x3ee   : > { %v5278_v31 = vmul.f32 %v5177_v10, %v10102_v13  ;;  %v5180_v4 = vmul.f32 %v6919_v46, %v10143_v61  ;;  %vm5185_vm14 = vweird.f32 %v6919_v46  ;;  %v5188_v13 = vand.u32 2147483647, %v10143_v61  ;;  %v4631_v43 = vpop.f32.mrf.mxu3 }
 0x3ef   : > { %v10165_v62 = vadd.f32 %v4941_v53, %v4806_v24  ;;  %vm10168_vm10 = vmor %vm5184_vm12, %vm5185_vm14  ;;  %v5357_v12 = vunpack.c.l.b16 %v5309_v36  ;;  %v4652_v22 = vadd.f32 %v10005_v5, %v4631_v43 }
 0x3f0   : > { %v5294_v40 = vadd.f32 %v7018_v34, %v5278_v31  ;;  %v5181_v50 = vsub.f32 1.0, %v5180_v4  ;;  %vm5189_vm4 = vcmp.eq.f32.partialorder %v5188_v13, 8.507059e+37 }
 0x3f1   : > { %v6921_v48 = vpop.eup %6920  ;;  %v6477_v25 = vmul.f32 -1.442695, %v10165_v62  ;;  %v4808_v30 = vadd.f32 %v4790_v60, %v4652_v22 }
 0x3f2   : > { %v5182_v39 = vmul.f32 %v6919_v46, %v5181_v50  ;;  %v5310_v33 = vpack.c.bf16 %v5294_v40, %v5294_v40  ;;  %v6923_v37 = vpop.eup %6922  ;;  %v5195_v32 = vmul.f32 %v6921_v48, %v5024_v41  ;;  %vm5200_vm11 = vweird.f32 %v6921_v48 }
 0x3f3   : > { %v10176_v9 = vadd.f32 1.0, %v6923_v37  ;;  %6924 = vpow2.f32 %v6477_v25  ;;  %vm5201_vm9 = vmor %vm5199_vm6, %vm5200_vm11 }
 0x3f4   : > { %v5183_v49 = vadd.f32 %v6919_v46, %v5182_v39  ;;  %v5196_v45 = vsub.f32 1.0, %v5195_v32  ;;  %v5358_v23 = vunpack.c.l.b16 %v5310_v33 }
 0x3f5   : > { %6926 = vrcp.f32 %v10176_v9  ;;  %v4944_v3 = vpop.f32.mrf.mxu2  ;;  %vm5214_vm2 = vweird.f32 %v10176_v9  ;;  %v5220_v34 = vand.u32 2147483648, %v10176_v9  ;;  %v5218_v18 = vand.u32 2147483647, %v10176_v9 }
 0x3f6   : > { %v5187_v20 = vsel %vm10168_vm10, %v6919_v46, %v5183_v49  ;;  %v5197_v47 = vmul.f32 %v6921_v48, %v5196_v45  ;;  %v10179_v14 = vadd.f32 %v4944_v3, %v4807_v6  ;;  %v5369_v29 = vpack.c.b16 %v5358_v23, %v5357_v12  ;;  %v7021_v46 = vld [vmem:[#allocation2 + $0x78] sm:$0xff]  ;;  %vm10870_vm10 = vmmov %vm10868_vm0 }
 0x3f7   : > { %v5192_v61 = vsel %vm5189_vm4, %v5191_v8, %v5187_v20  ;;  %v5221_v2 = vor.u32 1.1754944e-38, %v5220_v34  ;;  %vm5219_vm15 = vcmp.eq.f32.partialorder %v5218_v18, 8.507059e+37  ;;  %vm10871_vm4 = vmmov %vm10869_vm8 }
 0x3f8   : > { %v5198_v52 = vadd.f32 %v6921_v48, %v5197_v47  ;;  %v5279_v7 = vmul.f32 %v5192_v61, %v10122_v42  ;;  %v6478_v11 = vmul.f32 -1.442695, %v10179_v14  ;;  %v7020_v42 = vld [vmem:[#allocation2 + $0x70] sm:$0xff]  ;;  %v5443_v5 = vsel %vm10868_vm0, %v5369_v29, %v5422_v26  ;;  %v7022_v47 = vld [vmem:[#allocation2 + $0x80] sm:$0xff] }
 0x3f9   : > { %v6925_v56 = vpop.eup %6924  ;;  %6484 = vmatmul.msk.bf16.gmra.mxu3 %vm10869_vm8, %v5443_v5 }
 0x3fa   : > { %v5202_v55 = vsel %vm5201_vm9, %v6921_v48, %v5198_v52  ;;  %v5026_v51 = vadd.f32 1.0, %v6925_v56  ;;  %6928 = vpow2.f32 %v6478_v11  ;;  %v5295_v41 = vadd.f32 %v7020_v42, %v5279_v7 }
 0x3fb   : > { %v6927_v0 = vpop.eup %6926  ;;  %v5207_v63 = vsel %vm5204_vm1, %v5206_v59, %v5202_v55 }
 0x3fc   : > { %v5280_v35 = vmul.f32 %v5207_v63, %v10135_v1  ;;  %v5210_v57 = vmul.f32 %v6927_v0, %v10176_v9  ;;  %6930 = vrcp.f32 %v5026_v51  ;;  %vm5215_vm5 = vweird.f32 %v6927_v0 }
 0x3fd   : > { %v4946_v31 = vpop.f32.mrf.mxu2  ;;  %v5311_v50 = vpack.c.bf16 %v5295_v41, %v5295_v41  ;;  %vm5216_vm13 = vmor %vm5214_vm2, %vm5215_vm5  ;;  %v5235_v37 = vand.u32 2147483648, %v5026_v51  ;;  %v5233_v21 = vand.u32 2147483647, %v5026_v51  ;;  %vm5229_vm7 = vweird.f32 %v5026_v51 }
 0x3fe   : > { %v5296_v10 = vadd.f32 %v7021_v46, %v5280_v35  ;;  %v5211_v38 = vsub.f32 1.0, %v5210_v57  ;;  %v10188_v1 = vadd.f32 %v4946_v31, %v4808_v30  ;;  %vm10872_vm5 = vmmov %vm10870_vm10  ;;  %v7024_v31 = vld [vmem:[#allocation2 + $0x90] sm:$0xff] }
 0x3ff   : > { %v5359_v48 = vunpack.c.l.b16 %v5311_v50  ;;  %v5236_v9 = vor.u32 1.1754944e-38, %v5235_v37  ;;  %vm5234_vm12 = vcmp.eq.f32.partialorder %v5233_v21, 8.507059e+37  ;;  %v7025_v50 = vld [vmem:[#allocation2 + $0x98] sm:$0xff] }
 0x400   : > { %v5312_v4 = vpack.c.bf16 %v5296_v10, %v5296_v10  ;;  %v5212_v17 = vmul.f32 %v6927_v0, %v5211_v38  ;;  %v6929_v40 = vpop.eup %6928  ;;  %v6479_v53 = vmul.f32 -1.442695, %v10188_v1  ;;  %v5426_v10 = vpop.permute.xlu2 %5425 }
 0x401   : > { %v5027_v54 = vadd.f32 1.0, %v6929_v40 }
 0x402   : > { %v5213_v16 = vadd.f32 %v6927_v0, %v5212_v17  ;;  %v6931_v24 = vpop.eup %6930  ;;  %v5360_v27 = vunpack.c.l.b16 %v5312_v4 }
 0x403   : > { %v5225_v13 = vmul.f32 %v6931_v24, %v5026_v51  ;;  %6932 = vrcp.f32 %v5027_v54  ;;  %vm5230_vm3 = vweird.f32 %v6931_v24  ;;  %vm5244_vm6 = vweird.f32 %v5027_v54 }
 0x404   : > { %v5217_v39 = vsel %vm5216_vm13, %v6927_v0, %v5213_v16  ;;  %6934 = vpow2.f32 %v6479_v53  ;;  %v5370_v44 = vpack.c.b16 %v5360_v27, %v5359_v48  ;;  %vm5231_vm14 = vmor %vm5229_vm7, %vm5230_vm3  ;;  %v5250_v7 = vand.u32 2147483648, %v5027_v54  ;;  %v5428_v27 = vpop.permute.xlu0 %5427 }
 0x405   : > { %v5226_v33 = vsub.f32 1.0, %v5225_v13  ;;  %v5222_v49 = vsel %vm5219_vm15, %v5221_v2, %v5217_v39  ;;  %v5248_v55 = vand.u32 2147483647, %v5027_v54  ;;  %vm10873_vm15 = vmmov %vm10871_vm4  ;;  %v10207_v13 = vld [vmem:[%s10346_s12] ss:$0 sm:$0xff] }
 0x406   : > { %v5281_v25 = vmul.f32 %v5222_v49, %v10154_v28  ;;  %v5446_v15 = vsel %vm10870_vm10, %v5370_v44, %v5424_v58  ;;  %v7023_v28 = vld [vmem:[#allocation2 + $0x88] sm:$0xff]  ;;  %v5251_v63 = vor.u32 1.1754944e-38, %v5250_v7  ;;  %vm10874_vm3 = vmmov %vm10872_vm5 }
 0x407   : > { %v5227_v32 = vmul.f32 %v6931_v24, %v5226_v33  ;;  %vm5249_vm1 = vcmp.eq.f32.partialorder %v5248_v55, 8.507059e+37  ;;  %vm10875_vm7 = vmmov %vm10871_vm4 }
 0x408   : > { %v5297_v6 = vadd.f32 %v7022_v47, %v5281_v25 }
 0x409   : > { %v5228_v36 = vadd.f32 %v6931_v24, %v5227_v32  ;;  %v6933_v20 = vpop.eup %6932  ;;  %6485 = vmatmul.msk.bf16.gmra.mxu3 %vm10871_vm4, %v5446_v15 }
 0x40a   : > { %v6935_v8 = vpop.eup %6934  ;;  %v5240_v23 = vmul.f32 %v6933_v20, %v5027_v54  ;;  %vm5245_vm11 = vweird.f32 %v6933_v20  ;;  %v5313_v59 = vpack.c.bf16 %v5297_v6, %v5297_v6 }
 0x40b   : > { %v5232_v45 = vsel %vm5231_vm14, %v6931_v24, %v5228_v36  ;;  %v5028_v61 = vadd.f32 1.0, %v6935_v8  ;;  %vm5246_vm9 = vmor %vm5244_vm6, %vm5245_vm11 }
 0x40c   : > { %v5237_v19 = vsel %vm5234_vm12, %v5236_v9, %v5232_v45  ;;  %v5241_v3 = vsub.f32 1.0, %v5240_v23  ;;  %vm10876_vm11 = vmmov %vm10875_vm7 }
 0x40d   : > { %v5282_v43 = vmul.f32 %v5237_v19, %v10165_v62  ;;  %6936 = vrcp.f32 %v5028_v61  ;;  %v5361_v62 = vunpack.c.l.b16 %v5313_v59  ;;  %v5265_v42 = vand.u32 2147483648, %v5028_v61 }
 0x40e   : > { %v5242_v52 = vmul.f32 %v6933_v20, %v5241_v3  ;;  %v5263_v46 = vand.u32 2147483647, %v5028_v61  ;;  %vm5259_vm8 = vweird.f32 %v5028_v61 }
 0x40f   : > { %v5298_v12 = vadd.f32 %v7023_v28, %v5282_v43  ;;  %v5266_v30 = vor.u32 1.1754944e-38, %v5265_v42 }
 0x410   : > { %v5243_v29 = vadd.f32 %v6933_v20, %v5242_v52  ;;  %vm5264_vm13 = vcmp.eq.f32.partialorder %v5263_v46, 8.507059e+37 }
 0x411   : > { %v5314_v56 = vpack.c.bf16 %v5298_v12, %v5298_v12 }
 0x412   : > { %v5247_v11 = vsel %vm5246_vm9, %v6933_v20, %v5243_v29 }
 0x413   : > { %v5362_v22 = vunpack.c.l.b16 %v5314_v56  ;;  %v6937_v0 = vpop.eup %6936  ;;  %v5252_v35 = vsel %vm5249_vm1, %v5251_v63, %v5247_v11 }
 0x414   : > { %v5255_v51 = vmul.f32 %v6937_v0, %v5028_v61  ;;  %v5283_v41 = vmul.f32 %v5252_v35, %v10179_v14  ;;  %vm5260_vm0 = vweird.f32 %v6937_v0 }
 0x415   : > { %v5371_v57 = vpack.c.b16 %v5362_v22, %v5361_v62  ;;  %vm5261_vm2 = vmor %vm5259_vm8, %vm5260_vm0 }
 0x416   : > { %v5256_v26 = vsub.f32 1.0, %v5255_v51  ;;  %v5299_v4 = vadd.f32 %v7024_v31, %v5283_v41  ;;  %vm10877_vm8 = vmmov %vm10875_vm7 }
 0x417   : > { %v5449_v5 = vsel %vm10872_vm5, %v5371_v57, %v5426_v10 }
 0x418   : > { %v5257_v60 = vmul.f32 %v6937_v0, %v5256_v26  ;;  %v5315_v14 = vpack.c.bf16 %v5299_v4, %v5299_v4 }
 0x419   : > { %6486 = vmatmul.msk.bf16.gmra.mxu3 %vm10873_vm15, %v5449_v5 }
 0x41a   : > { %v5258_v38 = vadd.f32 %v6937_v0, %v5257_v60  ;;  %v5363_v53 = vunpack.c.l.b16 %v5315_v14 }
 0x41c   : > { %v5262_v17 = vsel %vm5261_vm2, %v6937_v0, %v5258_v38 }
 0x41d   : > { %v5267_v34 = vsel %vm5264_vm13, %v5266_v30, %v5262_v17 }
 0x41e   : > { %v5284_v40 = vmul.f32 %v5267_v34, %v10188_v1 }
 0x420   : > { %v5300_v16 = vadd.f32 %v7025_v50, %v5284_v40 }
 0x422   : > { %v5316_v18 = vpack.c.bf16 %v5300_v16, %v5300_v16 }
 0x424   : > { %v5364_v24 = vunpack.c.l.b16 %v5316_v18 }
 0x426   : > { %v5372_v54 = vpack.c.b16 %v5364_v24, %v5363_v53 }
 0x428   : > { %v5452_v39 = vsel %vm10874_vm3, %v5372_v54, %v5428_v27 }
 0x429   : > { %6487 = vmatmul.msk.bf16.gmra.mxu3 %vm10875_vm7, %v5452_v39 }
 0x43a   : > { %v5486_v2 = vpop.f32.mrf.mxu3 }
 0x43b   : > { %v5487_v1 = vadd.f32 %v10207_v13, %v5486_v2 }
 0x43d   : > { %v6488_v48 = vmul.f32 -1.442695, %v5487_v1 }
 0x43f   : > { %6938 = vpow2.f32 %v6488_v48 }
 0x442   : > { %v5488_v33 = vpop.f32.mrf.mxu3 }
 0x443   : > { %v5489_v49 = vadd.f32 %v10207_v13, %v5488_v33 }
 0x445   : > { %v6939_v37 = vpop.eup %6938  ;;  %v6489_v44 = vmul.f32 -1.442695, %v5489_v49 }
 0x446   : > { %v5574_v32 = vadd.f32 1.0, %v6939_v37 }
 0x447   : > { %6940 = vpow2.f32 %v6489_v44 }
 0x448   : > { %6942 = vrcp.f32 %v5574_v32  ;;  %v5601_v23 = vand.u32 2147483648, %v5574_v32  ;;  %v5599_v19 = vand.u32 2147483647, %v5574_v32  ;;  %vm5595_vm12 = vweird.f32 %v5574_v32 }
 0x44a   : > { %v5491_v21 = vpop.f32.mrf.mxu3  ;;  %v5602_v3 = vor.u32 1.1754944e-38, %v5601_v23  ;;  %vm5600_vm4 = vcmp.eq.f32.partialorder %v5599_v19, 8.507059e+37 }
 0x44b   : > { %v10212_v25 = vadd.f32 %v10207_v13, %v5491_v21 }
 0x44d   : > { %v6941_v36 = vpop.eup %6940  ;;  %v6490_v9 = vmul.f32 -1.442695, %v10212_v25 }
 0x44e   : > { %v6943_v20 = vpop.eup %6942  ;;  %v5575_v58 = vadd.f32 1.0, %v6941_v36 }
 0x44f   : > { %v5591_v8 = vmul.f32 %v6943_v20, %v5574_v32  ;;  %vm5596_vm14 = vweird.f32 %v6943_v20 }
 0x450   : > { %6944 = vrcp.f32 %v5575_v58  ;;  %vm5597_vm10 = vmor %vm5595_vm12, %vm5596_vm14  ;;  %v5616_v22 = vand.u32 2147483648, %v5575_v58  ;;  %v5614_v0 = vand.u32 2147483647, %v5575_v58  ;;  %vm5610_vm9 = vweird.f32 %v5575_v58 }
 0x451   : > { %v5592_v45 = vsub.f32 1.0, %v5591_v8  ;;  %6946 = vpow2.f32 %v6490_v9 }
 0x452   : > { %v5493_v61 = vpop.f32.mrf.mxu3  ;;  %v5617_v35 = vor.u32 1.1754944e-38, %v5616_v22  ;;  %vm5615_vm0 = vcmp.eq.f32.partialorder %v5614_v0, 8.507059e+37 }
 0x453   : > { %v5593_v15 = vmul.f32 %v6943_v20, %v5592_v45  ;;  %v10216_v47 = vadd.f32 %v10207_v13, %v5493_v61 }
 0x455   : > { %v5594_v6 = vadd.f32 %v6943_v20, %v5593_v15  ;;  %v6491_v28 = vmul.f32 -1.442695, %v10216_v47 }
 0x456   : > { %v6945_v43 = vpop.eup %6944 }
 0x457   : > { %v6947_v12 = vpop.eup %6946  ;;  %v5598_v52 = vsel %vm5597_vm10, %v6943_v20, %v5594_v6  ;;  %v5606_v7 = vmul.f32 %v6945_v43, %v5575_v58  ;;  %6948 = vpow2.f32 %v6491_v28  ;;  %vm5611_vm6 = vweird.f32 %v6945_v43 }
 0x458   : > { %v5603_v59 = vsel %vm5600_vm4, %v5602_v3, %v5598_v52  ;;  %v5576_v56 = vadd.f32 1.0, %v6947_v12  ;;  %vm5612_vm1 = vmor %vm5610_vm9, %vm5611_vm6 }
 0x459   : > { %v5830_v29 = vmul.f32 %v5603_v59, %v5487_v1  ;;  %v5607_v55 = vsub.f32 1.0, %v5606_v7  ;;  %vm10878_vm4 = vmmov %vm10875_vm7 }
 0x45a   : > { %6950 = vrcp.f32 %v5576_v56  ;;  %v5496_v62 = vpop.f32.mrf.mxu3  ;;  %v5631_v30 = vand.u32 2147483648, %v5576_v56  ;;  %v5629_v4 = vand.u32 2147483647, %v5576_v56  ;;  %vm5625_vm2 = vweird.f32 %v5576_v56 }
 0x45b   : > { %5846 = vst.msk [vmem:[%s10223_s24] sm:$0xff] %vm10876_vm11, %v5830_v29  ;;  %v5608_v11 = vmul.f32 %v6945_v43, %v5607_v55  ;;  %v10228_v57 = vadd.f32 %v10207_v13, %v5496_v62 }
 0x45c   : > { %v5632_v16 = vor.u32 1.1754944e-38, %v5631_v30  ;;  %vm5630_vm15 = vcmp.eq.f32.partialorder %v5629_v4, 8.507059e+37 }
 0x45d   : > { %v5609_v63 = vadd.f32 %v6945_v43, %v5608_v11  ;;  %v6949_v51 = vpop.eup %6948  ;;  %v6492_v46 = vmul.f32 -1.442695, %v10228_v57 }
 0x45e   : > { %v5577_v42 = vadd.f32 1.0, %v6949_v51 }
 0x45f   : > { %v5613_v26 = vsel %vm5612_vm1, %v6945_v43, %v5609_v63 }
 0x460   : > { %v6951_v41 = vpop.eup %6950  ;;  %v5618_v60 = vsel %vm5615_vm0, %v5617_v35, %v5613_v26  ;;  %6952 = vrcp.f32 %v5577_v42  ;;  %v5646_v1 = vand.u32 2147483648, %v5577_v42  ;;  %v5644_v33 = vand.u32 2147483647, %v5577_v42  ;;  %vm10879_vm0 = vmmov %vm10878_vm4 }
 0x461   : > { %v5831_v10 = vmul.f32 %v5618_v60, %v5489_v49  ;;  %v5621_v38 = vmul.f32 %v6951_v41, %v5576_v56  ;;  %6954 = vpow2.f32 %v6492_v46  ;;  %vm5626_vm5 = vweird.f32 %v6951_v41 }
 0x462   : > { %v5498_v17 = vpop.f32.mrf.mxu3  ;;  %vm5627_vm13 = vmor %vm5625_vm2, %vm5626_vm5  ;;  %vm5640_vm14 = vweird.f32 %v5577_v42  ;;  %v5647_v37 = vor.u32 1.1754944e-38, %v5646_v1  ;;  %vm5645_vm10 = vcmp.eq.f32.partialorder %v5644_v33, 8.507059e+37 }
 0x463   : > { %5847 = vst.msk [vmem:[%s10223_s24 + $0x8] sm:$0xff] %vm10877_vm8, %v5831_v10  ;;  %v5622_v5 = vsub.f32 1.0, %v5621_v38  ;;  %v10234_v34 = vadd.f32 %v10207_v13, %v5498_v17 }
 0x465   : > { %v5623_v31 = vmul.f32 %v6951_v41, %v5622_v5  ;;  %v6493_v53 = vmul.f32 -1.442695, %v10234_v34 }
 0x466   : > { %v6953_v40 = vpop.eup %6952 }
 0x467   : > { %v5624_v14 = vadd.f32 %v6951_v41, %v5623_v31  ;;  %v6955_v50 = vpop.eup %6954  ;;  %v5636_v18 = vmul.f32 %v6953_v40, %v5577_v42  ;;  %6956 = vpow2.f32 %v6493_v53  ;;  %vm5641_vm3 = vweird.f32 %v6953_v40 }
 0x468   : > { %v5578_v54 = vadd.f32 1.0, %v6955_v50  ;;  %vm5642_vm12 = vmor %vm5640_vm14, %vm5641_vm3 }
 0x469   : > { %v5628_v24 = vsel %vm5627_vm13, %v6951_v41, %v5624_v14  ;;  %v5637_v39 = vsub.f32 1.0, %v5636_v18 }
 0x46a   : > { %v5633_v27 = vsel %vm5630_vm15, %v5632_v16, %v5628_v24  ;;  %6958 = vrcp.f32 %v5578_v54  ;;  %v5501_v44 = vpop.f32.mrf.mxu3  ;;  %v5661_v15 = vand.u32 2147483648, %v5578_v54  ;;  %v5659_v61 = vand.u32 2147483647, %v5578_v54  ;;  %vm10880_vm15 = vmmov %vm10879_vm0 }
 0x46b   : > { %v5832_v2 = vmul.f32 %v5633_v27, %v10212_v25  ;;  %v5638_v48 = vmul.f32 %v6953_v40, %v5637_v39  ;;  %v10241_v36 = vadd.f32 %v10207_v13, %v5501_v44  ;;  %vm5655_vm6 = vweird.f32 %v5578_v54 }
 0x46c   : > { %v5662_v28 = vor.u32 1.1754944e-38, %v5661_v15  ;;  %vm5660_vm1 = vcmp.eq.f32.partialorder %v5659_v61, 8.507059e+37 }
 0x46d   : > { %5848 = vst.msk [vmem:[%s10223_s24 + $0x10] sm:$0xff] %vm10875_vm7, %v5832_v2  ;;  %v5639_v49 = vadd.f32 %v6953_v40, %v5638_v48  ;;  %v6957_v32 = vpop.eup %6956  ;;  %v6494_v45 = vmul.f32 -1.442695, %v10241_v36 }
 0x46e   : > { %v5579_v58 = vadd.f32 1.0, %v6957_v32 }
 0x46f   : > { %v5643_v21 = vsel %vm5642_vm12, %v6953_v40, %v5639_v49 }
 0x470   : > { %v6959_v25 = vpop.eup %6958  ;;  %v5648_v20 = vsel %vm5645_vm10, %v5647_v37, %v5643_v21  ;;  %6960 = vrcp.f32 %v5579_v58  ;;  %v5676_v11 = vand.u32 2147483648, %v5579_v58  ;;  %v5674_v63 = vand.u32 2147483647, %v5579_v58  ;;  %vm10881_vm10 = vmmov %vm10879_vm0 }
 0x471   : > { %v5833_v9 = vmul.f32 %v5648_v20, %v10216_v47  ;;  %v5651_v8 = vmul.f32 %v6959_v25, %v5578_v54  ;;  %6962 = vpow2.f32 %v6494_v45  ;;  %vm5656_vm11 = vweird.f32 %v6959_v25 }
 0x472   : > { %v5503_v6 = vpop.f32.mrf.mxu3  ;;  %vm5657_vm9 = vmor %vm5655_vm6, %vm5656_vm11  ;;  %vm5670_vm5 = vweird.f32 %v5579_v58  ;;  %v5677_v35 = vor.u32 1.1754944e-38, %v5676_v11  ;;  %vm5675_vm13 = vcmp.eq.f32.partialorder %v5674_v63, 8.507059e+37 }
 0x473   : > { %5849 = vst.msk [vmem:[%s10223_s24 + $0x18] sm:$0xff] %vm10878_vm4, %v5833_v9  ;;  %v5652_v23 = vsub.f32 1.0, %v5651_v8  ;;  %v10248_v3 = vadd.f32 %v10207_v13, %v5503_v6 }
 0x475   : > { %v5653_v19 = vmul.f32 %v6959_v25, %v5652_v23  ;;  %v6495_v59 = vmul.f32 -1.442695, %v10248_v3 }
 0x476   : > { %v6961_v47 = vpop.eup %6960 }
 0x477   : > { %v5654_v43 = vadd.f32 %v6959_v25, %v5653_v19  ;;  %v6963_v12 = vpop.eup %6962  ;;  %v5666_v7 = vmul.f32 %v6961_v47, %v5579_v58  ;;  %6964 = vpow2.f32 %v6495_v59  ;;  %vm5671_vm8 = vweird.f32 %v6961_v47 }
 0x478   : > { %v5580_v29 = vadd.f32 1.0, %v6963_v12  ;;  %vm5672_vm2 = vmor %vm5670_vm5, %vm5671_vm8 }
 0x479   : > { %v5658_v52 = vsel %vm5657_vm9, %v6959_v25, %v5654_v43  ;;  %v5667_v22 = vsub.f32 1.0, %v5666_v7 }
 0x47a   : > { %v5663_v56 = vsel %vm5660_vm1, %v5662_v28, %v5658_v52  ;;  %6966 = vrcp.f32 %v5580_v29  ;;  %v5691_v31 = vand.u32 2147483648, %v5580_v29  ;;  %v5689_v17 = vand.u32 2147483647, %v5580_v29  ;;  %vm10882_vm1 = vmmov %vm10879_vm0 }
 0x47b   : > { %v5834_v55 = vmul.f32 %v5663_v56, %v10228_v57  ;;  %v5668_v0 = vmul.f32 %v6961_v47, %v5667_v22  ;;  %vm5685_vm7 = vweird.f32 %v5580_v29 }
 0x47c   : > { %v5506_v51 = vpop.f32.mrf.mxu3  ;;  %vm5690_vm12 = vcmp.eq.f32.partialorder %v5689_v17, 8.507059e+37 }
 0x47d   : > { %5850 = vst.msk [vmem:[%s10223_s24 + $0x20] sm:$0xff] %vm10879_vm0, %v5834_v55  ;;  %v5669_v62 = vadd.f32 %v6961_v47, %v5668_v0  ;;  %v10255_v26 = vadd.f32 %v10207_v13, %v5506_v51  ;;  %v6965_v42 = vpop.eup %6964 }
 0x47e   : > { %v5581_v46 = vadd.f32 1.0, %v6965_v42 }
 0x47f   : > { %v5673_v57 = vsel %vm5672_vm2, %v6961_v47, %v5669_v62  ;;  %v6496_v10 = vmul.f32 -1.442695, %v10255_v26 }
 0x480   : > { %v6967_v41 = vpop.eup %6966  ;;  %v5678_v60 = vsel %vm5675_vm13, %v5677_v35, %v5673_v57  ;;  %6968 = vrcp.f32 %v5581_v46  ;;  %v5706_v48 = vand.u32 2147483648, %v5581_v46  ;;  %v5704_v49 = vand.u32 2147483647, %v5581_v46 }
 0x481   : > { %v5835_v38 = vmul.f32 %v5678_v60, %v10234_v34  ;;  %v5681_v5 = vmul.f32 %v6967_v41, %v5580_v29  ;;  %6970 = vpow2.f32 %v6496_v10  ;;  %vm5686_vm3 = vweird.f32 %v6967_v41 }
 0x482   : > { %vm5687_vm14 = vmor %vm5685_vm7, %vm5686_vm3  ;;  %v5692_v34 = vor.u32 1.1754944e-38, %v5691_v31  ;;  %vm5700_vm11 = vweird.f32 %v5581_v46  ;;  %v5707_v25 = vor.u32 1.1754944e-38, %v5706_v48  ;;  %vm5705_vm9 = vcmp.eq.f32.partialorder %v5704_v49, 8.507059e+37 }
 0x483   : > { %5851 = vst.msk [vmem:[%s10223_s24 + $0x28] sm:$0xff] %vm10880_vm15, %v5835_v38  ;;  %v5682_v30 = vsub.f32 1.0, %v5681_v5  ;;  %vm10883_vm15 = vmmov %vm10882_vm1 }
 0x484   : > { %v5508_v40 = vpop.f32.mrf.mxu3 }
 0x485   : > { %v5683_v4 = vmul.f32 %v6967_v41, %v5682_v30  ;;  %v10262_v14 = vadd.f32 %v10207_v13, %v5508_v40 }
 0x486   : > { %v6969_v16 = vpop.eup %6968 }
 0x487   : > { %v5684_v50 = vadd.f32 %v6967_v41, %v5683_v4  ;;  %v6497_v18 = vmul.f32 -1.442695, %v10262_v14  ;;  %v6971_v53 = vpop.eup %6970  ;;  %v5696_v54 = vmul.f32 %v6969_v16, %v5581_v46  ;;  %vm5701_vm4 = vweird.f32 %v6969_v16 }
 0x488   : > { %v5582_v39 = vadd.f32 1.0, %v6971_v53  ;;  %vm5702_vm6 = vmor %vm5700_vm11, %vm5701_vm4 }
 0x489   : > { %v5688_v24 = vsel %vm5687_vm14, %v6967_v41, %v5684_v50  ;;  %6972 = vpow2.f32 %v6497_v18  ;;  %v5697_v1 = vsub.f32 1.0, %v5696_v54 }
 0x48a   : > { %v5693_v27 = vsel %vm5690_vm12, %v5692_v34, %v5688_v24  ;;  %6974 = vrcp.f32 %v5582_v39  ;;  %v5721_v61 = vand.u32 2147483648, %v5582_v39  ;;  %v5719_v47 = vand.u32 2147483647, %v5582_v39  ;;  %vm10884_vm12 = vmmov %vm10882_vm1 }
 0x48b   : > { %v5836_v2 = vmul.f32 %v5693_v27, %v10241_v36  ;;  %v5698_v33 = vmul.f32 %v6969_v16, %v5697_v1  ;;  %vm5715_vm8 = vweird.f32 %v5582_v39 }
 0x48c   : > { %v5511_v37 = vpop.f32.mrf.mxu3  ;;  %v5722_v59 = vor.u32 1.1754944e-38, %v5721_v61  ;;  %vm5720_vm2 = vcmp.eq.f32.partialorder %v5719_v47, 8.507059e+37 }
 0x48d   : > { %5852 = vst.msk [vmem:[%s10223_s24 + $0x30] sm:$0xff] %vm10881_vm10, %v5836_v2  ;;  %v10269_v44 = vadd.f32 %v10207_v13, %v5511_v37  ;;  %v5699_v32 = vadd.f32 %v6969_v16, %v5698_v33 }
 0x48f   : > { %v6973_v21 = vpop.eup %6972  ;;  %v6498_v36 = vmul.f32 -1.442695, %v10269_v44  ;;  %v5703_v20 = vsel %vm5702_vm6, %v6969_v16, %v5699_v32 }
 0x490   : > { %v5583_v58 = vadd.f32 1.0, %v6973_v21  ;;  %v6975_v9 = vpop.eup %6974  ;;  %v5708_v8 = vsel %vm5705_vm9, %v5707_v25, %v5703_v20  ;;  %vm10885_vm9 = vmmov %vm10882_vm1 }
 0x491   : > { %6976 = vpow2.f32 %v6498_v36  ;;  %v5837_v45 = vmul.f32 %v5708_v8, %v10248_v3  ;;  %v5711_v23 = vmul.f32 %v6975_v9, %v5582_v39  ;;  %vm5716_vm0 = vweird.f32 %v6975_v9 }
 0x492   : > { %6978 = vrcp.f32 %v5583_v58  ;;  %vm5717_vm5 = vmor %vm5715_vm8, %vm5716_vm0  ;;  %v5736_v0 = vand.u32 2147483648, %v5583_v58  ;;  %v5734_v51 = vand.u32 2147483647, %v5583_v58  ;;  %vm5730_vm3 = vweird.f32 %v5583_v58 }
 0x493   : > { %5853 = vst.msk [vmem:[%s10223_s24 + $0x38] sm:$0xff] %vm10882_vm1, %v5837_v45  ;;  %v5712_v15 = vsub.f32 1.0, %v5711_v23 }
 0x494   : > { %v5513_v19 = vpop.f32.mrf.mxu3  ;;  %v5737_v46 = vor.u32 1.1754944e-38, %v5736_v0  ;;  %vm5735_vm14 = vcmp.eq.f32.partialorder %v5734_v51, 8.507059e+37 }
 0x495   : > { %v10276_v6 = vadd.f32 %v10207_v13, %v5513_v19  ;;  %v5713_v43 = vmul.f32 %v6975_v9, %v5712_v15 }
 0x497   : > { %v6977_v28 = vpop.eup %6976  ;;  %v6499_v12 = vmul.f32 -1.442695, %v10276_v6  ;;  %v5714_v7 = vadd.f32 %v6975_v9, %v5713_v43 }
 0x498   : > { %v6979_v52 = vpop.eup %6978  ;;  %v5584_v3 = vadd.f32 1.0, %v6977_v28 }
 0x499   : > { %v5726_v56 = vmul.f32 %v6979_v52, %v5583_v58  ;;  %6980 = vpow2.f32 %v6499_v12  ;;  %v5718_v29 = vsel %vm5717_vm5, %v6975_v9, %v5714_v7  ;;  %vm5731_vm13 = vweird.f32 %v6979_v52 }
 0x49a   : > { %6982 = vrcp.f32 %v5584_v3  ;;  %v5723_v55 = vsel %vm5720_vm2, %v5722_v59, %v5718_v29  ;;  %vm5732_vm7 = vmor %vm5730_vm3, %vm5731_vm13  ;;  %v5751_v4 = vand.u32 2147483648, %v5584_v3  ;;  %v5749_v50 = vand.u32 2147483647, %v5584_v3 }
 0x49b   : > { %v5727_v22 = vsub.f32 1.0, %v5726_v56  ;;  %v5838_v11 = vmul.f32 %v5723_v55, %v10255_v26  ;;  %vm5745_vm4 = vweird.f32 %v5584_v3  ;;  %vm10886_vm2 = vmmov %vm10885_vm9 }
 0x49c   : > { %v5516_v63 = vpop.f32.mrf.mxu3  ;;  %vm5750_vm6 = vcmp.eq.f32.partialorder %v5749_v50, 8.507059e+37 }
 0x49d   : > { %v5728_v62 = vmul.f32 %v6979_v52, %v5727_v22  ;;  %v10281_v35 = vadd.f32 %v10207_v13, %v5516_v63  ;;  %5854 = vst.msk [vmem:[%s10223_s24 + $0x40] sm:$0xff] %vm10883_vm15, %v5838_v11 }
 0x49f   : > { %v6981_v42 = vpop.eup %6980  ;;  %v5729_v57 = vadd.f32 %v6979_v52, %v5728_v62  ;;  %v6500_v41 = vmul.f32 -1.442695, %v10281_v35 }
 0x4a0   : > { %v6983_v60 = vpop.eup %6982  ;;  %v5585_v26 = vadd.f32 1.0, %v6981_v42 }
 0x4a1   : > { %v5733_v10 = vsel %vm5732_vm7, %v6979_v52, %v5729_v57  ;;  %v5741_v38 = vmul.f32 %v6983_v60, %v5584_v3  ;;  %6984 = vpow2.f32 %v6500_v41  ;;  %vm5746_vm10 = vweird.f32 %v6983_v60 }
 0x4a2   : > { %v5738_v5 = vsel %vm5735_vm14, %v5737_v46, %v5733_v10  ;;  %6986 = vrcp.f32 %v5585_v26  ;;  %vm5747_vm11 = vmor %vm5745_vm4, %vm5746_vm10  ;;  %v5766_v33 = vand.u32 2147483648, %v5585_v26  ;;  %v5764_v32 = vand.u32 2147483647, %v5585_v26 }
 0x4a3   : > { %v5839_v30 = vmul.f32 %v5738_v5, %v10262_v14  ;;  %v5742_v31 = vsub.f32 1.0, %v5741_v38  ;;  %v5752_v14 = vor.u32 1.1754944e-38, %v5751_v4  ;;  %vm5760_vm0 = vweird.f32 %v5585_v26  ;;  %vm10887_vm14 = vmmov %vm10886_vm2 }
 0x4a4   : > { %v5518_v17 = vpop.f32.mrf.mxu3  ;;  %vm5765_vm5 = vcmp.eq.f32.partialorder %v5764_v32, 8.507059e+37 }
 0x4a5   : > { %5855 = vst.msk [vmem:[%s10223_s24 + $0x48] sm:$0xff] %vm10884_vm12, %v5839_v30  ;;  %v5743_v40 = vmul.f32 %v6983_v60, %v5742_v31  ;;  %v10290_v16 = vadd.f32 %v10207_v13, %v5518_v17 }
 0x4a7   : > { %v6985_v34 = vpop.eup %6984  ;;  %v5744_v18 = vadd.f32 %v6983_v60, %v5743_v40  ;;  %v6501_v53 = vmul.f32 -1.442695, %v10290_v16 }
 0x4a8   : > { %v6987_v24 = vpop.eup %6986  ;;  %v5586_v54 = vadd.f32 1.0, %v6985_v34 }
 0x4a9   : > { %v5748_v27 = vsel %vm5747_vm11, %v6983_v60, %v5744_v18  ;;  %v5756_v39 = vmul.f32 %v6987_v24, %v5585_v26  ;;  %6988 = vpow2.f32 %v6501_v53  ;;  %vm5761_vm1 = vweird.f32 %v6987_v24 }
 0x4aa   : > { %v5753_v2 = vsel %vm5750_vm6, %v5752_v14, %v5748_v27  ;;  %6990 = vrcp.f32 %v5586_v54  ;;  %vm5762_vm8 = vmor %vm5760_vm0, %vm5761_vm1  ;;  %v5781_v61 = vand.u32 2147483648, %v5586_v54  ;;  %v5779_v28 = vand.u32 2147483647, %v5586_v54 }
 0x4ab   : > { %v5840_v1 = vmul.f32 %v5753_v2, %v10269_v44  ;;  %v5757_v48 = vsub.f32 1.0, %v5756_v39  ;;  %v5767_v44 = vor.u32 1.1754944e-38, %v5766_v33  ;;  %vm5775_vm15 = vweird.f32 %v5586_v54  ;;  %vm10888_vm6 = vmmov %vm10886_vm2 }
 0x4ac   : > { %v5521_v49 = vpop.f32.mrf.mxu3  ;;  %vm5780_vm7 = vcmp.eq.f32.partialorder %v5779_v28, 8.507059e+37 }
 0x4ad   : > { %5856 = vst.msk [vmem:[%s10223_s24 + $0x50] sm:$0xff] %vm10885_vm9, %v5840_v1  ;;  %v5758_v37 = vmul.f32 %v6987_v24, %v5757_v48  ;;  %v10297_v21 = vadd.f32 %v10207_v13, %v5521_v49 }
 0x4af   : > { %v6989_v25 = vpop.eup %6988  ;;  %v5759_v36 = vadd.f32 %v6987_v24, %v5758_v37  ;;  %v6502_v20 = vmul.f32 -1.442695, %v10297_v21 }
 0x4b0   : > { %v6991_v58 = vpop.eup %6990  ;;  %v5587_v9 = vadd.f32 1.0, %v6989_v25 }
 0x4b1   : > { %v5763_v8 = vsel %vm5762_vm8, %v6987_v24, %v5759_v36  ;;  %v5771_v45 = vmul.f32 %v6991_v58, %v5586_v54  ;;  %6992 = vpow2.f32 %v6502_v20  ;;  %vm5776_vm13 = vweird.f32 %v6991_v58 }
 0x4b2   : > { %v5768_v23 = vsel %vm5765_vm5, %v5767_v44, %v5763_v8  ;;  %6994 = vrcp.f32 %v5587_v9  ;;  %vm5777_vm3 = vmor %vm5775_vm15, %vm5776_vm13  ;;  %v5796_v0 = vand.u32 2147483648, %v5587_v9  ;;  %v5794_v62 = vand.u32 2147483647, %v5587_v9 }
 0x4b3   : > { %v5841_v15 = vmul.f32 %v5768_v23, %v10276_v6  ;;  %v5772_v19 = vsub.f32 1.0, %v5771_v45  ;;  %v5782_v6 = vor.u32 1.1754944e-38, %v5781_v61  ;;  %vm5790_vm10 = vweird.f32 %v5587_v9  ;;  %vm10889_vm5 = vmmov %vm10886_vm2 }
 0x4b4   : > { %v5523_v43 = vpop.f32.mrf.mxu3  ;;  %v5797_v41 = vor.u32 1.1754944e-38, %v5796_v0  ;;  %vm5795_vm11 = vcmp.eq.f32.partialorder %v5794_v62, 8.507059e+37 }
 0x4b5   : > { %5857 = vst.msk [vmem:[%s10223_s24 + $0x58] sm:$0xff] %vm10886_vm2, %v5841_v15  ;;  %v5773_v47 = vmul.f32 %v6991_v58, %v5772_v19  ;;  %v10304_v12 = vadd.f32 %v10207_v13, %v5523_v43 }
 0x4b7   : > { %v6993_v52 = vpop.eup %6992  ;;  %v5774_v7 = vadd.f32 %v6991_v58, %v5773_v47  ;;  %v6503_v3 = vmul.f32 -1.442695, %v10304_v12 }
 0x4b8   : > { %v6995_v59 = vpop.eup %6994  ;;  %v5588_v56 = vadd.f32 1.0, %v6993_v52 }
 0x4b9   : > { %v5778_v29 = vsel %vm5777_vm3, %v6991_v58, %v5774_v7  ;;  %v5786_v55 = vmul.f32 %v6995_v59, %v5587_v9  ;;  %6996 = vpow2.f32 %v6503_v3  ;;  %vm5791_vm12 = vweird.f32 %v6995_v59 }
 0x4ba   : > { %v5783_v22 = vsel %vm5780_vm7, %v5782_v6, %v5778_v29  ;;  %6998 = vrcp.f32 %v5588_v56  ;;  %vm5792_vm4 = vmor %vm5790_vm10, %vm5791_vm12  ;;  %v5811_v5 = vand.u32 2147483648, %v5588_v56  ;;  %v5809_v31 = vand.u32 2147483647, %v5588_v56 }
 0x4bb   : > { %v5842_v11 = vmul.f32 %v5783_v22, %v10281_v35  ;;  %v5787_v13 = vsub.f32 1.0, %v5786_v55  ;;  %vm5805_vm1 = vweird.f32 %v5588_v56  ;;  %vm10890_vm7 = vmmov %vm10889_vm5 }
 0x4bc   : > { %v5812_v40 = vor.u32 1.1754944e-38, %v5811_v5  ;;  %vm5810_vm8 = vcmp.eq.f32.partialorder %v5809_v31, 8.507059e+37 }
 0x4bd   : > { %5858 = vst.msk [vmem:[%s10223_s24 + $0x60] sm:$0xff] %vm10887_vm14, %v5842_v11  ;;  %v5788_v63 = vmul.f32 %v6995_v59, %v5787_v13 }
 0x4bf   : > { %v6997_v51 = vpop.eup %6996  ;;  %v5789_v42 = vadd.f32 %v6995_v59, %v5788_v63 }
 0x4c0   : > { %v6999_v57 = vpop.eup %6998  ;;  %v5589_v60 = vadd.f32 1.0, %v6997_v51 }
 0x4c1   : > { %v5793_v46 = vsel %vm5792_vm4, %v6995_v59, %v5789_v42  ;;  %v5801_v26 = vmul.f32 %v6999_v57, %v5588_v56  ;;  %vm5806_vm9 = vweird.f32 %v6999_v57 }
 0x4c2   : > { %v5798_v10 = vsel %vm5795_vm11, %v5797_v41, %v5793_v46  ;;  %7000 = vrcp.f32 %v5589_v60  ;;  %vm5807_vm0 = vmor %vm5805_vm1, %vm5806_vm9  ;;  %v5826_v24 = vand.u32 2147483648, %v5589_v60  ;;  %v5824_v54 = vand.u32 2147483647, %v5589_v60 }
 0x4c3   : > { %v5843_v35 = vmul.f32 %v5798_v10, %v10290_v16  ;;  %v5802_v38 = vsub.f32 1.0, %v5801_v26  ;;  %vm5820_vm13 = vweird.f32 %v5589_v60 }
 0x4c4   : > { %v5827_v39 = vor.u32 1.1754944e-38, %v5826_v24  ;;  %vm5825_vm3 = vcmp.eq.f32.partialorder %v5824_v54, 8.507059e+37 }
 0x4c5   : > { %5859 = vst.msk [vmem:[%s10223_s24 + $0x68] sm:$0xff] %vm10888_vm6, %v5843_v35  ;;  %v5803_v30 = vmul.f32 %v6999_v57, %v5802_v38 }
 0x4c7   : > { %v5804_v4 = vadd.f32 %v6999_v57, %v5803_v30 }
 0x4c8   : > { %v7001_v17 = vpop.eup %7000 }
 0x4c9   : > { %v5808_v50 = vsel %vm5807_vm0, %v6999_v57, %v5804_v4  ;;  %v5816_v34 = vmul.f32 %v7001_v17, %v5589_v60  ;;  %vm5821_vm2 = vweird.f32 %v7001_v17 }
 0x4ca   : > { %v5813_v18 = vsel %vm5810_vm8, %v5812_v40, %v5808_v50  ;;  %vm5822_vm15 = vmor %vm5820_vm13, %vm5821_vm2 }
 0x4cb   : > { %v5844_v16 = vmul.f32 %v5813_v18, %v10297_v21  ;;  %v5817_v53 = vsub.f32 1.0, %v5816_v34 }
 0x4cd   : > { %5860 = vst.msk [vmem:[%s10223_s24 + $0x70] sm:$0xff] %vm10889_vm5, %v5844_v16  ;;  %v5818_v14 = vmul.f32 %v7001_v17, %v5817_v53 }
 0x4cf   : > { %v5819_v27 = vadd.f32 %v7001_v17, %v5818_v14 }
 0x4d1   : > { %v5823_v2 = vsel %vm5822_vm15, %v7001_v17, %v5819_v27 }
 0x4d2   : > { %v5828_v1 = vsel %vm5825_vm3, %v5827_v39, %v5823_v2 }
 0x4d3   : > { %v5845_v48 = vmul.f32 %v5828_v1, %v10304_v12 }
 0x4d5   : > { %5861 = vst.msk [vmem:[%s10223_s24 + $0x78] sm:$0xff] %vm10890_vm7, %v5845_v48 }
 0x4d6 PF: > { %s23_s29 = sadd.s32 1, %s7064_s29   ;;  %s10891_s25 = sld [smem:[#allocation4_spill]] }
 0x4d7   : > { %p20_p13 = scmp.ge.s32.totalorder %s23_s29, 6   ;;  %s10892_s26 = sld [smem:[#allocation5_spill]] }
 0x4d8   : > { %s10893_s27 = sld [smem:[#allocation6_spill]] }
 0x4d9   : > { %s10894_s28 = sld [smem:[#allocation7_spill]]  ;;  %22 = sbr.rel (!%p20_p13) target bundleno = 4 (0x4), region = 112 }

</bundles_post_ra>
